<compile_context>
chip_gen: v7x
topology: tpu7x:2x2x1
jax: 0.10.0
libtpu: 0.0.40
codegen_flags: <defaults>
</compile_context>

<pallas_src>
import jax
import jax.numpy as jnp
from jax.experimental import pallas as pl
from jax.experimental.pallas import tpu as pltpu

IN_FEATURES = 10000
HIDDEN = 100
OUT_FEATURES = 1


def _disc_kernel(x_ref, w1_ref, b1_ref, w2_ref, b2_ref, out_ref):
    # First layer on the MXU with f32 accumulation: (B,10000) @ (10000,100).
    h = jnp.dot(x_ref[...], w1_ref[...], preferred_element_type=jnp.float32)
    h = jax.nn.sigmoid(h + b1_ref[...])                       # (B, 100)

    # Second layer (100 -> 1) as a VPU multiply + lane reduction instead of a
    # wasteful N=1 MXU matmul.  w2_ref is the (1, 100) weight row.
    y = jnp.sum(h * w2_ref[...], axis=-1, keepdims=True)      # (B, 1)
    out_ref[...] = (y + b2_ref[...]).astype(out_ref.dtype)


@jax.jit
def discriminator_forward(x, w1, b1, w2, b2):
    """x: (B, 10000) f32, w1: (10000, 100), b1: (100,), w2: (100, 1), b2: (1,).

    Returns (B, 1) f32.
    """
    B = x.shape[0]
    assert x.shape[1] == IN_FEATURES

    b1_2d = b1.reshape(1, HIDDEN)
    w2_row = w2.reshape(1, HIDDEN)          # torch head2.weight layout (1, 100)
    b2_2d = b2.reshape(1, OUT_FEATURES)

    # Single grid step, full-array blocks (exempt from (8,128) divisibility),
    # so no padding of K=10000 and no accumulator init/finalize phases.
    # Working set ~2 * (4 MB + B*40 KB) double-buffered — well under VMEM on
    # v5e / v6e / v7x.  For very large B, add a leading "parallel" batch grid
    # axis; not needed at these sizes.
    return pl.pallas_call(
        _disc_kernel,
        out_shape=jax.ShapeDtypeStruct((B, OUT_FEATURES), jnp.float32),
        grid=(1,),
        in_specs=[
            pl.BlockSpec((B, IN_FEATURES), lambda i: (0, 0)),        # x
            pl.BlockSpec((IN_FEATURES, HIDDEN), lambda i: (0, 0)),   # W1
            pl.BlockSpec((1, HIDDEN), lambda i: (0, 0)),             # b1
            pl.BlockSpec((1, HIDDEN), lambda i: (0, 0)),             # w2 row
            pl.BlockSpec((1, OUT_FEATURES), lambda i: (0, 0)),       # b2
        ],
        out_specs=pl.BlockSpec((B, OUT_FEATURES), lambda i: (0, 0)),
        compiler_params=pltpu.CompilerParams(
            dimension_semantics=("arbitrary",),
        ),
    )(x, w1, b1_2d, w2_row, b2_2d)


def init_params(key):
    """Deterministic synthetic parameters (shapes match the torch module)."""
    k1, k2, k3, k4 = jax.random.split(key, 4)
    # torch stores Linear weight as (out, in); we keep the transposed (in, out)
    # layout for W1 so the kernel does x @ W1 directly.
    w1 = jax.random.normal(k1, (IN_FEATURES, HIDDEN), jnp.float32) * 0.01
    b1 = jax.random.normal(k2, (HIDDEN,), jnp.float32) * 0.01
    w2 = jax.random.normal(k3, (HIDDEN, OUT_FEATURES), jnp.float32) * 0.1
    b2 = jax.random.normal(k4, (OUT_FEATURES,), jnp.float32) * 0.1
    return w1, b1, w2, b2


if __name__ == "__main__":
    key = jax.random.PRNGKey(0)
    kp, kx = jax.random.split(key)

    w1, b1, w2, b2 = init_params(kp)

    B = 2  # small batch; feature dim is fixed at 10000 by the module
    x = jax.random.normal(kx, (B, IN_FEATURES), jnp.float32)

    out = discriminator_forward(x, w1, b1, w2, b2)
    out = jax.block_until_ready(out)

    # Pure-JAX reference check of the fused kernel.
    ref = jax.nn.sigmoid(x @ w1 + b1) @ w2 + b2
    assert out.shape == (B, 1)
    assert jnp.allclose(out, ref, atol=1e-4, rtol=1e-4), (out, ref)

    print("KERNEL_OK")
</pallas_src>

<mosaic_0001>
module attributes {stable_mosaic.version = 11 : i64} {
  func.func @_disc_kernel(%arg0: i32, %arg1: memref<2x10000xf32, #tpu.memory_space<vmem>>, %arg2: memref<10000x100xf32, #tpu.memory_space<vmem>>, %arg3: memref<1x100xf32, #tpu.memory_space<vmem>>, %arg4: memref<1x100xf32, #tpu.memory_space<vmem>>, %arg5: memref<1x1xf32, #tpu.memory_space<vmem>>, %arg6: memref<2x1xf32, #tpu.memory_space<vmem>>) attributes {dimension_semantics = [#tpu.dimension_semantics<arbitrary>], iteration_bounds = array<i64: 1>, scalar_prefetch = 0 : i64, scratch_operands = 0 : i64, tpu.core_type = #tpu.core_type<tc>, window_params = [{pipeline_mode = #tpu.pipeline_mode<synchronous>, transform_indices = @transform_0, window_bounds = array<i64: 2, 10000>}, {pipeline_mode = #tpu.pipeline_mode<synchronous>, transform_indices = @transform_1, window_bounds = array<i64: 10000, 100>}, {pipeline_mode = #tpu.pipeline_mode<synchronous>, transform_indices = @transform_2, window_bounds = array<i64: 1, 100>}, {pipeline_mode = #tpu.pipeline_mode<synchronous>, transform_indices = @transform_3, window_bounds = array<i64: 1, 100>}, {pipeline_mode = #tpu.pipeline_mode<synchronous>, transform_indices = @transform_4, window_bounds = array<i64: 1, 1>}, {pipeline_mode = #tpu.pipeline_mode<synchronous>, transform_indices = @transform_5, window_bounds = array<i64: 2, 1>}]} {
    %c0 = arith.constant 0 : index
    %c0_0 = arith.constant 0 : index
    %0 = vector.load %arg1[%c0, %c0_0] : memref<2x10000xf32, #tpu.memory_space<vmem>>, vector<2x10000xf32>
    %c0_1 = arith.constant 0 : index
    %c0_2 = arith.constant 0 : index
    %1 = vector.load %arg2[%c0_1, %c0_2] : memref<10000x100xf32, #tpu.memory_space<vmem>>, vector<10000x100xf32>
    %cst = arith.constant dense<0.000000e+00> : vector<2x100xf32>
    %2 = tpu.matmul %0, %1, %cst {dimension_numbers = #tpu.dot_dimension_numbers<[1], [0], [0], [1], [0, 0, 1, 1], [], []>} : vector<2x10000xf32>, vector<10000x100xf32>, vector<2x100xf32> -> vector<2x100xf32>
    %c0_3 = arith.constant 0 : index
    %c0_4 = arith.constant 0 : index
    %3 = vector.load %arg3[%c0_3, %c0_4] : memref<1x100xf32, #tpu.memory_space<vmem>>, vector<1x100xf32>
    %4 = vector.broadcast %3 : vector<1x100xf32> to vector<2x100xf32>
    %5 = arith.addf %2, %4 : vector<2x100xf32>
    %6 = arith.negf %5 : vector<2x100xf32>
    %7 = math.exp %6 : vector<2x100xf32>
    %cst_5 = arith.constant 1.000000e+00 : f32
    %8 = vector.broadcast %cst_5 : f32 to vector<2x100xf32>
    %9 = arith.addf %8, %7 : vector<2x100xf32>
    %10 = arith.divf %8, %9 : vector<2x100xf32>
    %c0_6 = arith.constant 0 : index
    %c0_7 = arith.constant 0 : index
    %11 = vector.load %arg4[%c0_6, %c0_7] : memref<1x100xf32, #tpu.memory_space<vmem>>, vector<1x100xf32>
    %12 = vector.broadcast %11 : vector<1x100xf32> to vector<2x100xf32>
    %13 = arith.mulf %10, %12 : vector<2x100xf32>
    %cst_8 = arith.constant dense<0.000000e+00> : vector<2xf32>
    %14 = vector.multi_reduction <add>, %13, %cst_8 [1] : vector<2x100xf32> to vector<2xf32>
    %15 = vector.shape_cast %14 : vector<2xf32> to vector<2x1xf32>
    %c0_9 = arith.constant 0 : index
    %c0_10 = arith.constant 0 : index
    %16 = vector.load %arg5[%c0_9, %c0_10] : memref<1x1xf32, #tpu.memory_space<vmem>>, vector<1x1xf32>
    %17 = vector.broadcast %16 : vector<1x1xf32> to vector<2x1xf32>
    %18 = arith.addf %15, %17 : vector<2x1xf32>
    %c0_11 = arith.constant 0 : index
    %c0_12 = arith.constant 0 : index
    %19 = vector.load %arg6[%c0_11, %c0_12] : memref<2x1xf32, #tpu.memory_space<vmem>>, vector<2x1xf32>
    tpu.vector_store %arg6[%c0_11, %c0_12], %18 {strides = array<i32>} : memref<2x1xf32, #tpu.memory_space<vmem>>, vector<2x1xf32>,
    return
  }
  func.func @transform_0(%arg0: i32) -> (i32, i32) {
    %c0_i32 = arith.constant 0 : i32
    %c0_i32_0 = arith.constant 0 : i32
    %c0_i32_1 = arith.constant 0 : i32
    return %c0_i32, %c0_i32_0 : i32, i32
  }
  func.func @transform_1(%arg0: i32) -> (i32, i32) {
    %c0_i32 = arith.constant 0 : i32
    %c0_i32_0 = arith.constant 0 : i32
    %c0_i32_1 = arith.constant 0 : i32
    return %c0_i32, %c0_i32_0 : i32, i32
  }
  func.func @transform_2(%arg0: i32) -> (i32, i32) {
    %c0_i32 = arith.constant 0 : i32
    %c0_i32_0 = arith.constant 0 : i32
    %c0_i32_1 = arith.constant 0 : i32
    return %c0_i32, %c0_i32_0 : i32, i32
  }
  func.func @transform_3(%arg0: i32) -> (i32, i32) {
    %c0_i32 = arith.constant 0 : i32
    %c0_i32_0 = arith.constant 0 : i32
    %c0_i32_1 = arith.constant 0 : i32
    return %c0_i32, %c0_i32_0 : i32, i32
  }
  func.func @transform_4(%arg0: i32) -> (i32, i32) {
    %c0_i32 = arith.constant 0 : i32
    %c0_i32_0 = arith.constant 0 : i32
    %c0_i32_1 = arith.constant 0 : i32
    return %c0_i32, %c0_i32_0 : i32, i32
  }
  func.func @transform_5(%arg0: i32) -> (i32, i32) {
    %c0_i32 = arith.constant 0 : i32
    %c0_i32_0 = arith.constant 0 : i32
    %c0_i32_1 = arith.constant 0 : i32
    return %c0_i32, %c0_i32_0 : i32, i32
  }
}

</mosaic_0001>

<bundles_post_ra>
// kernel: discriminator_forward.1
= control target key start
LH: loop header
LB: loop body
LE: loop exit
PB: predicated region body
PF: predicated region fallthrough
CT: control target
= control target key end

     0   :  { %v7230_v43 = vmov 1983009808   ;;  %v1323_v45 = vlaneseq  ;;  %vm7232_vm0 = vmmov 0   ;;  %vm1736_vm1 = vcmask 130048   ;;  %s11349_s1 = inlined_call_operand.vmem [shape: f32[10000,100], index: 1, kind: input, shape index: {}]   ;;  %s11350_s0 = inlined_call_operand.vmem [shape: f32[2,10000], index: 0, kind: input, shape index: {}]   ;;  %s11351_s2 = inlined_call_operand.vmem [shape: f32[1,100], index: 2, kind: input, shape index: {}]   ;;  %s11352_s4 = inlined_call_operand.<no memory space> [shape: f32[1,1], index: 4, kind: input, shape index: {}]   ;;  %s11353_s3 = inlined_call_operand.vmem [shape: f32[1,100], index: 3, kind: input, shape index: {}]   ;;  %s11354_s5 = inlined_call_operand.vmem [shape: f32[2,1], index: 5, kind: output, shape index: {}]  }
   0x1   :  { %v58_v0 = vld [vmem:[%s11349_s1 + $0x80] sm:$0xff]  ;;  %v59_v1 = vld [vmem:[%s11349_s1 + $0x88] sm:$0xff]  ;;  %v60_v11 = vld [vmem:[%s11349_s1 + $0x90] sm:$0xff]  ;;  %v1321_v44 = vunpack.c.l.s4 %v7230_v43  ;;  %vm4553_vm2 = vcmask 812032   ;;  %vm4565_vm3 = vcmask 1024  }
   0x2   :  { %v42_v2 = vld [vmem:[%s11349_s1] sm:$0xff]  ;;  %v5951_v3 = vpack.c.bf16 %v59_v1, %v58_v0  ;;  %v43_v4 = vld [vmem:[%s11349_s1 + $0x8] sm:$0xff]  ;;  %v61_v13 = vld [vmem:[%s11349_s1 + $0x98] sm:$0xff]  ;;  %v1324_v60 = vshrl.u32 %v1323_v45, 7 }
   0x3   :  { %v90_v5 = vld [vmem:[%s11349_s1 + $0x180] sm:$0xff]  ;;  %v91_v6 = vld [vmem:[%s11349_s1 + $0x188] sm:$0xff]  ;;  %v5953_v7 = vpack.c.bf16 %v43_v4, %v42_v2  ;;  %v44_v14 = vld [vmem:[%s11349_s1 + $0x10] sm:$0xff]  ;;  %v5955_v16 = vpack.c.bf16 %v61_v13, %v60_v11  ;;  %v1322_v59 = vunpack.c.0.s8 %v1321_v44 }
   0x4   :  { %v5983_v8 = vpack.c.bf16 %v91_v6, %v90_v5  ;;  %v74_v9 = vld [vmem:[%s11349_s1 + $0x100] sm:$0xff]  ;;  %v75_v10 = vld [vmem:[%s11349_s1 + $0x108] sm:$0xff]  ;;  %5952 = vmatprep.subr.bf16.mxu0 %v5951_v3  ;;  %v45_v15 = vld [vmem:[%s11349_s1 + $0x18] sm:$0xff] }
   0x5   :  { %v5985_v12 = vpack.c.bf16 %v75_v10, %v74_v9  ;;  %5954 = vmatpush3.bf16.msra.mxu0 %v5953_v7  ;;  %v5957_v17 = vpack.c.bf16 %v45_v15, %v44_v14  ;;  %v92_v18 = vld [vmem:[%s11349_s1 + $0x190] sm:$0xff]  ;;  %v93_v19 = vld [vmem:[%s11349_s1 + $0x198] sm:$0xff]  ;;  %v62_v23 = vld [vmem:[%s11349_s1 + $0xa0] sm:$0xff]  ;;  %v7408_v10 = vsub.s32 %v1322_v59, %v1324_v60 }
   0x6   :  { %5984 = vmatprep.subr.bf16.mxu1 %v5983_v8  ;;  %v76_v20 = vld [vmem:[%s11349_s1 + $0x110] sm:$0xff]  ;;  %v5987_v21 = vpack.c.bf16 %v93_v19, %v92_v18  ;;  %v77_v22 = vld [vmem:[%s11349_s1 + $0x118] sm:$0xff]  ;;  %v63_v24 = vld [vmem:[%s11349_s1 + $0xa8] sm:$0xff]  ;;  %5956 = vmatprep.subr.bf16.mxu0 %v5955_v16 }
   0x7   :  { %5986 = vmatpush3.bf16.msra.mxu1 %v5985_v12  ;;  %v5989_v25 = vpack.c.bf16 %v77_v22, %v76_v20  ;;  %v5959_v26 = vpack.c.bf16 %v63_v24, %v62_v23  ;;  %v46_v27 = vld [vmem:[%s11349_s1 + $0x20] sm:$0xff]  ;;  %v47_v28 = vld [vmem:[%s11349_s1 + $0x28] sm:$0xff]  ;;  %v64_v35 = vld [vmem:[%s11349_s1 + $0xb0] sm:$0xff] }
   0x8   :  { %v94_v29 = vld [vmem:[%s11349_s1 + $0x1a0] sm:$0xff]  ;;  %5988 = vmatprep.subr.bf16.mxu1 %v5987_v21  ;;  %v95_v30 = vld [vmem:[%s11349_s1 + $0x1a8] sm:$0xff]  ;;  %v5961_v33 = vpack.c.bf16 %v47_v28, %v46_v27  ;;  %v65_v36 = vld [vmem:[%s11349_s1 + $0xb8] sm:$0xff] }
   0x9   :  { %v78_v31 = vld [vmem:[%s11349_s1 + $0x120] sm:$0xff]  ;;  %v79_v32 = vld [vmem:[%s11349_s1 + $0x128] sm:$0xff]  ;;  %5958 = vmatpush3.bf16.msra.mxu0 %v5957_v17  ;;  %v5991_v34 = vpack.c.bf16 %v95_v30, %v94_v29  ;;  %v48_v37 = vld [vmem:[%s11349_s1 + $0x30] sm:$0xff]  ;;  %v5963_v39 = vpack.c.bf16 %v65_v36, %v64_v35 }
   0xa   :  { %5960 = vmatprep.subr.bf16.mxu0 %v5959_v26  ;;  %v5993_v38 = vpack.c.bf16 %v79_v32, %v78_v31  ;;  %v49_v40 = vld [vmem:[%s11349_s1 + $0x38] sm:$0xff]  ;;  %v96_v41 = vld [vmem:[%s11349_s1 + $0x1b0] sm:$0xff]  ;;  %v66_v49 = vld [vmem:[%s11349_s1 + $0xc0] sm:$0xff] }
   0xb   :  { %5990 = vmatpush3.bf16.msra.mxu1 %v5989_v25  ;;  %v97_v42 = vld [vmem:[%s11349_s1 + $0x1b8] sm:$0xff]  ;;  %v80_v47 = vld [vmem:[%s11349_s1 + $0x130] sm:$0xff]  ;;  %v67_v50 = vld [vmem:[%s11349_s1 + $0xc8] sm:$0xff]  ;;  %v5965_v51 = vpack.c.bf16 %v49_v40, %v48_v37 }
   0xc   :  { %5992 = vmatprep.subr.bf16.mxu1 %v5991_v34  ;;  %v5995_v46 = vpack.c.bf16 %v97_v42, %v96_v41  ;;  %v81_v48 = vld [vmem:[%s11349_s1 + $0x138] sm:$0xff]  ;;  %v98_v52 = vld [vmem:[%s11349_s1 + $0x1c0] sm:$0xff]  ;;  %v99_v53 = vld [vmem:[%s11349_s1 + $0x1c8] sm:$0xff]  ;;  %v5967_v55 = vpack.c.bf16 %v67_v50, %v66_v49 }
   0xd   :  { %5962 = vmatpush3.bf16.msra.mxu0 %v5961_v33  ;;  %v5997_v54 = vpack.c.bf16 %v81_v48, %v80_v47  ;;  %v50_v56 = vld [vmem:[%s11349_s1 + $0x40] sm:$0xff]  ;;  %v51_v57 = vld [vmem:[%s11349_s1 + $0x48] sm:$0xff]  ;;  %v5999_v61 = vpack.c.bf16 %v99_v53, %v98_v52  ;;  %v68_v63 = vld [vmem:[%s11349_s1 + $0xd0] sm:$0xff] }
   0xe   :  { %5964 = vmatprep.subr.bf16.mxu0 %v5963_v39  ;;  %v82_v58 = vld [vmem:[%s11349_s1 + $0x140] sm:$0xff]  ;;  %v83_v62 = vld [vmem:[%s11349_s1 + $0x148] sm:$0xff]  ;;  %v69_v0 = vld [vmem:[%s11349_s1 + $0xd8] sm:$0xff]  ;;  %v5969_v3 = vpack.c.bf16 %v51_v57, %v50_v56 }
   0xf   :  { %5994 = vmatpush3.bf16.msra.mxu1 %v5993_v38  ;;  %v100_v1 = vld [vmem:[%s11349_s1 + $0x1d0] sm:$0xff]  ;;  %v101_v2 = vld [vmem:[%s11349_s1 + $0x1d8] sm:$0xff]  ;;  %v6001_v5 = vpack.c.bf16 %v83_v62, %v82_v58  ;;  %v5971_v6 = vpack.c.bf16 %v69_v0, %v68_v63  ;;  %v70_v12 = vld [vmem:[%s11349_s1 + $0xe0] sm:$0xff] }
  0x10   :  { %5996 = vmatprep.subr.bf16.mxu1 %v5995_v46  ;;  %v52_v4 = vld [vmem:[%s11349_s1 + $0x50] sm:$0xff]  ;;  %v53_v7 = vld [vmem:[%s11349_s1 + $0x58] sm:$0xff]  ;;  %v6003_v11 = vpack.c.bf16 %v101_v2, %v100_v1  ;;  %v71_v13 = vld [vmem:[%s11349_s1 + $0xe8] sm:$0xff] }
  0x11   :  { %5966 = vmatpush3.bf16.msra.mxu0 %v5965_v51  ;;  %v84_v8 = vld [vmem:[%s11349_s1 + $0x150] sm:$0xff]  ;;  %v85_v9 = vld [vmem:[%s11349_s1 + $0x158] sm:$0xff]  ;;  %v102_v14 = vld [vmem:[%s11349_s1 + $0x1e0] sm:$0xff]  ;;  %v5973_v16 = vpack.c.bf16 %v53_v7, %v52_v4  ;;  %v5975_v19 = vpack.c.bf16 %v71_v13, %v70_v12 }
  0x12   :  { %5968 = vmatprep.subr.bf16.mxu0 %v5967_v55  ;;  %v103_v15 = vld [vmem:[%s11349_s1 + $0x1e8] sm:$0xff]  ;;  %v6005_v17 = vpack.c.bf16 %v85_v9, %v84_v8  ;;  %v22_v18 = vld [vmem:[%s11350_s0] sm:$0xff]  ;;  %v72_v27 = vld [vmem:[%s11349_s1 + $0xf0] sm:$0xff] }
  0x13   :  { %5998 = vmatpush3.bf16.msra.mxu1 %v5997_v54  ;;  %v54_v20 = vld [vmem:[%s11349_s1 + $0x60] sm:$0xff]  ;;  %v55_v21 = vld [vmem:[%s11349_s1 + $0x68] sm:$0xff]  ;;  %v1326_v23 = vrot.slane %v22_v18, %v7408_v10  ;;  %v1319_v24 = vcombine.high %v22_v18, %v22_v18  ;;  %v6007_v25 = vpack.c.bf16 %v103_v15, %v102_v14  ;;  %v73_v28 = vld [vmem:[%s11349_s1 + $0xf8] sm:$0xff] }
  0x14   :  { %6000 = vmatprep.subr.bf16.mxu1 %v5999_v61  ;;  %v86_v22 = vld [vmem:[%s11349_s1 + $0x160] sm:$0xff]  ;;  %v87_v26 = vld [vmem:[%s11349_s1 + $0x168] sm:$0xff]  ;;  %v104_v29 = vld [vmem:[%s11349_s1 + $0x1f0] sm:$0xff]  ;;  %v5977_v33 = vpack.c.bf16 %v55_v21, %v54_v20  ;;  %v5979_v35 = vpack.c.bf16 %v73_v28, %v72_v27 }
  0x15   :  { %5970 = vmatpush3.bf16.msra.mxu0 %v5969_v3  ;;  %v105_v30 = vld [vmem:[%s11349_s1 + $0x1f8] sm:$0xff]  ;;  %v1334_v31 = vcombine.high %v1326_v23, %v1326_v23  ;;  %v1333_v32 = vrot.slane %v1319_v24, %v7408_v10  ;;  %v6009_v34 = vpack.c.bf16 %v87_v26, %v86_v22  ;;  %v56_v36 = vld [vmem:[%s11349_s1 + $0x70] sm:$0xff]  ;;  %v122_v42 = vld [vmem:[%s11349_s1 + $0x280] sm:$0xff] }
  0x16   :  { %5972 = vmatprep.subr.bf16.mxu0 %v5971_v6  ;;  %v57_v37 = vld [vmem:[%s11349_s1 + $0x78] sm:$0xff]  ;;  %v88_v38 = vld [vmem:[%s11349_s1 + $0x170] sm:$0xff]  ;;  %v6011_v40 = vpack.c.bf16 %v105_v30, %v104_v29  ;;  %v123_v43 = vld [vmem:[%s11349_s1 + $0x288] sm:$0xff] }
  0x17   :  { %6002 = vmatpush3.bf16.msra.mxu1 %v6001_v5  ;;  %v1335_v39 = vcombine.high %v1333_v32, %v1333_v32  ;;  %1803 = vmatprep.mubr.f32.mxu0 %v1334_v31  ;;  %v89_v41 = vld [vmem:[%s11349_s1 + $0x178] sm:$0xff]  ;;  %v154_v44 = vld [vmem:[%s11349_s1 + $0x380] sm:$0xff]  ;;  %v155_v45 = vld [vmem:[%s11349_s1 + $0x388] sm:$0xff]  ;;  %v5981_v46 = vpack.c.bf16 %v57_v37, %v56_v36  ;;  %v6015_v48 = vpack.c.bf16 %v123_v43, %v122_v42 }
  0x18   :  { %6004 = vmatprep.subr.bf16.mxu1 %v6003_v11  ;;  %v6013_v47 = vpack.c.bf16 %v89_v41, %v88_v38  ;;  %v106_v49 = vld [vmem:[%s11349_s1 + $0x200] sm:$0xff]  ;;  %v107_v50 = vld [vmem:[%s11349_s1 + $0x208] sm:$0xff]  ;;  %v6047_v52 = vpack.c.bf16 %v155_v45, %v154_v44  ;;  %v124_v54 = vld [vmem:[%s11349_s1 + $0x290] sm:$0xff] }
  0x19   :  { %5974 = vmatpush3.bf16.msra.mxu0 %v5973_v16  ;;  %1873 = vmatprep.mubr.f32.mxu1 %v1335_v39  ;;  %v138_v51 = vld [vmem:[%s11349_s1 + $0x300] sm:$0xff]  ;;  %v139_v53 = vld [vmem:[%s11349_s1 + $0x308] sm:$0xff]  ;;  %v125_v55 = vld [vmem:[%s11349_s1 + $0x298] sm:$0xff]  ;;  %v6017_v58 = vpack.c.bf16 %v107_v50, %v106_v49 }
  0x1a   :  { %5976 = vmatprep.subr.bf16.mxu0 %v5975_v19  ;;  %v156_v56 = vld [vmem:[%s11349_s1 + $0x390] sm:$0xff]  ;;  %v157_v57 = vld [vmem:[%s11349_s1 + $0x398] sm:$0xff]  ;;  %v6049_v59 = vpack.c.bf16 %v139_v53, %v138_v51  ;;  %v6019_v60 = vpack.c.bf16 %v125_v55, %v124_v54  ;;  %v126_v2 = vld [vmem:[%s11349_s1 + $0x2a0] sm:$0xff] }
  0x1b   :  { %6006 = vmatpush3.bf16.msra.mxu1 %v6005_v17  ;;  %v108_v61 = vld [vmem:[%s11349_s1 + $0x210] sm:$0xff]  ;;  %v109_v62 = vld [vmem:[%s11349_s1 + $0x218] sm:$0xff]  ;;  %v6051_v0 = vpack.c.bf16 %v157_v57, %v156_v56  ;;  %v127_v3 = vld [vmem:[%s11349_s1 + $0x2a8] sm:$0xff] }
  0x1c   :  { %6008 = vmatprep.subr.bf16.mxu1 %v6007_v25  ;;  %v140_v63 = vld [vmem:[%s11349_s1 + $0x310] sm:$0xff]  ;;  %v141_v1 = vld [vmem:[%s11349_s1 + $0x318] sm:$0xff]  ;;  %v158_v4 = vld [vmem:[%s11349_s1 + $0x3a0] sm:$0xff]  ;;  %v6021_v6 = vpack.c.bf16 %v109_v62, %v108_v61  ;;  %v6023_v8 = vpack.c.bf16 %v127_v3, %v126_v2 }
  0x1d   :  { %5978 = vmatpush3.bf16.msra.mxu0 %v5977_v33  ;;  %v159_v5 = vld [vmem:[%s11349_s1 + $0x3a8] sm:$0xff]  ;;  %v6053_v7 = vpack.c.bf16 %v141_v1, %v140_v63  ;;  %v110_v9 = vld [vmem:[%s11349_s1 + $0x220] sm:$0xff]  ;;  %v128_v15 = vld [vmem:[%s11349_s1 + $0x2b0] sm:$0xff] }
  0x1e   :  { %5980 = vmatprep.subr.bf16.mxu0 %v5979_v35  ;;  %v111_v11 = vld [vmem:[%s11349_s1 + $0x228] sm:$0xff]  ;;  %v142_v12 = vld [vmem:[%s11349_s1 + $0x320] sm:$0xff]  ;;  %v6055_v13 = vpack.c.bf16 %v159_v5, %v158_v4  ;;  %v129_v16 = vld [vmem:[%s11349_s1 + $0x2b8] sm:$0xff] }
  0x1f   :  { %6010 = vmatpush3.bf16.msra.mxu1 %v6009_v34  ;;  %v143_v14 = vld [vmem:[%s11349_s1 + $0x328] sm:$0xff]  ;;  %v160_v17 = vld [vmem:[%s11349_s1 + $0x3b0] sm:$0xff]  ;;  %v161_v18 = vld [vmem:[%s11349_s1 + $0x3b8] sm:$0xff]  ;;  %v6025_v19 = vpack.c.bf16 %v111_v11, %v110_v9  ;;  %v6027_v22 = vpack.c.bf16 %v129_v16, %v128_v15 }
  0x20   :  { %6012 = vmatprep.subr.bf16.mxu1 %v6011_v40  ;;  %v112_v20 = vld [vmem:[%s11349_s1 + $0x230] sm:$0xff]  ;;  %v6057_v21 = vpack.c.bf16 %v143_v14, %v142_v12  ;;  %v145_v25 = vld [vmem:[%s11349_s1 + $0x338] sm:$0xff]  ;;  %v6059_v26 = vpack.c.bf16 %v161_v18, %v160_v17  ;;  %v130_v27 = vld [vmem:[%s11349_s1 + $0x2c0] sm:$0xff] }
  0x21   :  { %5982 = vmatpush3.bf16.msra.mxu0 %v5981_v46  ;;  %v144_v24 = vld [vmem:[%s11349_s1 + $0x330] sm:$0xff]  ;;  %v131_v28 = vld [vmem:[%s11349_s1 + $0x2c8] sm:$0xff]  ;;  %v162_v30 = vld [vmem:[%s11349_s1 + $0x3c0] sm:$0xff] }
  0x22   :  { %6016 = vmatprep.subr.bf16.mxu0 %v6015_v48  ;;  %v23_v29 = vld [vmem:[%s11350_s0 + $0x8] sm:$0xff]  ;;  %v6061_v35 = vpack.c.bf16 %v145_v25, %v144_v24  ;;  %v6031_v36 = vpack.c.bf16 %v131_v28, %v130_v27  ;;  %v114_v37 = vld [vmem:[%s11349_s1 + $0x240] sm:$0xff]  ;;  %v132_v44 = vld [vmem:[%s11349_s1 + $0x2d0] sm:$0xff] }
  0x23   :  { %6014 = vmatpush3.bf16.msra.mxu1 %v6013_v47  ;;  %v163_v31 = vld [vmem:[%s11349_s1 + $0x3c8] sm:$0xff]  ;;  %v1336_v33 = vcombine.high %v23_v29, %v23_v29  ;;  %v146_v39 = vld [vmem:[%s11349_s1 + $0x340] sm:$0xff]  ;;  %v133_v45 = vld [vmem:[%s11349_s1 + $0x2d8] sm:$0xff] }
  0x24   :  { %6048 = vmatprep.subr.bf16.mxu1 %v6047_v52  ;;  %1804 = vmatmul.mubr.f32.vlgmr.msra.gmra.mrb[0].mxu0 %v1326_v23  ;;  %v113_v23 = vld [vmem:[%s11349_s1 + $0x238] sm:$0xff]  ;;  %v115_v38 = vld [vmem:[%s11349_s1 + $0x248] sm:$0xff]  ;;  %v6063_v42 = vpack.c.bf16 %v163_v31, %v162_v30  ;;  %v164_v46 = vld [vmem:[%s11349_s1 + $0x3d0] sm:$0xff]  ;;  %v6035_v51 = vpack.c.bf16 %v133_v45, %v132_v44 }
  0x25   :  { %6018 = vmatpush3.bf16.msra.mxu0 %v6017_v58  ;;  %v6029_v34 = vpack.c.bf16 %v113_v23, %v112_v20  ;;  %v7589_v41 = vrot.slane %v1336_v33, %v7408_v10  ;;  %v147_v43 = vld [vmem:[%s11349_s1 + $0x348] sm:$0xff]  ;;  %v165_v47 = vld [vmem:[%s11349_s1 + $0x3d8] sm:$0xff]  ;;  %v6033_v49 = vpack.c.bf16 %v115_v38, %v114_v37  ;;  %v116_v52 = vld [vmem:[%s11349_s1 + $0x250] sm:$0xff] }
  0x26   :  { %1874 = vmatmul.mubr.f32.vlgmr.msra.gmra.mrb[0].mxu1 %v1333_v32  ;;  %6020 = vmatprep.subr.bf16.mxu0 %v6019_v60  ;;  %v7575_v32 = vrot.slane %v23_v29, %v7408_v10  ;;  %v6065_v50 = vpack.c.bf16 %v147_v43, %v146_v39  ;;  %v117_v53 = vld [vmem:[%s11349_s1 + $0x258] sm:$0xff]  ;;  %v148_v54 = vld [vmem:[%s11349_s1 + $0x350] sm:$0xff]  ;;  %v6067_v55 = vpack.c.bf16 %v165_v47, %v164_v46  ;;  %v134_v57 = vld [vmem:[%s11349_s1 + $0x2e0] sm:$0xff] }
  0x27   :  { %6050 = vmatpush3.bf16.msra.mxu1 %v6049_v59  ;;  %v1352_v48 = vcombine.high %v7589_v41, %v7589_v41  ;;  %v149_v56 = vld [vmem:[%s11349_s1 + $0x358] sm:$0xff]  ;;  %v135_v58 = vld [vmem:[%s11349_s1 + $0x2e8] sm:$0xff]  ;;  %v166_v59 = vld [vmem:[%s11349_s1 + $0x3e0] sm:$0xff]  ;;  %v6037_v61 = vpack.c.bf16 %v117_v53, %v116_v52 }
  0x28   :  { %6052 = vmatprep.subr.bf16.mxu1 %v6051_v0  ;;  %v1351_v40 = vcombine.high %v7575_v32, %v7575_v32  ;;  %v167_v60 = vld [vmem:[%s11349_s1 + $0x3e8] sm:$0xff]  ;;  %v6069_v62 = vpack.c.bf16 %v149_v56, %v148_v54  ;;  %v6039_v63 = vpack.c.bf16 %v135_v58, %v134_v57  ;;  %v118_v0 = vld [vmem:[%s11349_s1 + $0x260] sm:$0xff]  ;;  %v136_v5 = vld [vmem:[%s11349_s1 + $0x2f0] sm:$0xff] }
  0x29   :  { %6022 = vmatpush3.bf16.msra.mxu0 %v6021_v6  ;;  %2013 = vmatprep.mubr.f32.mxu1 %v1352_v48  ;;  %v119_v1 = vld [vmem:[%s11349_s1 + $0x268] sm:$0xff]  ;;  %v150_v2 = vld [vmem:[%s11349_s1 + $0x360] sm:$0xff]  ;;  %v6071_v3 = vpack.c.bf16 %v167_v60, %v166_v59  ;;  %v137_v6 = vld [vmem:[%s11349_s1 + $0x2f8] sm:$0xff] }
  0x2a   :  { %6024 = vmatprep.subr.bf16.mxu0 %v6023_v8  ;;  %1943 = vmatprep.mubr.f32.mxu0 %v1351_v40  ;;  %v151_v4 = vld [vmem:[%s11349_s1 + $0x368] sm:$0xff]  ;;  %v169_v8 = vld [vmem:[%s11349_s1 + $0x3f8] sm:$0xff]  ;;  %v6041_v9 = vpack.c.bf16 %v119_v1, %v118_v0  ;;  %v6043_v12 = vpack.c.bf16 %v137_v6, %v136_v5  ;;  %v152_v15 = vld [vmem:[%s11349_s1 + $0x370] sm:$0xff] }
  0x2b   :  { %6054 = vmatpush3.bf16.msra.mxu1 %v6053_v7  ;;  %v168_v7 = vld [vmem:[%s11349_s1 + $0x3f0] sm:$0xff]  ;;  %v6073_v11 = vpack.c.bf16 %v151_v4, %v150_v2  ;;  %v121_v14 = vld [vmem:[%s11349_s1 + $0x278] sm:$0xff]  ;;  %v186_v18 = vld [vmem:[%s11349_s1 + $0x480] sm:$0xff] }
  0x2c   :  { %6056 = vmatprep.subr.bf16.mxu1 %v6055_v13  ;;  %v120_v13 = vld [vmem:[%s11349_s1 + $0x270] sm:$0xff]  ;;  %v6075_v16 = vpack.c.bf16 %v169_v8, %v168_v7  ;;  %v153_v17 = vld [vmem:[%s11349_s1 + $0x378] sm:$0xff]  ;;  %v218_v20 = vld [vmem:[%s11349_s1 + $0x580] sm:$0xff] }
  0x2d   :  { %6026 = vmatpush3.bf16.msra.mxu0 %v6025_v19  ;;  %v187_v19 = vld [vmem:[%s11349_s1 + $0x488] sm:$0xff]  ;;  %v170_v23 = vld [vmem:[%s11349_s1 + $0x400] sm:$0xff]  ;;  %v6077_v24 = vpack.c.bf16 %v153_v17, %v152_v15  ;;  %v188_v30 = vld [vmem:[%s11349_s1 + $0x490] sm:$0xff] }
  0x2e   :  { %6028 = vmatprep.subr.bf16.mxu0 %v6027_v22  ;;  %v6045_v22 = vpack.c.bf16 %v121_v14, %v120_v13  ;;  %v6079_v25 = vpack.c.bf16 %v187_v19, %v186_v18  ;;  %v202_v27 = vld [vmem:[%s11349_s1 + $0x500] sm:$0xff]  ;;  %v203_v28 = vld [vmem:[%s11349_s1 + $0x508] sm:$0xff]  ;;  %v189_v31 = vld [vmem:[%s11349_s1 + $0x498] sm:$0xff] }
  0x2f   :  { %6058 = vmatpush3.bf16.msra.mxu1 %v6057_v21  ;;  %v219_v21 = vld [vmem:[%s11349_s1 + $0x588] sm:$0xff]  ;;  %v220_v33 = vld [vmem:[%s11349_s1 + $0x590] sm:$0xff]  ;;  %v6083_v38 = vpack.c.bf16 %v189_v31, %v188_v30  ;;  %v173_v40 = vld [vmem:[%s11349_s1 + $0x418] sm:$0xff] }
  0x30   :  { %6060 = vmatprep.subr.bf16.mxu1 %v6059_v26  ;;  %v171_v26 = vld [vmem:[%s11349_s1 + $0x408] sm:$0xff]  ;;  %v6111_v29 = vpack.c.bf16 %v219_v21, %v218_v20  ;;  %v24_v37 = vld [vmem:[%s11350_s0 + $0x10] sm:$0xff]  ;;  %v205_v46 = vld [vmem:[%s11349_s1 + $0x518] sm:$0xff] }
  0x31   :  { %6030 = vmatpush3.bf16.msra.mxu0 %v6029_v34  ;;  %v221_v34 = vld [vmem:[%s11349_s1 + $0x598] sm:$0xff]  ;;  %v172_v39 = vld [vmem:[%s11349_s1 + $0x410] sm:$0xff]  ;;  %v7717_v43 = vrot.slane %v24_v37, %v7408_v10  ;;  %v1353_v44 = vcombine.high %v24_v37, %v24_v37  ;;  %v190_v47 = vld [vmem:[%s11349_s1 + $0x4a0] sm:$0xff] }
  0x32   :  { %6032 = vmatprep.subr.bf16.mxu0 %v6031_v36  ;;  %v6113_v36 = vpack.c.bf16 %v203_v28, %v202_v27  ;;  %v6115_v45 = vpack.c.bf16 %v221_v34, %v220_v33  ;;  %v191_v48 = vld [vmem:[%s11349_s1 + $0x4a8] sm:$0xff]  ;;  %v6085_v53 = vpack.c.bf16 %v173_v40, %v172_v39  ;;  %v206_v57 = vld [vmem:[%s11349_s1 + $0x520] sm:$0xff]  ;;  %v192_v60 = vld [vmem:[%s11349_s1 + $0x4b0] sm:$0xff] }
  0x33   :  { %6062 = vmatpush3.bf16.msra.mxu1 %v6061_v35  ;;  %v6081_v35 = vpack.c.bf16 %v171_v26, %v170_v23  ;;  %v7738_v52 = vrot.slane %v1353_v44, %v7408_v10  ;;  %v6087_v54 = vpack.c.bf16 %v191_v48, %v190_v47  ;;  %v175_v56 = vld [vmem:[%s11349_s1 + $0x428] sm:$0xff]  ;;  %v177_v4 = vld [vmem:[%s11349_s1 + $0x438] sm:$0xff]  ;;  %v208_v5 = vld [vmem:[%s11349_s1 + $0x530] sm:$0xff] }
  0x34   :  { %6064 = vmatprep.subr.bf16.mxu1 %v6063_v42  ;;  %v204_v42 = vld [vmem:[%s11349_s1 + $0x510] sm:$0xff]  ;;  %v207_v59 = vld [vmem:[%s11349_s1 + $0x528] sm:$0xff]  ;;  %v209_v7 = vld [vmem:[%s11349_s1 + $0x538] sm:$0xff] }
  0x35   :  { %6034 = vmatpush3.bf16.msra.mxu0 %v6033_v49  ;;  %v222_v49 = vld [vmem:[%s11349_s1 + $0x5a0] sm:$0xff]  ;;  %v6121_v1 = vpack.c.bf16 %v207_v59, %v206_v57  ;;  %v6125_v14 = vpack.c.bf16 %v209_v7, %v208_v5  ;;  %v179_v17 = vld [vmem:[%s11349_s1 + $0x448] sm:$0xff]  ;;  %v196_v21 = vld [vmem:[%s11349_s1 + $0x4d0] sm:$0xff] }
  0x36   :  { %6036 = vmatprep.subr.bf16.mxu0 %v6035_v51  ;;  %v1368_v51 = vcombine.high %v7717_v43, %v7717_v43  ;;  %v194_v8 = vld [vmem:[%s11349_s1 + $0x4c0] sm:$0xff]  ;;  %v211_v20 = vld [vmem:[%s11349_s1 + $0x548] sm:$0xff]  ;;  %v228_v23 = vld [vmem:[%s11349_s1 + $0x5d0] sm:$0xff] }
  0x37   :  { %6066 = vmatpush3.bf16.msra.mxu1 %v6065_v50  ;;  %v223_v50 = vld [vmem:[%s11349_s1 + $0x5a8] sm:$0xff]  ;;  %v210_v18 = vld [vmem:[%s11349_s1 + $0x540] sm:$0xff]  ;;  %v180_v28 = vld [vmem:[%s11349_s1 + $0x450] sm:$0xff] }
  0x38   :  { %6068 = vmatprep.subr.bf16.mxu1 %v6067_v55  ;;  %v174_v55 = vld [vmem:[%s11349_s1 + $0x420] sm:$0xff]  ;;  %v6119_v58 = vpack.c.bf16 %v223_v50, %v222_v49  ;;  %v6129_v26 = vpack.c.bf16 %v211_v20, %v210_v18  ;;  %v212_v30 = vld [vmem:[%s11349_s1 + $0x550] sm:$0xff]  ;;  %v213_v33 = vld [vmem:[%s11349_s1 + $0x558] sm:$0xff] }
  0x39   :  { %6038 = vmatpush3.bf16.msra.mxu0 %v6037_v61  ;;  %v193_v61 = vld [vmem:[%s11349_s1 + $0x4b8] sm:$0xff]  ;;  %v6089_v0 = vpack.c.bf16 %v175_v56, %v174_v55  ;;  %v198_v34 = vld [vmem:[%s11349_s1 + $0x4e0] sm:$0xff]  ;;  %v231_v37 = vld [vmem:[%s11349_s1 + $0x5e8] sm:$0xff]  ;;  %v6133_v39 = vpack.c.bf16 %v213_v33, %v212_v30 }
  0x3a   :  { %6040 = vmatprep.subr.bf16.mxu0 %v6039_v63  ;;  %v225_v63 = vld [vmem:[%s11349_s1 + $0x5b8] sm:$0xff]  ;;  %v6091_v2 = vpack.c.bf16 %v193_v61, %v192_v60  ;;  %v183_v44 = vld [vmem:[%s11349_s1 + $0x468] sm:$0xff]  ;;  %v200_v48 = vld [vmem:[%s11349_s1 + $0x4f0] sm:$0xff] }
  0x3b   :  { %6070 = vmatpush3.bf16.msra.mxu1 %v6069_v62  ;;  %v224_v62 = vld [vmem:[%s11349_s1 + $0x5b0] sm:$0xff]  ;;  %v215_v47 = vld [vmem:[%s11349_s1 + $0x568] sm:$0xff]  ;;  %v201_v49 = vld [vmem:[%s11349_s1 + $0x4f8] sm:$0xff] }
  0x3c   :  { %6072 = vmatprep.subr.bf16.mxu1 %v6071_v3  ;;  %v176_v3 = vld [vmem:[%s11349_s1 + $0x430] sm:$0xff]  ;;  %v6123_v6 = vpack.c.bf16 %v225_v63, %v224_v62  ;;  %v6107_v55 = vpack.c.bf16 %v201_v49, %v200_v48  ;;  %v185_v57 = vld [vmem:[%s11349_s1 + $0x478] sm:$0xff]  ;;  %v250_v60 = vld [vmem:[%s11349_s1 + $0x680] sm:$0xff] }
  0x3d   :  { %6042 = vmatpush3.bf16.msra.mxu0 %v6041_v9  ;;  %v195_v9 = vld [vmem:[%s11349_s1 + $0x4c8] sm:$0xff]  ;;  %v6093_v13 = vpack.c.bf16 %v177_v4, %v176_v3  ;;  %v232_v50 = vld [vmem:[%s11349_s1 + $0x5f0] sm:$0xff]  ;;  %v217_v59 = vld [vmem:[%s11349_s1 + $0x578] sm:$0xff] }
  0x3e   :  { %6044 = vmatprep.subr.bf16.mxu0 %v6043_v12  ;;  %v227_v12 = vld [vmem:[%s11349_s1 + $0x5c8] sm:$0xff]  ;;  %v6095_v15 = vpack.c.bf16 %v195_v9, %v194_v8  ;;  %v184_v56 = vld [vmem:[%s11349_s1 + $0x470] sm:$0xff]  ;;  %v282_v62 = vld [vmem:[%s11349_s1 + $0x780] sm:$0xff] }
  0x3f   :  { %6074 = vmatpush3.bf16.msra.mxu1 %v6073_v11  ;;  %v226_v11 = vld [vmem:[%s11349_s1 + $0x5c0] sm:$0xff]  ;;  %v251_v61 = vld [vmem:[%s11349_s1 + $0x688] sm:$0xff]  ;;  %v252_v9 = vld [vmem:[%s11349_s1 + $0x690] sm:$0xff] }
  0x40   :  { %6076 = vmatprep.subr.bf16.mxu1 %v6075_v16  ;;  %v178_v16 = vld [vmem:[%s11349_s1 + $0x440] sm:$0xff]  ;;  %v6127_v19 = vpack.c.bf16 %v227_v12, %v226_v11  ;;  %v283_v63 = vld [vmem:[%s11349_s1 + $0x788] sm:$0xff]  ;;  %v6143_v3 = vpack.c.bf16 %v251_v61, %v250_v60  ;;  %v253_v11 = vld [vmem:[%s11349_s1 + $0x698] sm:$0xff] }
  0x41   :  { %6046 = vmatpush3.bf16.msra.mxu0 %v6045_v22  ;;  %v197_v22 = vld [vmem:[%s11349_s1 + $0x4d8] sm:$0xff]  ;;  %v234_v4 = vld [vmem:[%s11349_s1 + $0x600] sm:$0xff]  ;;  %v235_v5 = vld [vmem:[%s11349_s1 + $0x608] sm:$0xff]  ;;  %v6175_v7 = vpack.c.bf16 %v283_v63, %v282_v62  ;;  %v6147_v18 = vpack.c.bf16 %v253_v11, %v252_v9 }
  0x42   :  { %6080 = vmatprep.subr.bf16.mxu0 %v6079_v25  ;;  %v6097_v25 = vpack.c.bf16 %v179_v17, %v178_v16  ;;  %v6099_v27 = vpack.c.bf16 %v197_v22, %v196_v21  ;;  %v267_v8 = vld [vmem:[%s11349_s1 + $0x708] sm:$0xff]  ;;  %v6145_v16 = vpack.c.bf16 %v235_v5, %v234_v4  ;;  %v237_v20 = vld [vmem:[%s11349_s1 + $0x618] sm:$0xff]  ;;  %v268_v21 = vld [vmem:[%s11349_s1 + $0x710] sm:$0xff] }
  0x43   :  { %6078 = vmatpush3.bf16.msra.mxu1 %v6077_v24  ;;  %v229_v24 = vld [vmem:[%s11349_s1 + $0x5d8] sm:$0xff]  ;;  %v272_v48 = vld [vmem:[%s11349_s1 + $0x730] sm:$0xff]  ;;  %v275_v61 = vld [vmem:[%s11349_s1 + $0x748] sm:$0xff] }
  0x44   :  { %6112 = vmatprep.subr.bf16.mxu1 %v6111_v29  ;;  %1944 = vmatmul.mubr.f32.vlgmr.msra.gmra.mrb[2].mxu0 %v7575_v32  ;;  %v6117_v32 = vpack.c.bf16 %v205_v46, %v204_v42  ;;  %v181_v29 = vld [vmem:[%s11349_s1 + $0x458] sm:$0xff]  ;;  %v6131_v31 = vpack.c.bf16 %v229_v24, %v228_v23  ;;  %v182_v42 = vld [vmem:[%s11349_s1 + $0x460] sm:$0xff]  ;;  %v260_v62 = vld [vmem:[%s11349_s1 + $0x6d0] sm:$0xff] }
  0x45   :  { %6082 = vmatpush3.bf16.msra.mxu0 %v6081_v35  ;;  %2083 = vmatprep.mubr.f32.mxu0 %v1368_v51  ;;  %v199_v35 = vld [vmem:[%s11349_s1 + $0x4e8] sm:$0xff]  ;;  %v233_v51 = vld [vmem:[%s11349_s1 + $0x5f8] sm:$0xff]  ;;  %v254_v24 = vld [vmem:[%s11349_s1 + $0x6a0] sm:$0xff] }
  0x46   :  { %2014 = vmatmul.mubr.f32.vlgmr.msra.gmra.mrb[2].mxu1 %v7589_v41  ;;  %6084 = vmatprep.subr.bf16.mxu0 %v6083_v38  ;;  %v1369_v41 = vcombine.high %v7738_v52, %v7738_v52  ;;  %v6101_v38 = vpack.c.bf16 %v181_v29, %v180_v28  ;;  %v6103_v40 = vpack.c.bf16 %v199_v35, %v198_v34  ;;  %v269_v23 = vld [vmem:[%s11349_s1 + $0x718] sm:$0xff]  ;;  %v287_v28 = vld [vmem:[%s11349_s1 + $0x7a8] sm:$0xff]  ;;  %v270_v35 = vld [vmem:[%s11349_s1 + $0x720] sm:$0xff] }
  0x47   :  { %6114 = vmatpush3.bf16.msra.mxu1 %v6113_v36  ;;  %v230_v36 = vld [vmem:[%s11349_s1 + $0x5e0] sm:$0xff]  ;;  %v239_v34 = vld [vmem:[%s11349_s1 + $0x628] sm:$0xff]  ;;  %v261_v63 = vld [vmem:[%s11349_s1 + $0x6d8] sm:$0xff] }
  0x48   :  { %6116 = vmatprep.subr.bf16.mxu1 %v6115_v45  ;;  %2153 = vmatprep.mubr.f32.mxu1 %v1369_v41  ;;  %v214_v45 = vld [vmem:[%s11349_s1 + $0x560] sm:$0xff]  ;;  %v6135_v46 = vpack.c.bf16 %v231_v37, %v230_v36  ;;  %v216_v41 = vld [vmem:[%s11349_s1 + $0x570] sm:$0xff]  ;;  %v6163_v4 = vpack.c.bf16 %v261_v63, %v260_v62  ;;  %v277_v9 = vld [vmem:[%s11349_s1 + $0x758] sm:$0xff] }
  0x49   :  { %6086 = vmatpush3.bf16.msra.mxu0 %v6085_v53  ;;  %v6105_v53 = vpack.c.bf16 %v183_v44, %v182_v42  ;;  %v256_v37 = vld [vmem:[%s11349_s1 + $0x6b0] sm:$0xff]  ;;  %v262_v11 = vld [vmem:[%s11349_s1 + $0x6e0] sm:$0xff] }
  0x4a   :  { %6088 = vmatprep.subr.bf16.mxu0 %v6087_v54  ;;  %v6137_v54 = vpack.c.bf16 %v215_v47, %v214_v45  ;;  %v241_v47 = vld [vmem:[%s11349_s1 + $0x638] sm:$0xff]  ;;  %v244_v5 = vld [vmem:[%s11349_s1 + $0x650] sm:$0xff] }
  0x4b   :  { %6118 = vmatpush3.bf16.msra.mxu1 %v6117_v32  ;;  %v25_v32 = vld [vmem:[%s11350_s0 + $0x18] sm:$0xff]  ;;  %v332_v62 = vld [vmem:[%s11349_s1 + $0x910] sm:$0xff] }
  0x4c   :  { %6120 = vmatprep.subr.bf16.mxu1 %v6119_v58  ;;  %v6139_v58 = vpack.c.bf16 %v233_v51, %v232_v50  ;;  %v7909_v12 = vrot.slane %v25_v32, %v7408_v10  ;;  %v273_v50 = vld [vmem:[%s11349_s1 + $0x738] sm:$0xff]  ;;  %v258_v51 = vld [vmem:[%s11349_s1 + $0x6c0] sm:$0xff] }
  0x4d   :  { %6090 = vmatpush3.bf16.msra.mxu0 %v6089_v0  ;;  %v1370_v0 = vcombine.high %v25_v32, %v25_v32  ;;  %v290_v32 = vld [vmem:[%s11349_s1 + $0x7c0] sm:$0xff] }
  0x4e   :  { %6092 = vmatprep.subr.bf16.mxu0 %v6091_v2  ;;  %v6141_v2 = vpack.c.bf16 %v217_v59, %v216_v41  ;;  %v242_v41 = vld [vmem:[%s11349_s1 + $0x640] sm:$0xff] }
  0x4f   :  { %6122 = vmatpush3.bf16.msra.mxu1 %v6121_v1  ;;  %v6109_v1 = vpack.c.bf16 %v185_v57, %v184_v56  ;;  %v6189_v56 = vpack.c.bf16 %v273_v50, %v272_v48  ;;  %v274_v59 = vld [vmem:[%s11349_s1 + $0x740] sm:$0xff]  ;;  %v299_v48 = vld [vmem:[%s11349_s1 + $0x808] sm:$0xff] }
  0x50   :  { %6124 = vmatprep.subr.bf16.mxu1 %v6123_v6  ;;  %v266_v6 = vld [vmem:[%s11349_s1 + $0x700] sm:$0xff] }
  0x51   :  { %6094 = vmatpush3.bf16.msra.mxu0 %v6093_v13  ;;  %v284_v13 = vld [vmem:[%s11349_s1 + $0x790] sm:$0xff]  ;;  %v6177_v17 = vpack.c.bf16 %v267_v8, %v266_v6  ;;  %v245_v6 = vld [vmem:[%s11349_s1 + $0x658] sm:$0xff] }
  0x52   :  { %6096 = vmatprep.subr.bf16.mxu0 %v6095_v15  ;;  %v7918_v15 = vrot.slane %v1370_v0, %v7408_v10  ;;  %v292_v0 = vld [vmem:[%s11349_s1 + $0x7d0] sm:$0xff] }
  0x53   :  { %6126 = vmatpush3.bf16.msra.mxu1 %v6125_v14  ;;  %v285_v14 = vld [vmem:[%s11349_s1 + $0x798] sm:$0xff] }
  0x54   :  { %6128 = vmatprep.subr.bf16.mxu1 %v6127_v19  ;;  %v236_v19 = vld [vmem:[%s11349_s1 + $0x610] sm:$0xff]  ;;  %v6179_v22 = vpack.c.bf16 %v285_v14, %v284_v13  ;;  %v1386_v29 = vcombine.high %v7918_v15, %v7918_v15  ;;  %v263_v13 = vld [vmem:[%s11349_s1 + $0x6e8] sm:$0xff]  ;;  %v294_v14 = vld [vmem:[%s11349_s1 + $0x7e0] sm:$0xff] }
  0x55   :  { %6098 = vmatpush3.bf16.msra.mxu0 %v6097_v25  ;;  %v255_v25 = vld [vmem:[%s11349_s1 + $0x6a8] sm:$0xff]  ;;  %v6149_v30 = vpack.c.bf16 %v237_v20, %v236_v19  ;;  %v6167_v19 = vpack.c.bf16 %v263_v13, %v262_v11  ;;  %v246_v20 = vld [vmem:[%s11349_s1 + $0x660] sm:$0xff] }
  0x56   :  { %6100 = vmatprep.subr.bf16.mxu0 %v6099_v27  ;;  %v286_v27 = vld [vmem:[%s11349_s1 + $0x7a0] sm:$0xff]  ;;  %v6151_v33 = vpack.c.bf16 %v255_v25, %v254_v24  ;;  %v279_v24 = vld [vmem:[%s11349_s1 + $0x768] sm:$0xff]  ;;  %v264_v25 = vld [vmem:[%s11349_s1 + $0x6f0] sm:$0xff] }
  0x57   :  { %6130 = vmatpush3.bf16.msra.mxu1 %v6129_v26  ;;  %v1385_v26 = vcombine.high %v7909_v12, %v7909_v12  ;;  %v6183_v36 = vpack.c.bf16 %v287_v28, %v286_v27  ;;  %v296_v27 = vld [vmem:[%s11349_s1 + $0x7f0] sm:$0xff]  ;;  %v297_v28 = vld [vmem:[%s11349_s1 + $0x7f8] sm:$0xff]  ;;  %v303_v11 = vld [vmem:[%s11349_s1 + $0x828] sm:$0xff] }
  0x58   :  { %6132 = vmatprep.subr.bf16.mxu1 %v6131_v31  ;;  %v6181_v31 = vpack.c.bf16 %v269_v23, %v268_v21  ;;  %v247_v21 = vld [vmem:[%s11349_s1 + $0x668] sm:$0xff]  ;;  %v334_v13 = vld [vmem:[%s11349_s1 + $0x920] sm:$0xff] }
  0x59   :  { %6102 = vmatpush3.bf16.msra.mxu0 %v6101_v38  ;;  %v257_v38 = vld [vmem:[%s11349_s1 + $0x6b8] sm:$0xff] }
  0x5a   :  { %6104 = vmatprep.subr.bf16.mxu0 %v6103_v40  ;;  %v289_v40 = vld [vmem:[%s11349_s1 + $0x7b8] sm:$0xff]  ;;  %v6155_v45 = vpack.c.bf16 %v257_v38, %v256_v37  ;;  %v314_v37 = vld [vmem:[%s11349_s1 + $0x880] sm:$0xff]  ;;  %v315_v38 = vld [vmem:[%s11349_s1 + $0x888] sm:$0xff] }
  0x5b   :  { %6134 = vmatpush3.bf16.msra.mxu1 %v6133_v39  ;;  %v288_v39 = vld [vmem:[%s11349_s1 + $0x7b0] sm:$0xff] }
  0x5c   :  { %6136 = vmatprep.subr.bf16.mxu1 %v6135_v46  ;;  %v240_v46 = vld [vmem:[%s11349_s1 + $0x630] sm:$0xff]  ;;  %v6187_v49 = vpack.c.bf16 %v289_v40, %v288_v39  ;;  %v346_v39 = vld [vmem:[%s11349_s1 + $0x980] sm:$0xff]  ;;  %v347_v40 = vld [vmem:[%s11349_s1 + $0x988] sm:$0xff] }
  0x5d   :  { %6106 = vmatpush3.bf16.msra.mxu0 %v6105_v53  ;;  %v259_v53 = vld [vmem:[%s11349_s1 + $0x6c8] sm:$0xff]  ;;  %v6239_v50 = vpack.c.bf16 %v347_v40, %v346_v39  ;;  %v324_v39 = vld [vmem:[%s11349_s1 + $0x8d0] sm:$0xff]  ;;  %v325_v40 = vld [vmem:[%s11349_s1 + $0x8d8] sm:$0xff] }
  0x5e   :  { %6108 = vmatprep.subr.bf16.mxu0 %v6107_v55  ;;  %v6157_v55 = vpack.c.bf16 %v241_v47, %v240_v46  ;;  %v6159_v57 = vpack.c.bf16 %v259_v53, %v258_v51  ;;  %v6207_v46 = vpack.c.bf16 %v315_v38, %v314_v37  ;;  %v298_v47 = vld [vmem:[%s11349_s1 + $0x800] sm:$0xff]  ;;  %v331_v51 = vld [vmem:[%s11349_s1 + $0x908] sm:$0xff]  ;;  %v316_v53 = vld [vmem:[%s11349_s1 + $0x890] sm:$0xff] }
  0x5f   :  { %6138 = vmatpush3.bf16.msra.mxu1 %v6137_v54  ;;  %v291_v54 = vld [vmem:[%s11349_s1 + $0x7c8] sm:$0xff] }
  0x60   :  { %6140 = vmatprep.subr.bf16.mxu1 %v6139_v58  ;;  %v243_v58 = vld [vmem:[%s11349_s1 + $0x648] sm:$0xff]  ;;  %v6191_v60 = vpack.c.bf16 %v291_v54, %v290_v32  ;;  %v317_v32 = vld [vmem:[%s11349_s1 + $0x898] sm:$0xff] }
  0x61   :  { %6110 = vmatpush3.bf16.msra.mxu0 %v6109_v1  ;;  %v293_v1 = vld [vmem:[%s11349_s1 + $0x7d8] sm:$0xff]  ;;  %v339_v38 = vld [vmem:[%s11349_s1 + $0x948] sm:$0xff] }
  0x62   :  { %6144 = vmatprep.subr.bf16.mxu0 %v6143_v3  ;;  %v6193_v3 = vpack.c.bf16 %v275_v61, %v274_v59  ;;  %v6195_v8 = vpack.c.bf16 %v293_v1, %v292_v0  ;;  %v6211_v59 = vpack.c.bf16 %v317_v32, %v316_v53  ;;  %v301_v61 = vld [vmem:[%s11349_s1 + $0x818] sm:$0xff]  ;;  %v318_v1 = vld [vmem:[%s11349_s1 + $0x8a0] sm:$0xff] }
  0x63   :  { %6142 = vmatpush3.bf16.msra.mxu1 %v6141_v2  ;;  %v6161_v2 = vpack.c.bf16 %v243_v58, %v242_v41  ;;  %v6209_v41 = vpack.c.bf16 %v299_v48, %v298_v47  ;;  %v333_v0 = vld [vmem:[%s11349_s1 + $0x918] sm:$0xff]  ;;  %v6227_v47 = vpack.c.bf16 %v325_v40, %v324_v39  ;;  %v308_v48 = vld [vmem:[%s11349_s1 + $0x850] sm:$0xff]  ;;  %v326_v32 = vld [vmem:[%s11349_s1 + $0x8e0] sm:$0xff] }
  0x64   :  { %6176 = vmatprep.subr.bf16.mxu1 %v6175_v7  ;;  %2084 = vmatmul.mubr.f32.vlgmr.msra.gmra.mrb[4].mxu0 %v7717_v43  ;;  %v238_v43 = vld [vmem:[%s11349_s1 + $0x620] sm:$0xff]  ;;  %v276_v7 = vld [vmem:[%s11349_s1 + $0x750] sm:$0xff]  ;;  %v341_v53 = vld [vmem:[%s11349_s1 + $0x958] sm:$0xff] }
  0x65   :  { %6146 = vmatpush3.bf16.msra.mxu0 %v6145_v16  ;;  %2223 = vmatprep.mubr.f32.mxu0 %v1385_v26  ;;  %v6153_v42 = vpack.c.bf16 %v239_v34, %v238_v43  ;;  %v295_v16 = vld [vmem:[%s11349_s1 + $0x7e8] sm:$0xff]  ;;  %v265_v26 = vld [vmem:[%s11349_s1 + $0x6f8] sm:$0xff]  ;;  %v248_v43 = vld [vmem:[%s11349_s1 + $0x670] sm:$0xff] }
  0x66   :  { %2154 = vmatmul.mubr.f32.vlgmr.msra.gmra.mrb[4].mxu1 %v7738_v52  ;;  %6148 = vmatprep.subr.bf16.mxu0 %v6147_v18  ;;  %v271_v52 = vld [vmem:[%s11349_s1 + $0x728] sm:$0xff]  ;;  %v6197_v18 = vpack.c.bf16 %v277_v9, %v276_v7  ;;  %v6199_v23 = vpack.c.bf16 %v295_v16, %v294_v14  ;;  %v249_v34 = vld [vmem:[%s11349_s1 + $0x678] sm:$0xff]  ;;  %v320_v16 = vld [vmem:[%s11349_s1 + $0x8b0] sm:$0xff] }
  0x67   :  { %6178 = vmatpush3.bf16.msra.mxu1 %v6177_v17  ;;  %2293 = vmatprep.mubr.f32.mxu1 %v1386_v29  ;;  %v6185_v44 = vpack.c.bf16 %v271_v52, %v270_v35  ;;  %v6165_v17 = vpack.c.bf16 %v245_v6, %v244_v5  ;;  %v6169_v29 = vpack.c.bf16 %v247_v21, %v246_v20  ;;  %v280_v35 = vld [vmem:[%s11349_s1 + $0x770] sm:$0xff]  ;;  %v281_v52 = vld [vmem:[%s11349_s1 + $0x778] sm:$0xff]  ;;  %v351_v5 = vld [vmem:[%s11349_s1 + $0x9a8] sm:$0xff] }
  0x68   :  { %6180 = vmatprep.subr.bf16.mxu1 %v6179_v22  ;;  %v278_v22 = vld [vmem:[%s11349_s1 + $0x760] sm:$0xff]  ;;  %v396_v39 = vld [vmem:[%s11349_s1 + $0xb10] sm:$0xff] }
  0x69   :  { %6150 = vmatpush3.bf16.msra.mxu0 %v6149_v30  ;;  %v26_v30 = vld [vmem:[%s11350_s0 + $0x20] sm:$0xff] }
  0x6a   :  { %6152 = vmatprep.subr.bf16.mxu0 %v6151_v33  ;;  %v6171_v33 = vpack.c.bf16 %v265_v26, %v264_v25  ;;  %v8116_v54 = vrot.slane %v26_v30, %v7408_v10  ;;  %v336_v25 = vld [vmem:[%s11349_s1 + $0x930] sm:$0xff] }
  0x6b   :  { %6182 = vmatpush3.bf16.msra.mxu1 %v6181_v31  ;;  %v6201_v31 = vpack.c.bf16 %v279_v24, %v278_v22  ;;  %v305_v24 = vld [vmem:[%s11349_s1 + $0x838] sm:$0xff] }
  0x6c   :  { %6184 = vmatprep.subr.bf16.mxu1 %v6183_v36  ;;  %v6203_v36 = vpack.c.bf16 %v297_v28, %v296_v27  ;;  %v337_v27 = vld [vmem:[%s11349_s1 + $0x938] sm:$0xff]  ;;  %v322_v28 = vld [vmem:[%s11349_s1 + $0x8c0] sm:$0xff] }
  0x6d   :  { %6154 = vmatpush3.bf16.msra.mxu0 %v6153_v42  ;;  %v1387_v42 = vcombine.high %v26_v30, %v26_v30  ;;  %v354_v30 = vld [vmem:[%s11349_s1 + $0x9c0] sm:$0xff] }
  0x6e   :  { %6156 = vmatprep.subr.bf16.mxu0 %v6155_v45  ;;  %v6205_v45 = vpack.c.bf16 %v281_v52, %v280_v35  ;;  %v306_v35 = vld [vmem:[%s11349_s1 + $0x840] sm:$0xff] }
  0x6f   :  { %6186 = vmatpush3.bf16.msra.mxu1 %v6185_v44  ;;  %v6173_v44 = vpack.c.bf16 %v249_v34, %v248_v43  ;;  %v6253_v43 = vpack.c.bf16 %v337_v27, %v336_v25  ;;  %v338_v52 = vld [vmem:[%s11349_s1 + $0x940] sm:$0xff]  ;;  %v363_v25 = vld [vmem:[%s11349_s1 + $0xa08] sm:$0xff] }
  0x70   :  { %6188 = vmatprep.subr.bf16.mxu1 %v6187_v49  ;;  %v330_v49 = vld [vmem:[%s11349_s1 + $0x900] sm:$0xff] }
  0x71   :  { %6158 = vmatpush3.bf16.msra.mxu0 %v6157_v55  ;;  %v348_v55 = vld [vmem:[%s11349_s1 + $0x990] sm:$0xff]  ;;  %v6241_v58 = vpack.c.bf16 %v331_v51, %v330_v49  ;;  %v309_v49 = vld [vmem:[%s11349_s1 + $0x858] sm:$0xff] }
  0x72   :  { %6160 = vmatprep.subr.bf16.mxu0 %v6159_v57  ;;  %v8125_v57 = vrot.slane %v1387_v42, %v7408_v10  ;;  %v356_v42 = vld [vmem:[%s11349_s1 + $0x9d0] sm:$0xff] }
  0x73   :  { %6190 = vmatpush3.bf16.msra.mxu1 %v6189_v56  ;;  %v349_v56 = vld [vmem:[%s11349_s1 + $0x998] sm:$0xff] }
  0x74   :  { %6192 = vmatprep.subr.bf16.mxu1 %v6191_v60  ;;  %v300_v60 = vld [vmem:[%s11349_s1 + $0x810] sm:$0xff]  ;;  %v6243_v63 = vpack.c.bf16 %v349_v56, %v348_v55  ;;  %v1403_v6 = vcombine.high %v8125_v57, %v8125_v57  ;;  %v327_v55 = vld [vmem:[%s11349_s1 + $0x8e8] sm:$0xff]  ;;  %v358_v56 = vld [vmem:[%s11349_s1 + $0x9e0] sm:$0xff] }
  0x75   :  { %6162 = vmatpush3.bf16.msra.mxu0 %v6161_v2  ;;  %v319_v2 = vld [vmem:[%s11349_s1 + $0x8a8] sm:$0xff]  ;;  %v6213_v7 = vpack.c.bf16 %v301_v61, %v300_v60  ;;  %v6231_v60 = vpack.c.bf16 %v327_v55, %v326_v32  ;;  %v310_v61 = vld [vmem:[%s11349_s1 + $0x860] sm:$0xff] }
  0x76   :  { %6164 = vmatprep.subr.bf16.mxu0 %v6163_v4  ;;  %v350_v4 = vld [vmem:[%s11349_s1 + $0x9a0] sm:$0xff]  ;;  %v6215_v9 = vpack.c.bf16 %v319_v2, %v318_v1  ;;  %v343_v1 = vld [vmem:[%s11349_s1 + $0x968] sm:$0xff]  ;;  %v328_v2 = vld [vmem:[%s11349_s1 + $0x8f0] sm:$0xff] }
  0x77   :  { %6194 = vmatpush3.bf16.msra.mxu1 %v6193_v3  ;;  %v1402_v3 = vcombine.high %v8116_v54, %v8116_v54  ;;  %v6247_v14 = vpack.c.bf16 %v351_v5, %v350_v4  ;;  %v360_v4 = vld [vmem:[%s11349_s1 + $0x9f0] sm:$0xff]  ;;  %v361_v5 = vld [vmem:[%s11349_s1 + $0x9f8] sm:$0xff]  ;;  %v367_v32 = vld [vmem:[%s11349_s1 + $0xa28] sm:$0xff] }
  0x78   :  { %6196 = vmatprep.subr.bf16.mxu1 %v6195_v8  ;;  %v6245_v8 = vpack.c.bf16 %v333_v0, %v332_v62  ;;  %v311_v62 = vld [vmem:[%s11349_s1 + $0x868] sm:$0xff]  ;;  %v398_v55 = vld [vmem:[%s11349_s1 + $0xb20] sm:$0xff] }
  0x79   :  { %6166 = vmatpush3.bf16.msra.mxu0 %v6165_v17  ;;  %v321_v17 = vld [vmem:[%s11349_s1 + $0x8b8] sm:$0xff] }
  0x7a   :  { %6168 = vmatprep.subr.bf16.mxu0 %v6167_v19  ;;  %v353_v19 = vld [vmem:[%s11349_s1 + $0x9b8] sm:$0xff]  ;;  %v6219_v22 = vpack.c.bf16 %v321_v17, %v320_v16  ;;  %v378_v16 = vld [vmem:[%s11349_s1 + $0xa80] sm:$0xff]  ;;  %v379_v17 = vld [vmem:[%s11349_s1 + $0xa88] sm:$0xff] }
  0x7b   :  { %6198 = vmatpush3.bf16.msra.mxu1 %v6197_v18  ;;  %v352_v18 = vld [vmem:[%s11349_s1 + $0x9b0] sm:$0xff] }
  0x7c   :  { %6200 = vmatprep.subr.bf16.mxu1 %v6199_v23  ;;  %v304_v23 = vld [vmem:[%s11349_s1 + $0x830] sm:$0xff]  ;;  %v6251_v26 = vpack.c.bf16 %v353_v19, %v352_v18  ;;  %v410_v18 = vld [vmem:[%s11349_s1 + $0xb80] sm:$0xff]  ;;  %v411_v19 = vld [vmem:[%s11349_s1 + $0xb88] sm:$0xff] }
  0x7d   :  { %6170 = vmatpush3.bf16.msra.mxu0 %v6169_v29  ;;  %v323_v29 = vld [vmem:[%s11349_s1 + $0x8c8] sm:$0xff]  ;;  %v6303_v27 = vpack.c.bf16 %v411_v19, %v410_v18  ;;  %v388_v18 = vld [vmem:[%s11349_s1 + $0xad0] sm:$0xff]  ;;  %v389_v19 = vld [vmem:[%s11349_s1 + $0xad8] sm:$0xff] }
  0x7e   :  { %6172 = vmatprep.subr.bf16.mxu0 %v6171_v33  ;;  %v6221_v33 = vpack.c.bf16 %v305_v24, %v304_v23  ;;  %v6223_v34 = vpack.c.bf16 %v323_v29, %v322_v28  ;;  %v6271_v23 = vpack.c.bf16 %v379_v17, %v378_v16  ;;  %v362_v24 = vld [vmem:[%s11349_s1 + $0xa00] sm:$0xff]  ;;  %v395_v28 = vld [vmem:[%s11349_s1 + $0xb08] sm:$0xff]  ;;  %v380_v29 = vld [vmem:[%s11349_s1 + $0xa90] sm:$0xff] }
  0x7f   :  { %6202 = vmatpush3.bf16.msra.mxu1 %v6201_v31  ;;  %v355_v31 = vld [vmem:[%s11349_s1 + $0x9c8] sm:$0xff] }
  0x80   :  { %6204 = vmatprep.subr.bf16.mxu1 %v6203_v36  ;;  %v307_v36 = vld [vmem:[%s11349_s1 + $0x848] sm:$0xff]  ;;  %v6255_v37 = vpack.c.bf16 %v355_v31, %v354_v30  ;;  %v381_v30 = vld [vmem:[%s11349_s1 + $0xa98] sm:$0xff] }
  0x81   :  { %6174 = vmatpush3.bf16.msra.mxu0 %v6173_v44  ;;  %v357_v44 = vld [vmem:[%s11349_s1 + $0x9d8] sm:$0xff]  ;;  %v403_v17 = vld [vmem:[%s11349_s1 + $0xb48] sm:$0xff] }
  0x82   :  { %6208 = vmatprep.subr.bf16.mxu0 %v6207_v46  ;;  %v6257_v46 = vpack.c.bf16 %v339_v38, %v338_v52  ;;  %v6259_v51 = vpack.c.bf16 %v357_v44, %v356_v42  ;;  %v6275_v52 = vpack.c.bf16 %v381_v30, %v380_v29  ;;  %v365_v38 = vld [vmem:[%s11349_s1 + $0xa18] sm:$0xff]  ;;  %v382_v44 = vld [vmem:[%s11349_s1 + $0xaa0] sm:$0xff] }
  0x83   :  { %6206 = vmatpush3.bf16.msra.mxu1 %v6205_v45  ;;  %v6225_v45 = vpack.c.bf16 %v307_v36, %v306_v35  ;;  %v6273_v35 = vpack.c.bf16 %v363_v25, %v362_v24  ;;  %v397_v42 = vld [vmem:[%s11349_s1 + $0xb18] sm:$0xff]  ;;  %v6291_v24 = vpack.c.bf16 %v389_v19, %v388_v18  ;;  %v372_v25 = vld [vmem:[%s11349_s1 + $0xa50] sm:$0xff]  ;;  %v390_v30 = vld [vmem:[%s11349_s1 + $0xae0] sm:$0xff] }
  0x84   :  { %6240 = vmatprep.subr.bf16.mxu1 %v6239_v50  ;;  %2224 = vmatmul.mubr.f32.vlgmr.msra.gmra.mrb[6].mxu0 %v7909_v12  ;;  %v302_v12 = vld [vmem:[%s11349_s1 + $0x820] sm:$0xff]  ;;  %v340_v50 = vld [vmem:[%s11349_s1 + $0x950] sm:$0xff]  ;;  %v405_v29 = vld [vmem:[%s11349_s1 + $0xb58] sm:$0xff] }
  0x85   :  { %6210 = vmatpush3.bf16.msra.mxu0 %v6209_v41  ;;  %2363 = vmatprep.mubr.f32.mxu0 %v1402_v3  ;;  %v6217_v20 = vpack.c.bf16 %v303_v11, %v302_v12  ;;  %v359_v41 = vld [vmem:[%s11349_s1 + $0x9e8] sm:$0xff]  ;;  %v329_v3 = vld [vmem:[%s11349_s1 + $0x8f8] sm:$0xff]  ;;  %v312_v12 = vld [vmem:[%s11349_s1 + $0x870] sm:$0xff] }
  0x86   :  { %2294 = vmatmul.mubr.f32.vlgmr.msra.gmra.mrb[6].mxu1 %v7918_v15  ;;  %6212 = vmatprep.subr.bf16.mxu0 %v6211_v59  ;;  %v335_v15 = vld [vmem:[%s11349_s1 + $0x928] sm:$0xff]  ;;  %v6261_v59 = vpack.c.bf16 %v341_v53, %v340_v50  ;;  %v6263_v0 = vpack.c.bf16 %v359_v41, %v358_v56  ;;  %v313_v11 = vld [vmem:[%s11349_s1 + $0x878] sm:$0xff]  ;;  %v384_v41 = vld [vmem:[%s11349_s1 + $0xab0] sm:$0xff] }
  0x87   :  { %6242 = vmatpush3.bf16.msra.mxu1 %v6241_v58  ;;  %2433 = vmatprep.mubr.f32.mxu1 %v1403_v6  ;;  %v6249_v21 = vpack.c.bf16 %v335_v15, %v334_v13  ;;  %v6229_v58 = vpack.c.bf16 %v309_v49, %v308_v48  ;;  %v6233_v6 = vpack.c.bf16 %v311_v62, %v310_v61  ;;  %v344_v13 = vld [vmem:[%s11349_s1 + $0x970] sm:$0xff]  ;;  %v345_v15 = vld [vmem:[%s11349_s1 + $0x978] sm:$0xff]  ;;  %v415_v48 = vld [vmem:[%s11349_s1 + $0xba8] sm:$0xff] }
  0x88   :  { %6244 = vmatprep.subr.bf16.mxu1 %v6243_v63  ;;  %v342_v63 = vld [vmem:[%s11349_s1 + $0x960] sm:$0xff]  ;;  %v460_v18 = vld [vmem:[%s11349_s1 + $0xd10] sm:$0xff] }
  0x89   :  { %6214 = vmatpush3.bf16.msra.mxu0 %v6213_v7  ;;  %v27_v7 = vld [vmem:[%s11350_s0 + $0x28] sm:$0xff] }
  0x8a   :  { %6216 = vmatprep.subr.bf16.mxu0 %v6215_v9  ;;  %v6235_v9 = vpack.c.bf16 %v329_v3, %v328_v2  ;;  %v8323_v31 = vrot.slane %v27_v7, %v7408_v10  ;;  %v400_v2 = vld [vmem:[%s11349_s1 + $0xb30] sm:$0xff] }
  0x8b   :  { %6246 = vmatpush3.bf16.msra.mxu1 %v6245_v8  ;;  %v6265_v8 = vpack.c.bf16 %v343_v1, %v342_v63  ;;  %v369_v1 = vld [vmem:[%s11349_s1 + $0xa38] sm:$0xff] }
  0x8c   :  { %6248 = vmatprep.subr.bf16.mxu1 %v6247_v14  ;;  %v6267_v14 = vpack.c.bf16 %v361_v5, %v360_v4  ;;  %v401_v4 = vld [vmem:[%s11349_s1 + $0xb38] sm:$0xff]  ;;  %v386_v5 = vld [vmem:[%s11349_s1 + $0xac0] sm:$0xff] }
  0x8d   :  { %6218 = vmatpush3.bf16.msra.mxu0 %v6217_v20  ;;  %v1404_v20 = vcombine.high %v27_v7, %v27_v7  ;;  %v418_v7 = vld [vmem:[%s11349_s1 + $0xbc0] sm:$0xff] }
  0x8e   :  { %6220 = vmatprep.subr.bf16.mxu0 %v6219_v22  ;;  %v6269_v22 = vpack.c.bf16 %v345_v15, %v344_v13  ;;  %v370_v13 = vld [vmem:[%s11349_s1 + $0xa40] sm:$0xff] }
  0x8f   :  { %6250 = vmatpush3.bf16.msra.mxu1 %v6249_v21  ;;  %v6237_v21 = vpack.c.bf16 %v313_v11, %v312_v12  ;;  %v6317_v12 = vpack.c.bf16 %v401_v4, %v400_v2  ;;  %v402_v15 = vld [vmem:[%s11349_s1 + $0xb40] sm:$0xff]  ;;  %v427_v2 = vld [vmem:[%s11349_s1 + $0xc08] sm:$0xff] }
  0x90   :  { %6252 = vmatprep.subr.bf16.mxu1 %v6251_v26  ;;  %v394_v26 = vld [vmem:[%s11349_s1 + $0xb00] sm:$0xff] }
  0x91   :  { %6222 = vmatpush3.bf16.msra.mxu0 %v6221_v33  ;;  %v412_v33 = vld [vmem:[%s11349_s1 + $0xb90] sm:$0xff]  ;;  %v6305_v36 = vpack.c.bf16 %v395_v28, %v394_v26  ;;  %v373_v26 = vld [vmem:[%s11349_s1 + $0xa58] sm:$0xff] }
  0x92   :  { %6224 = vmatprep.subr.bf16.mxu0 %v6223_v34  ;;  %v8332_v34 = vrot.slane %v1404_v20, %v7408_v10  ;;  %v420_v20 = vld [vmem:[%s11349_s1 + $0xbd0] sm:$0xff] }
  0x93   :  { %6254 = vmatpush3.bf16.msra.mxu1 %v6253_v43  ;;  %v413_v43 = vld [vmem:[%s11349_s1 + $0xb98] sm:$0xff] }
  0x94   :  { %6256 = vmatprep.subr.bf16.mxu1 %v6255_v37  ;;  %v364_v37 = vld [vmem:[%s11349_s1 + $0xa10] sm:$0xff]  ;;  %v6307_v40 = vpack.c.bf16 %v413_v43, %v412_v33  ;;  %v1420_v49 = vcombine.high %v8332_v34, %v8332_v34  ;;  %v391_v33 = vld [vmem:[%s11349_s1 + $0xae8] sm:$0xff]  ;;  %v422_v43 = vld [vmem:[%s11349_s1 + $0xbe0] sm:$0xff] }
  0x95   :  { %6226 = vmatpush3.bf16.msra.mxu0 %v6225_v45  ;;  %v383_v45 = vld [vmem:[%s11349_s1 + $0xaa8] sm:$0xff]  ;;  %v6277_v50 = vpack.c.bf16 %v365_v38, %v364_v37  ;;  %v6295_v37 = vpack.c.bf16 %v391_v33, %v390_v30  ;;  %v374_v38 = vld [vmem:[%s11349_s1 + $0xa60] sm:$0xff] }
  0x96   :  { %6228 = vmatprep.subr.bf16.mxu0 %v6227_v47  ;;  %v414_v47 = vld [vmem:[%s11349_s1 + $0xba0] sm:$0xff]  ;;  %v6279_v53 = vpack.c.bf16 %v383_v45, %v382_v44  ;;  %v407_v44 = vld [vmem:[%s11349_s1 + $0xb68] sm:$0xff]  ;;  %v392_v45 = vld [vmem:[%s11349_s1 + $0xaf0] sm:$0xff] }
  0x97   :  { %6258 = vmatpush3.bf16.msra.mxu1 %v6257_v46  ;;  %v1419_v46 = vcombine.high %v8323_v31, %v8323_v31  ;;  %v6311_v56 = vpack.c.bf16 %v415_v48, %v414_v47  ;;  %v424_v47 = vld [vmem:[%s11349_s1 + $0xbf0] sm:$0xff]  ;;  %v425_v48 = vld [vmem:[%s11349_s1 + $0xbf8] sm:$0xff]  ;;  %v431_v30 = vld [vmem:[%s11349_s1 + $0xc28] sm:$0xff] }
  0x98   :  { %6260 = vmatprep.subr.bf16.mxu1 %v6259_v51  ;;  %v6309_v51 = vpack.c.bf16 %v397_v42, %v396_v39  ;;  %v375_v39 = vld [vmem:[%s11349_s1 + $0xa68] sm:$0xff]  ;;  %v462_v33 = vld [vmem:[%s11349_s1 + $0xd20] sm:$0xff] }
  0x99   :  { %6230 = vmatpush3.bf16.msra.mxu0 %v6229_v58  ;;  %v385_v58 = vld [vmem:[%s11349_s1 + $0xab8] sm:$0xff] }
  0x9a   :  { %6232 = vmatprep.subr.bf16.mxu0 %v6231_v60  ;;  %v417_v60 = vld [vmem:[%s11349_s1 + $0xbb8] sm:$0xff]  ;;  %v6283_v63 = vpack.c.bf16 %v385_v58, %v384_v41  ;;  %v442_v41 = vld [vmem:[%s11349_s1 + $0xc80] sm:$0xff]  ;;  %v443_v58 = vld [vmem:[%s11349_s1 + $0xc88] sm:$0xff] }
  0x9b   :  { %6262 = vmatpush3.bf16.msra.mxu1 %v6261_v59  ;;  %v416_v59 = vld [vmem:[%s11349_s1 + $0xbb0] sm:$0xff] }
  0x9c   :  { %6264 = vmatprep.subr.bf16.mxu1 %v6263_v0  ;;  %v368_v0 = vld [vmem:[%s11349_s1 + $0xa30] sm:$0xff]  ;;  %v6315_v3 = vpack.c.bf16 %v417_v60, %v416_v59  ;;  %v474_v59 = vld [vmem:[%s11349_s1 + $0xd80] sm:$0xff]  ;;  %v475_v60 = vld [vmem:[%s11349_s1 + $0xd88] sm:$0xff] }
  0x9d   :  { %6234 = vmatpush3.bf16.msra.mxu0 %v6233_v6  ;;  %v387_v6 = vld [vmem:[%s11349_s1 + $0xac8] sm:$0xff]  ;;  %v6367_v4 = vpack.c.bf16 %v475_v60, %v474_v59  ;;  %v452_v59 = vld [vmem:[%s11349_s1 + $0xcd0] sm:$0xff]  ;;  %v453_v60 = vld [vmem:[%s11349_s1 + $0xcd8] sm:$0xff] }
  0x9e   :  { %6236 = vmatprep.subr.bf16.mxu0 %v6235_v9  ;;  %v6285_v9 = vpack.c.bf16 %v369_v1, %v368_v0  ;;  %v6287_v11 = vpack.c.bf16 %v387_v6, %v386_v5  ;;  %v6335_v0 = vpack.c.bf16 %v443_v58, %v442_v41  ;;  %v426_v1 = vld [vmem:[%s11349_s1 + $0xc00] sm:$0xff]  ;;  %v459_v5 = vld [vmem:[%s11349_s1 + $0xd08] sm:$0xff]  ;;  %v444_v6 = vld [vmem:[%s11349_s1 + $0xc90] sm:$0xff] }
  0x9f   :  { %6266 = vmatpush3.bf16.msra.mxu1 %v6265_v8  ;;  %v419_v8 = vld [vmem:[%s11349_s1 + $0xbc8] sm:$0xff] }
  0xa0   :  { %6268 = vmatprep.subr.bf16.mxu1 %v6267_v14  ;;  %v371_v14 = vld [vmem:[%s11349_s1 + $0xa48] sm:$0xff]  ;;  %v6319_v16 = vpack.c.bf16 %v419_v8, %v418_v7  ;;  %v445_v7 = vld [vmem:[%s11349_s1 + $0xc98] sm:$0xff] }
  0xa1   :  { %6238 = vmatpush3.bf16.msra.mxu0 %v6237_v21  ;;  %v421_v21 = vld [vmem:[%s11349_s1 + $0xbd8] sm:$0xff]  ;;  %v467_v58 = vld [vmem:[%s11349_s1 + $0xd48] sm:$0xff] }
  0xa2   :  { %6272 = vmatprep.subr.bf16.mxu0 %v6271_v23  ;;  %v6321_v23 = vpack.c.bf16 %v403_v17, %v402_v15  ;;  %v6323_v28 = vpack.c.bf16 %v421_v21, %v420_v20  ;;  %v6339_v15 = vpack.c.bf16 %v445_v7, %v444_v6  ;;  %v429_v17 = vld [vmem:[%s11349_s1 + $0xc18] sm:$0xff]  ;;  %v446_v21 = vld [vmem:[%s11349_s1 + $0xca0] sm:$0xff] }
  0xa3   :  { %6270 = vmatpush3.bf16.msra.mxu1 %v6269_v22  ;;  %v6289_v22 = vpack.c.bf16 %v371_v14, %v370_v13  ;;  %v6337_v13 = vpack.c.bf16 %v427_v2, %v426_v1  ;;  %v461_v20 = vld [vmem:[%s11349_s1 + $0xd18] sm:$0xff]  ;;  %v6355_v1 = vpack.c.bf16 %v453_v60, %v452_v59  ;;  %v436_v2 = vld [vmem:[%s11349_s1 + $0xc50] sm:$0xff]  ;;  %v454_v7 = vld [vmem:[%s11349_s1 + $0xce0] sm:$0xff] }
  0xa4   :  { %6304 = vmatprep.subr.bf16.mxu1 %v6303_v27  ;;  %2364 = vmatmul.mubr.f32.vlgmr.msra.gmra.mrb[8].mxu0 %v8116_v54  ;;  %v366_v54 = vld [vmem:[%s11349_s1 + $0xa20] sm:$0xff]  ;;  %v404_v27 = vld [vmem:[%s11349_s1 + $0xb50] sm:$0xff]  ;;  %v469_v6 = vld [vmem:[%s11349_s1 + $0xd58] sm:$0xff] }
  0xa5   :  { %6274 = vmatpush3.bf16.msra.mxu0 %v6273_v35  ;;  %2503 = vmatprep.mubr.f32.mxu0 %v1419_v46  ;;  %v6281_v61 = vpack.c.bf16 %v367_v32, %v366_v54  ;;  %v423_v35 = vld [vmem:[%s11349_s1 + $0xbe8] sm:$0xff]  ;;  %v393_v46 = vld [vmem:[%s11349_s1 + $0xaf8] sm:$0xff]  ;;  %v376_v54 = vld [vmem:[%s11349_s1 + $0xa70] sm:$0xff] }
  0xa6   :  { %2434 = vmatmul.mubr.f32.vlgmr.msra.gmra.mrb[8].mxu1 %v8125_v57  ;;  %6276 = vmatprep.subr.bf16.mxu0 %v6275_v52  ;;  %v399_v57 = vld [vmem:[%s11349_s1 + $0xb28] sm:$0xff]  ;;  %v6325_v52 = vpack.c.bf16 %v405_v29, %v404_v27  ;;  %v6327_v42 = vpack.c.bf16 %v423_v35, %v422_v43  ;;  %v377_v32 = vld [vmem:[%s11349_s1 + $0xa78] sm:$0xff]  ;;  %v448_v35 = vld [vmem:[%s11349_s1 + $0xcb0] sm:$0xff] }
  0xa7   :  { %6306 = vmatpush3.bf16.msra.mxu1 %v6305_v36  ;;  %2573 = vmatprep.mubr.f32.mxu1 %v1420_v49  ;;  %v6313_v62 = vpack.c.bf16 %v399_v57, %v398_v55  ;;  %v6293_v36 = vpack.c.bf16 %v373_v26, %v372_v25  ;;  %v6297_v49 = vpack.c.bf16 %v375_v39, %v374_v38  ;;  %v408_v55 = vld [vmem:[%s11349_s1 + $0xb70] sm:$0xff]  ;;  %v409_v57 = vld [vmem:[%s11349_s1 + $0xb78] sm:$0xff]  ;;  %v479_v25 = vld [vmem:[%s11349_s1 + $0xda8] sm:$0xff] }
  0xa8   :  { %6308 = vmatprep.subr.bf16.mxu1 %v6307_v40  ;;  %v406_v40 = vld [vmem:[%s11349_s1 + $0xb60] sm:$0xff]  ;;  %v524_v59 = vld [vmem:[%s11349_s1 + $0xf10] sm:$0xff] }
  0xa9   :  { %6278 = vmatpush3.bf16.msra.mxu0 %v6277_v50  ;;  %v28_v50 = vld [vmem:[%s11350_s0 + $0x30] sm:$0xff] }
  0xaa   :  { %6280 = vmatprep.subr.bf16.mxu0 %v6279_v53  ;;  %v6299_v53 = vpack.c.bf16 %v393_v46, %v392_v45  ;;  %v8530_v8 = vrot.slane %v28_v50, %v7408_v10  ;;  %v464_v45 = vld [vmem:[%s11349_s1 + $0xd30] sm:$0xff] }
  0xab   :  { %6310 = vmatpush3.bf16.msra.mxu1 %v6309_v51  ;;  %v6329_v51 = vpack.c.bf16 %v407_v44, %v406_v40  ;;  %v433_v44 = vld [vmem:[%s11349_s1 + $0xc38] sm:$0xff] }
  0xac   :  { %6312 = vmatprep.subr.bf16.mxu1 %v6311_v56  ;;  %v6331_v56 = vpack.c.bf16 %v425_v48, %v424_v47  ;;  %v465_v47 = vld [vmem:[%s11349_s1 + $0xd38] sm:$0xff]  ;;  %v450_v48 = vld [vmem:[%s11349_s1 + $0xcc0] sm:$0xff] }
  0xad   :  { %6282 = vmatpush3.bf16.msra.mxu0 %v6281_v61  ;;  %v1421_v61 = vcombine.high %v28_v50, %v28_v50  ;;  %v482_v50 = vld [vmem:[%s11349_s1 + $0xdc0] sm:$0xff] }
  0xae   :  { %6284 = vmatprep.subr.bf16.mxu0 %v6283_v63  ;;  %v6333_v63 = vpack.c.bf16 %v409_v57, %v408_v55  ;;  %v434_v55 = vld [vmem:[%s11349_s1 + $0xc40] sm:$0xff] }
  0xaf   :  { %6314 = vmatpush3.bf16.msra.mxu1 %v6313_v62  ;;  %v6301_v62 = vpack.c.bf16 %v377_v32, %v376_v54  ;;  %v6381_v54 = vpack.c.bf16 %v465_v47, %v464_v45  ;;  %v466_v57 = vld [vmem:[%s11349_s1 + $0xd40] sm:$0xff]  ;;  %v491_v45 = vld [vmem:[%s11349_s1 + $0xe08] sm:$0xff] }
  0xb0   :  { %6316 = vmatprep.subr.bf16.mxu1 %v6315_v3  ;;  %v458_v3 = vld [vmem:[%s11349_s1 + $0xd00] sm:$0xff] }
  0xb1   :  { %6286 = vmatpush3.bf16.msra.mxu0 %v6285_v9  ;;  %v476_v9 = vld [vmem:[%s11349_s1 + $0xd90] sm:$0xff]  ;;  %v6369_v14 = vpack.c.bf16 %v459_v5, %v458_v3  ;;  %v437_v3 = vld [vmem:[%s11349_s1 + $0xc58] sm:$0xff] }
  0xb2   :  { %6288 = vmatprep.subr.bf16.mxu0 %v6287_v11  ;;  %v8539_v11 = vrot.slane %v1421_v61, %v7408_v10  ;;  %v484_v61 = vld [vmem:[%s11349_s1 + $0xdd0] sm:$0xff] }
  0xb3   :  { %6318 = vmatpush3.bf16.msra.mxu1 %v6317_v12  ;;  %v477_v12 = vld [vmem:[%s11349_s1 + $0xd98] sm:$0xff] }
  0xb4   :  { %6320 = vmatprep.subr.bf16.mxu1 %v6319_v16  ;;  %v428_v16 = vld [vmem:[%s11349_s1 + $0xc10] sm:$0xff]  ;;  %v6371_v19 = vpack.c.bf16 %v477_v12, %v476_v9  ;;  %v1437_v26 = vcombine.high %v8539_v11, %v8539_v11  ;;  %v455_v9 = vld [vmem:[%s11349_s1 + $0xce8] sm:$0xff]  ;;  %v486_v12 = vld [vmem:[%s11349_s1 + $0xde0] sm:$0xff] }
  0xb5   :  { %6290 = vmatpush3.bf16.msra.mxu0 %v6289_v22  ;;  %v447_v22 = vld [vmem:[%s11349_s1 + $0xca8] sm:$0xff]  ;;  %v6341_v27 = vpack.c.bf16 %v429_v17, %v428_v16  ;;  %v6359_v16 = vpack.c.bf16 %v455_v9, %v454_v7  ;;  %v438_v17 = vld [vmem:[%s11349_s1 + $0xc60] sm:$0xff] }
  0xb6   :  { %6292 = vmatprep.subr.bf16.mxu0 %v6291_v24  ;;  %v478_v24 = vld [vmem:[%s11349_s1 + $0xda0] sm:$0xff]  ;;  %v6343_v29 = vpack.c.bf16 %v447_v22, %v446_v21  ;;  %v471_v21 = vld [vmem:[%s11349_s1 + $0xd68] sm:$0xff]  ;;  %v456_v22 = vld [vmem:[%s11349_s1 + $0xcf0] sm:$0xff] }
  0xb7   :  { %6322 = vmatpush3.bf16.msra.mxu1 %v6321_v23  ;;  %v1436_v23 = vcombine.high %v8530_v8, %v8530_v8  ;;  %v6375_v43 = vpack.c.bf16 %v479_v25, %v478_v24  ;;  %v488_v24 = vld [vmem:[%s11349_s1 + $0xdf0] sm:$0xff]  ;;  %v489_v25 = vld [vmem:[%s11349_s1 + $0xdf8] sm:$0xff]  ;;  %v495_v7 = vld [vmem:[%s11349_s1 + $0xe28] sm:$0xff] }
  0xb8   :  { %6324 = vmatprep.subr.bf16.mxu1 %v6323_v28  ;;  %v6373_v28 = vpack.c.bf16 %v461_v20, %v460_v18  ;;  %v439_v18 = vld [vmem:[%s11349_s1 + $0xc68] sm:$0xff]  ;;  %v526_v9 = vld [vmem:[%s11349_s1 + $0xf20] sm:$0xff] }
  0xb9   :  { %6294 = vmatpush3.bf16.msra.mxu0 %v6293_v36  ;;  %v449_v36 = vld [vmem:[%s11349_s1 + $0xcb8] sm:$0xff] }
  0xba   :  { %6296 = vmatprep.subr.bf16.mxu0 %v6295_v37  ;;  %v481_v37 = vld [vmem:[%s11349_s1 + $0xdb8] sm:$0xff]  ;;  %v6347_v40 = vpack.c.bf16 %v449_v36, %v448_v35  ;;  %v506_v35 = vld [vmem:[%s11349_s1 + $0xe80] sm:$0xff]  ;;  %v507_v36 = vld [vmem:[%s11349_s1 + $0xe88] sm:$0xff] }
  0xbb   :  { %6326 = vmatpush3.bf16.msra.mxu1 %v6325_v52  ;;  %v480_v52 = vld [vmem:[%s11349_s1 + $0xdb0] sm:$0xff] }
  0xbc   :  { %6328 = vmatprep.subr.bf16.mxu1 %v6327_v42  ;;  %v432_v42 = vld [vmem:[%s11349_s1 + $0xc30] sm:$0xff]  ;;  %v6379_v46 = vpack.c.bf16 %v481_v37, %v480_v52  ;;  %v538_v52 = vld [vmem:[%s11349_s1 + $0xf80] sm:$0xff]  ;;  %v539_v37 = vld [vmem:[%s11349_s1 + $0xf88] sm:$0xff] }
  0xbd   :  { %6298 = vmatpush3.bf16.msra.mxu0 %v6297_v49  ;;  %v451_v49 = vld [vmem:[%s11349_s1 + $0xcc8] sm:$0xff]  ;;  %v6431_v47 = vpack.c.bf16 %v539_v37, %v538_v52  ;;  %v516_v52 = vld [vmem:[%s11349_s1 + $0xed0] sm:$0xff]  ;;  %v517_v37 = vld [vmem:[%s11349_s1 + $0xed8] sm:$0xff] }
  0xbe   :  { %6300 = vmatprep.subr.bf16.mxu0 %v6299_v53  ;;  %v6349_v53 = vpack.c.bf16 %v433_v44, %v432_v42  ;;  %v6351_v32 = vpack.c.bf16 %v451_v49, %v450_v48  ;;  %v6399_v42 = vpack.c.bf16 %v507_v36, %v506_v35  ;;  %v490_v44 = vld [vmem:[%s11349_s1 + $0xe00] sm:$0xff]  ;;  %v523_v48 = vld [vmem:[%s11349_s1 + $0xf08] sm:$0xff]  ;;  %v508_v49 = vld [vmem:[%s11349_s1 + $0xe90] sm:$0xff] }
  0xbf   :  { %6330 = vmatpush3.bf16.msra.mxu1 %v6329_v51  ;;  %v483_v51 = vld [vmem:[%s11349_s1 + $0xdc8] sm:$0xff] }
  0xc0   :  { %6332 = vmatprep.subr.bf16.mxu1 %v6331_v56  ;;  %v435_v56 = vld [vmem:[%s11349_s1 + $0xc48] sm:$0xff]  ;;  %v6383_v41 = vpack.c.bf16 %v483_v51, %v482_v50  ;;  %v509_v50 = vld [vmem:[%s11349_s1 + $0xe98] sm:$0xff] }
  0xc1   :  { %6302 = vmatpush3.bf16.msra.mxu0 %v6301_v62  ;;  %v485_v62 = vld [vmem:[%s11349_s1 + $0xdd8] sm:$0xff]  ;;  %v531_v36 = vld [vmem:[%s11349_s1 + $0xf48] sm:$0xff] }
  0xc2   :  { %6336 = vmatprep.subr.bf16.mxu0 %v6335_v0  ;;  %v6385_v0 = vpack.c.bf16 %v467_v58, %v466_v57  ;;  %v6387_v5 = vpack.c.bf16 %v485_v62, %v484_v61  ;;  %v6403_v57 = vpack.c.bf16 %v509_v50, %v508_v49  ;;  %v493_v58 = vld [vmem:[%s11349_s1 + $0xe18] sm:$0xff]  ;;  %v510_v62 = vld [vmem:[%s11349_s1 + $0xea0] sm:$0xff] }
  0xc3   :  { %6334 = vmatpush3.bf16.msra.mxu1 %v6333_v63  ;;  %v6353_v63 = vpack.c.bf16 %v435_v56, %v434_v55  ;;  %v6401_v55 = vpack.c.bf16 %v491_v45, %v490_v44  ;;  %v525_v61 = vld [vmem:[%s11349_s1 + $0xf18] sm:$0xff]  ;;  %v6419_v44 = vpack.c.bf16 %v517_v37, %v516_v52  ;;  %v500_v45 = vld [vmem:[%s11349_s1 + $0xe50] sm:$0xff]  ;;  %v518_v50 = vld [vmem:[%s11349_s1 + $0xee0] sm:$0xff] }
  0xc4   :  { %6368 = vmatprep.subr.bf16.mxu1 %v6367_v4  ;;  %2504 = vmatmul.mubr.f32.vlgmr.msra.gmra.mrb[10].mxu0 %v8323_v31  ;;  %v430_v31 = vld [vmem:[%s11349_s1 + $0xc20] sm:$0xff]  ;;  %v468_v4 = vld [vmem:[%s11349_s1 + $0xd50] sm:$0xff]  ;;  %v533_v49 = vld [vmem:[%s11349_s1 + $0xf58] sm:$0xff] }
  0xc5   :  { %6338 = vmatpush3.bf16.msra.mxu0 %v6337_v13  ;;  %2643 = vmatprep.mubr.f32.mxu0 %v1436_v23  ;;  %v6345_v38 = vpack.c.bf16 %v431_v30, %v430_v31  ;;  %v487_v13 = vld [vmem:[%s11349_s1 + $0xde8] sm:$0xff]  ;;  %v457_v23 = vld [vmem:[%s11349_s1 + $0xcf8] sm:$0xff]  ;;  %v440_v31 = vld [vmem:[%s11349_s1 + $0xc70] sm:$0xff] }
  0xc6   :  { %2574 = vmatmul.mubr.f32.vlgmr.msra.gmra.mrb[10].mxu1 %v8332_v34  ;;  %6340 = vmatprep.subr.bf16.mxu0 %v6339_v15  ;;  %v463_v34 = vld [vmem:[%s11349_s1 + $0xd28] sm:$0xff]  ;;  %v6389_v15 = vpack.c.bf16 %v469_v6, %v468_v4  ;;  %v6391_v20 = vpack.c.bf16 %v487_v13, %v486_v12  ;;  %v441_v30 = vld [vmem:[%s11349_s1 + $0xc78] sm:$0xff]  ;;  %v512_v13 = vld [vmem:[%s11349_s1 + $0xeb0] sm:$0xff] }
  0xc7   :  { %6370 = vmatpush3.bf16.msra.mxu1 %v6369_v14  ;;  %2713 = vmatprep.mubr.f32.mxu1 %v1437_v26  ;;  %v6377_v39 = vpack.c.bf16 %v463_v34, %v462_v33  ;;  %v6357_v14 = vpack.c.bf16 %v437_v3, %v436_v2  ;;  %v6361_v26 = vpack.c.bf16 %v439_v18, %v438_v17  ;;  %v472_v33 = vld [vmem:[%s11349_s1 + $0xd70] sm:$0xff]  ;;  %v473_v34 = vld [vmem:[%s11349_s1 + $0xd78] sm:$0xff]  ;;  %v543_v2 = vld [vmem:[%s11349_s1 + $0xfa8] sm:$0xff] }
  0xc8   :  { %6372 = vmatprep.subr.bf16.mxu1 %v6371_v19  ;;  %v470_v19 = vld [vmem:[%s11349_s1 + $0xd60] sm:$0xff]  ;;  %v604_v37 = vld [vmem:[%s11349_s1 + $0x1190] sm:$0xff] }
  0xc9   :  { %6342 = vmatpush3.bf16.msra.mxu0 %v6341_v27  ;;  %v29_v27 = vld [vmem:[%s11350_s0 + $0x38] sm:$0xff] }
  0xca   :  { %6344 = vmatprep.subr.bf16.mxu0 %v6343_v29  ;;  %v6363_v29 = vpack.c.bf16 %v457_v23, %v456_v22  ;;  %v8737_v51 = vrot.slane %v29_v27, %v7408_v10  ;;  %v528_v22 = vld [vmem:[%s11349_s1 + $0xf30] sm:$0xff] }
  0xcb   :  { %6374 = vmatpush3.bf16.msra.mxu1 %v6373_v28  ;;  %v6393_v28 = vpack.c.bf16 %v471_v21, %v470_v19  ;;  %v497_v21 = vld [vmem:[%s11349_s1 + $0xe38] sm:$0xff] }
  0xcc   :  { %6376 = vmatprep.subr.bf16.mxu1 %v6375_v43  ;;  %v6395_v43 = vpack.c.bf16 %v489_v25, %v488_v24  ;;  %v529_v24 = vld [vmem:[%s11349_s1 + $0xf38] sm:$0xff]  ;;  %v514_v25 = vld [vmem:[%s11349_s1 + $0xec0] sm:$0xff] }
  0xcd   :  { %6346 = vmatpush3.bf16.msra.mxu0 %v6345_v38  ;;  %v1438_v38 = vcombine.high %v29_v27, %v29_v27  ;;  %v546_v27 = vld [vmem:[%s11349_s1 + $0xfc0] sm:$0xff] }
  0xce   :  { %6348 = vmatprep.subr.bf16.mxu0 %v6347_v40  ;;  %v6397_v40 = vpack.c.bf16 %v473_v34, %v472_v33  ;;  %v498_v33 = vld [vmem:[%s11349_s1 + $0xe40] sm:$0xff] }
  0xcf   :  { %6378 = vmatpush3.bf16.msra.mxu1 %v6377_v39  ;;  %v6365_v39 = vpack.c.bf16 %v441_v30, %v440_v31  ;;  %v6445_v31 = vpack.c.bf16 %v529_v24, %v528_v22  ;;  %v530_v34 = vld [vmem:[%s11349_s1 + $0xf40] sm:$0xff]  ;;  %v571_v22 = vld [vmem:[%s11349_s1 + $0x1088] sm:$0xff] }
  0xd0   :  { %6380 = vmatprep.subr.bf16.mxu1 %v6379_v46  ;;  %v522_v46 = vld [vmem:[%s11349_s1 + $0xf00] sm:$0xff]  ;;  %v603_v24 = vld [vmem:[%s11349_s1 + $0x1188] sm:$0xff] }
  0xd1   :  { %6350 = vmatpush3.bf16.msra.mxu0 %v6349_v53  ;;  %v540_v53 = vld [vmem:[%s11349_s1 + $0xf90] sm:$0xff]  ;;  %v6433_v56 = vpack.c.bf16 %v523_v48, %v522_v46  ;;  %v501_v46 = vld [vmem:[%s11349_s1 + $0xe58] sm:$0xff] }
  0xd2   :  { %6352 = vmatprep.subr.bf16.mxu0 %v6351_v32  ;;  %v8746_v32 = vrot.slane %v1438_v38, %v7408_v10  ;;  %v548_v38 = vld [vmem:[%s11349_s1 + $0xfd0] sm:$0xff] }
  0xd3   :  { %6382 = vmatpush3.bf16.msra.mxu1 %v6381_v54  ;;  %v541_v54 = vld [vmem:[%s11349_s1 + $0xf98] sm:$0xff] }
  0xd4   :  { %6384 = vmatprep.subr.bf16.mxu1 %v6383_v41  ;;  %v492_v41 = vld [vmem:[%s11349_s1 + $0xe10] sm:$0xff]  ;;  %v6435_v60 = vpack.c.bf16 %v541_v54, %v540_v53  ;;  %v1454_v3 = vcombine.high %v8746_v32, %v8746_v32  ;;  %v519_v53 = vld [vmem:[%s11349_s1 + $0xee8] sm:$0xff]  ;;  %v550_v54 = vld [vmem:[%s11349_s1 + $0xfe0] sm:$0xff] }
  0xd5   :  { %6354 = vmatpush3.bf16.msra.mxu0 %v6353_v63  ;;  %v511_v63 = vld [vmem:[%s11349_s1 + $0xea8] sm:$0xff]  ;;  %v6405_v4 = vpack.c.bf16 %v493_v58, %v492_v41  ;;  %v6423_v41 = vpack.c.bf16 %v519_v53, %v518_v50  ;;  %v502_v58 = vld [vmem:[%s11349_s1 + $0xe60] sm:$0xff] }
  0xd6   :  { %6356 = vmatprep.subr.bf16.mxu0 %v6355_v1  ;;  %v542_v1 = vld [vmem:[%s11349_s1 + $0xfa0] sm:$0xff]  ;;  %v6407_v6 = vpack.c.bf16 %v511_v63, %v510_v62  ;;  %v535_v63 = vld [vmem:[%s11349_s1 + $0xf68] sm:$0xff] }
  0xd7   :  { %6386 = vmatpush3.bf16.msra.mxu1 %v6385_v0  ;;  %v1453_v0 = vcombine.high %v8737_v51, %v8737_v51  ;;  %v6439_v12 = vpack.c.bf16 %v543_v2, %v542_v1  ;;  %v521_v1 = vld [vmem:[%s11349_s1 + $0xef8] sm:$0xff]  ;;  %v4571_v2 = vld [vmem:[%s11351_s2] ss:$0 sm:$0xff]  ;;  %v575_v53 = vld [vmem:[%s11349_s1 + $0x10a8] sm:$0xff] }
  0xd8   :  { %6388 = vmatprep.subr.bf16.mxu1 %v6387_v5  ;;  %v6437_v5 = vpack.c.bf16 %v525_v61, %v524_v59  ;;  %v503_v59 = vld [vmem:[%s11349_s1 + $0xe68] sm:$0xff]  ;;  %v574_v50 = vld [vmem:[%s11349_s1 + $0x10a0] sm:$0xff] }
  0xd9   :  { %6358 = vmatpush3.bf16.msra.mxu0 %v6357_v14  ;;  %v513_v14 = vld [vmem:[%s11349_s1 + $0xeb8] sm:$0xff] }
  0xda   :  { %6360 = vmatprep.subr.bf16.mxu0 %v6359_v16  ;;  %v545_v16 = vld [vmem:[%s11349_s1 + $0xfb8] sm:$0xff]  ;;  %v6411_v19 = vpack.c.bf16 %v513_v14, %v512_v13 }
  0xdb   :  { %6390 = vmatpush3.bf16.msra.mxu1 %v6389_v15  ;;  %v544_v15 = vld [vmem:[%s11349_s1 + $0xfb0] sm:$0xff] }
  0xdc   :  { %6392 = vmatprep.subr.bf16.mxu1 %v6391_v20  ;;  %v496_v20 = vld [vmem:[%s11349_s1 + $0xe30] sm:$0xff]  ;;  %v6443_v23 = vpack.c.bf16 %v545_v16, %v544_v15  ;;  %v505_v16 = vld [vmem:[%s11349_s1 + $0xe78] sm:$0xff] }
  0xdd   :  { %6362 = vmatpush3.bf16.msra.mxu0 %v6361_v26  ;;  %v515_v26 = vld [vmem:[%s11349_s1 + $0xec8] sm:$0xff]  ;;  %v504_v15 = vld [vmem:[%s11349_s1 + $0xe70] sm:$0xff] }
  0xde   :  { %6364 = vmatprep.subr.bf16.mxu0 %v6363_v29  ;;  %v6413_v29 = vpack.c.bf16 %v497_v21, %v496_v20  ;;  %v6415_v30 = vpack.c.bf16 %v515_v26, %v514_v25  ;;  %v537_v20 = vld [vmem:[%s11349_s1 + $0xf78] sm:$0xff]  ;;  %v570_v21 = vld [vmem:[%s11349_s1 + $0x1080] sm:$0xff] }
  0xdf   :  { %6394 = vmatpush3.bf16.msra.mxu1 %v6393_v28  ;;  %v547_v28 = vld [vmem:[%s11349_s1 + $0xfc8] sm:$0xff] }
  0xe0   :  { %6396 = vmatprep.subr.bf16.mxu1 %v6395_v43  ;;  %v499_v43 = vld [vmem:[%s11349_s1 + $0xe48] sm:$0xff]  ;;  %v6447_v35 = vpack.c.bf16 %v547_v28, %v546_v27  ;;  %v6429_v27 = vpack.c.bf16 %v505_v16, %v504_v15 }
  0xe1   :  { %6366 = vmatpush3.bf16.msra.mxu0 %v6365_v39  ;;  %v549_v39 = vld [vmem:[%s11349_s1 + $0xfd8] sm:$0xff]  ;;  %v611_v15 = vld [vmem:[%s11349_s1 + $0x11c8] sm:$0xff] }
  0xe2   :  { %6400 = vmatprep.subr.bf16.mxu0 %v6399_v42  ;;  %v6449_v42 = vpack.c.bf16 %v531_v36, %v530_v34  ;;  %v6451_v48 = vpack.c.bf16 %v549_v39, %v548_v38  ;;  %v587_v34 = vld [vmem:[%s11349_s1 + $0x1108] sm:$0xff]  ;;  %v573_v36 = vld [vmem:[%s11349_s1 + $0x1098] sm:$0xff] }
  0xe3   :  { %6398 = vmatpush3.bf16.msra.mxu1 %v6397_v40  ;;  %v6417_v40 = vpack.c.bf16 %v499_v43, %v498_v33  ;;  %v586_v33 = vld [vmem:[%s11349_s1 + $0x1100] sm:$0xff]  ;;  %v605_v38 = vld [vmem:[%s11349_s1 + $0x1198] sm:$0xff] }
  0xe4   :  { %6432 = vmatprep.subr.bf16.mxu1 %v6431_v47  ;;  %2644 = vmatmul.mubr.f32.vlgmr.msra.gmra.mrb[12].mxu0 %v8530_v8  ;;  %v494_v8 = vld [vmem:[%s11349_s1 + $0xe20] sm:$0xff]  ;;  %v532_v47 = vld [vmem:[%s11349_s1 + $0xf50] sm:$0xff] }
  0xe5   :  { %6402 = vmatpush3.bf16.msra.mxu0 %v6401_v55  ;;  %2783 = vmatprep.mubr.f32.mxu0 %v1453_v0  ;;  %v6409_v17 = vpack.c.bf16 %v495_v7, %v494_v8  ;;  %v551_v55 = vld [vmem:[%s11349_s1 + $0xfe8] sm:$0xff]  ;;  %v520_v0 = vld [vmem:[%s11349_s1 + $0xef0] sm:$0xff] }
  0xe6   :  { %2714 = vmatmul.mubr.f32.vlgmr.msra.gmra.mrb[12].mxu1 %v8539_v11  ;;  %6404 = vmatprep.subr.bf16.mxu0 %v6403_v57  ;;  %v527_v11 = vld [vmem:[%s11349_s1 + $0xf28] sm:$0xff]  ;;  %v6453_v57 = vpack.c.bf16 %v533_v49, %v532_v47  ;;  %v6455_v62 = vpack.c.bf16 %v551_v55, %v550_v54  ;;  %v6427_v14 = vpack.c.bf16 %v521_v1, %v520_v0  ;;  %v588_v47 = vld [vmem:[%s11349_s1 + $0x1110] sm:$0xff]  ;;  %v589_v49 = vld [vmem:[%s11349_s1 + $0x1118] sm:$0xff] }
  0xe7   :  { %6434 = vmatpush3.bf16.msra.mxu1 %v6433_v56  ;;  %2853 = vmatprep.mubr.f32.mxu1 %v1454_v3  ;;  %v6441_v18 = vpack.c.bf16 %v527_v11, %v526_v9  ;;  %v6421_v56 = vpack.c.bf16 %v501_v46, %v500_v45  ;;  %v6425_v9 = vpack.c.bf16 %v503_v59, %v502_v58  ;;  %v556_v45 = vld [vmem:[%s11349_s1 + $0x1010] sm:$0xff]  ;;  %v557_v46 = vld [vmem:[%s11349_s1 + $0x1018] sm:$0xff]  ;;  %v606_v55 = vld [vmem:[%s11349_s1 + $0x11a0] sm:$0xff] }
  0xe8   :  { %6436 = vmatprep.subr.bf16.mxu1 %v6435_v60  ;;  %v534_v60 = vld [vmem:[%s11349_s1 + $0xf60] sm:$0xff]  ;;  %v6501_v58 = vpack.c.bf16 %v589_v49, %v588_v47  ;;  %v6471_v59 = vpack.c.bf16 %v575_v53, %v574_v50  ;;  %v577_v0 = vld [vmem:[%s11349_s1 + $0x10b8] sm:$0xff]  ;;  %v608_v1 = vld [vmem:[%s11349_s1 + $0x11b0] sm:$0xff] }
  0xe9   :  { %6406 = vmatpush3.bf16.msra.mxu0 %v6405_v4  ;;  %v6457_v13 = vpack.c.bf16 %v535_v63, %v534_v60  ;;  %v559_v60 = vld [vmem:[%s11349_s1 + $0x1028] sm:$0xff]  ;;  %v576_v63 = vld [vmem:[%s11349_s1 + $0x10b0] sm:$0xff]  ;;  %v566_v47 = vld [vmem:[%s11349_s1 + $0x1060] sm:$0xff] }
  0xea   :  { %6408 = vmatprep.subr.bf16.mxu0 %v6407_v6  ;;  %v553_v6 = vld [vmem:[%s11349_s1 + $0xff8] sm:$0xff]  ;;  %v598_v49 = vld [vmem:[%s11349_s1 + $0x1160] sm:$0xff] }
  0xeb   :  { %6438 = vmatpush3.bf16.msra.mxu1 %v6437_v5  ;;  %v552_v5 = vld [vmem:[%s11349_s1 + $0xff0] sm:$0xff] }
  0xec   :  { %6440 = vmatprep.subr.bf16.mxu1 %v6439_v12  ;;  %v30_v12 = vld [vmem:[%s11350_s0 + $0x40] sm:$0xff] }
  0xed   :  { %6410 = vmatpush3.bf16.msra.mxu0 %v6409_v17  ;;  %v536_v17 = vld [vmem:[%s11349_s1 + $0xf70] sm:$0xff]  ;;  %v1455_v25 = vcombine.high %v30_v12, %v30_v12  ;;  %v8949_v52 = vrot.slane %v30_v12, %v7408_v10  ;;  %v593_v12 = vld [vmem:[%s11349_s1 + $0x1138] sm:$0xff] }
  0xee   :  { %6412 = vmatprep.subr.bf16.mxu0 %v6411_v19  ;;  %v6459_v19 = vpack.c.bf16 %v553_v6, %v552_v5  ;;  %v6461_v28 = vpack.c.bf16 %v537_v20, %v536_v17  ;;  %v6475_v5 = vpack.c.bf16 %v577_v0, %v576_v63  ;;  %v560_v6 = vld [vmem:[%s11349_s1 + $0x1030] sm:$0xff]  ;;  %v563_v20 = vld [vmem:[%s11349_s1 + $0x1048] sm:$0xff] }
  0xef   :  { %6442 = vmatpush3.bf16.msra.mxu1 %v6441_v18  ;;  %v8958_v39 = vrot.slane %v1455_v25, %v7408_v10  ;;  %v1470_v54 = vcombine.high %v8949_v52, %v8949_v52  ;;  %v581_v25 = vld [vmem:[%s11349_s1 + $0x10d8] sm:$0xff] }
  0xf0   :  { %6444 = vmatprep.subr.bf16.mxu1 %v6443_v23  ;;  %v602_v23 = vld [vmem:[%s11349_s1 + $0x1180] sm:$0xff] }
  0xf1   :  { %6414 = vmatpush3.bf16.msra.mxu0 %v6413_v29  ;;  %v6463_v29 = vpack.c.bf16 %v571_v22, %v570_v21  ;;  %v6495_v43 = vpack.c.bf16 %v603_v24, %v602_v23  ;;  %v594_v21 = vld [vmem:[%s11349_s1 + $0x1140] sm:$0xff]  ;;  %v595_v23 = vld [vmem:[%s11349_s1 + $0x1148] sm:$0xff]  ;;  %v580_v24 = vld [vmem:[%s11349_s1 + $0x10d0] sm:$0xff] }
  0xf2   :  { %6416 = vmatprep.subr.bf16.mxu0 %v6415_v30  ;;  %v555_v30 = vld [vmem:[%s11349_s1 + $0x1008] sm:$0xff] }
  0xf3   :  { %6446 = vmatpush3.bf16.msra.mxu1 %v6445_v31  ;;  %v554_v31 = vld [vmem:[%s11349_s1 + $0x1000] sm:$0xff] }
  0xf4   :  { %6448 = vmatprep.subr.bf16.mxu1 %v6447_v35  ;;  %v572_v35 = vld [vmem:[%s11349_s1 + $0x1090] sm:$0xff] }
  0xf5   :  { %6418 = vmatpush3.bf16.msra.mxu0 %v6417_v40  ;;  %v6465_v40 = vpack.c.bf16 %v555_v30, %v554_v31  ;;  %v6513_v31 = vpack.c.bf16 %v595_v23, %v594_v21  ;;  %v6483_v30 = vpack.c.bf16 %v581_v25, %v580_v24  ;;  %v636_v21 = vld [vmem:[%s11349_s1 + $0x1290] sm:$0xff]  ;;  %v669_v25 = vld [vmem:[%s11349_s1 + $0x1398] sm:$0xff] }
  0xf6   :  { %6420 = vmatprep.subr.bf16.mxu0 %v6419_v44  ;;  %v6467_v44 = vpack.c.bf16 %v573_v36, %v572_v35  ;;  %v597_v36 = vld [vmem:[%s11349_s1 + $0x1158] sm:$0xff]  ;;  %v668_v24 = vld [vmem:[%s11349_s1 + $0x1390] sm:$0xff] }
  0xf7   :  { %6450 = vmatpush3.bf16.msra.mxu1 %v6449_v42  ;;  %v4608_v61 = vpop.f32.mrb[0].mxu0  ;;  %v6497_v42 = vpack.c.bf16 %v587_v34, %v586_v33  ;;  %v564_v33 = vld [vmem:[%s11349_s1 + $0x1050] sm:$0xff] }
  0xf8   :  { %6452 = vmatprep.subr.bf16.mxu1 %v6451_v48  ;;  %v4609_v3 = vpop.f32.mrb[1].mxu0  ;;  %v6499_v48 = vpack.c.bf16 %v605_v38, %v604_v37  ;;  %v596_v34 = vld [vmem:[%s11349_s1 + $0x1150] sm:$0xff]  ;;  %v582_v37 = vld [vmem:[%s11349_s1 + $0x10e0] sm:$0xff]  ;;  %v583_v38 = vld [vmem:[%s11349_s1 + $0x10e8] sm:$0xff] }
  0xf9   :  { %v4643_v4 = vpop.f32.mrb[0].mxu1  ;;  %v4610_v8 = vadd.f32 %v4609_v3, %v4608_v61  ;;  %6422 = vmatpush3.bf16.msra.mxu0 %v6421_v56  ;;  %v607_v56 = vld [vmem:[%s11349_s1 + $0x11a8] sm:$0xff]  ;;  %v590_v61 = vld [vmem:[%s11349_s1 + $0x1120] sm:$0xff] }
  0xfa   :  { %v4644_v7 = vpop.f32.mrb[1].mxu1  ;;  %6424 = vmatprep.subr.bf16.mxu0 %v6423_v41  ;;  %v6469_v41 = vpack.c.bf16 %v557_v46, %v556_v45  ;;  %v6517_v45 = vpack.c.bf16 %v597_v36, %v596_v34  ;;  %v6487_v46 = vpack.c.bf16 %v583_v38, %v582_v37  ;;  %v6563_v34 = vpack.c.bf16 %v669_v25, %v668_v24  ;;  %v638_v36 = vld [vmem:[%s11349_s1 + $0x12a0] sm:$0xff]  ;;  %v639_v37 = vld [vmem:[%s11349_s1 + $0x12a8] sm:$0xff] }
  0xfb   :  { %v4645_v11 = vadd.f32 %v4644_v7, %v4643_v4  ;;  %6454 = vmatpush3.bf16.msra.mxu1 %v6453_v57  ;;  %v1806_v18 = vadd.f32 %v4610_v8, %v4571_v2  ;;  %v1471_v57 = vcombine.high %v8958_v39, %v8958_v39  ;;  %v609_v2 = vld [vmem:[%s11349_s1 + $0x11b8] sm:$0xff]  ;;  %v592_v7 = vld [vmem:[%s11349_s1 + $0x1130] sm:$0xff]  ;;  %v646_v24 = vld [vmem:[%s11349_s1 + $0x12e0] sm:$0xff] }
  0xfc   :  { %6456 = vmatprep.subr.bf16.mxu1 %v6455_v62  ;;  %v6503_v62 = vpack.c.bf16 %v607_v56, %v606_v55  ;;  %v561_v8 = vld [vmem:[%s11349_s1 + $0x1038] sm:$0xff]  ;;  %v6509_v17 = vpack.c.bf16 %v593_v12, %v592_v7  ;;  %v584_v55 = vld [vmem:[%s11349_s1 + $0x10f0] sm:$0xff]  ;;  %v635_v7 = vld [vmem:[%s11349_s1 + $0x1288] sm:$0xff] }
  0xfd   :  { %v8928_v26 = vadd.f32 %v4645_v11, %v1806_v18  ;;  %6426 = vmatpush3.bf16.msra.mxu0 %v6425_v9  ;;  %v6507_v9 = vpack.c.bf16 %v609_v2, %v608_v1  ;;  %v578_v11 = vld [vmem:[%s11349_s1 + $0x10c0] sm:$0xff]  ;;  %v6477_v16 = vpack.c.bf16 %v561_v8, %v560_v6  ;;  %v585_v56 = vld [vmem:[%s11349_s1 + $0x10f8] sm:$0xff]  ;;  %v568_v1 = vld [vmem:[%s11349_s1 + $0x1070] sm:$0xff] }
  0xfe   :  { %6428 = vmatprep.subr.bf16.mxu0 %v6427_v14  ;;  %v610_v14 = vld [vmem:[%s11349_s1 + $0x11c0] sm:$0xff]  ;;  %v6491_v0 = vpack.c.bf16 %v585_v56, %v584_v55  ;;  %v569_v2 = vld [vmem:[%s11349_s1 + $0x1078] sm:$0xff]  ;;  %v672_v55 = vld [vmem:[%s11349_s1 + $0x13b0] sm:$0xff] }
  0xff   :  { %6458 = vmatpush3.bf16.msra.mxu1 %v6457_v13  ;;  %v579_v13 = vld [vmem:[%s11349_s1 + $0x10c8] sm:$0xff]  ;;  %v6511_v22 = vpack.c.bf16 %v611_v15, %v610_v14  ;;  %v601_v6 = vld [vmem:[%s11349_s1 + $0x1178] sm:$0xff]  ;;  %v634_v8 = vld [vmem:[%s11349_s1 + $0x1280] sm:$0xff] }
 0x100   :  { %6460 = vmatprep.subr.bf16.mxu1 %v6459_v19  ;;  %v6479_v18 = vpack.c.bf16 %v579_v13, %v578_v11  ;;  %v562_v19 = vld [vmem:[%s11349_s1 + $0x1040] sm:$0xff]  ;;  %v6493_v13 = vpack.c.bf16 %v569_v2, %v568_v1  ;;  %v6527_v15 = vpack.c.bf16 %v635_v7, %v634_v8  ;;  %v673_v56 = vld [vmem:[%s11349_s1 + $0x13b8] sm:$0xff]  ;;  %v675_v1 = vld [vmem:[%s11349_s1 + $0x13c8] sm:$0xff] }
 0x101   :  { %6430 = vmatpush3.bf16.msra.mxu0 %v6429_v27  ;;  %v612_v27 = vld [vmem:[%s11349_s1 + $0x11d0] sm:$0xff]  ;;  %v658_v8 = vld [vmem:[%s11349_s1 + $0x1340] sm:$0xff]  ;;  %v647_v25 = vld [vmem:[%s11349_s1 + $0x12e8] sm:$0xff] }
 0x102   :  { %6464 = vmatprep.subr.bf16.mxu0 %v6463_v29  ;;  %v6481_v29 = vpack.c.bf16 %v563_v20, %v562_v19  ;;  %v651_v20 = vld [vmem:[%s11349_s1 + $0x1308] sm:$0xff] }
 0x103   :  { %6462 = vmatpush3.bf16.msra.mxu1 %v6461_v28  ;;  %v613_v28 = vld [vmem:[%s11349_s1 + $0x11d8] sm:$0xff] }
 0x104   :  { %6496 = vmatprep.subr.bf16.mxu1 %v6495_v43  ;;  %2784 = vmatmul.mubr.f32.vlgmr.msra.gmra.mrb[14].mxu0 %v8737_v51  ;;  %v558_v51 = vld [vmem:[%s11349_s1 + $0x1020] sm:$0xff]  ;;  %v565_v43 = vld [vmem:[%s11349_s1 + $0x1058] sm:$0xff]  ;;  %v6515_v35 = vpack.c.bf16 %v613_v28, %v612_v27 }
 0x105   :  { %6466 = vmatpush3.bf16.msra.mxu0 %v6465_v40  ;;  %2923 = vmatprep.mubr.f32.mxu0 %v1470_v54  ;;  %v6473_v3 = vpack.c.bf16 %v559_v60, %v558_v51  ;;  %v614_v40 = vld [vmem:[%s11349_s1 + $0x11e0] sm:$0xff]  ;;  %v599_v54 = vld [vmem:[%s11349_s1 + $0x1168] sm:$0xff] }
 0x106   :  { %2854 = vmatmul.mubr.f32.vlgmr.msra.gmra.mrb[14].mxu1 %v8746_v32  ;;  %6468 = vmatprep.subr.bf16.mxu0 %v6467_v44  ;;  %v591_v32 = vld [vmem:[%s11349_s1 + $0x1128] sm:$0xff]  ;;  %v6485_v44 = vpack.c.bf16 %v565_v43, %v564_v33  ;;  %v6521_v63 = vpack.c.bf16 %v599_v54, %v598_v49  ;;  %v621_v33 = vld [vmem:[%s11349_s1 + $0x1218] sm:$0xff]  ;;  %v652_v43 = vld [vmem:[%s11349_s1 + $0x1310] sm:$0xff] }
 0x107   :  { %6498 = vmatpush3.bf16.msra.mxu1 %v6497_v42  ;;  %2993 = vmatprep.mubr.f32.mxu1 %v1471_v57  ;;  %v6505_v4 = vpack.c.bf16 %v591_v32, %v590_v61  ;;  %v615_v42 = vld [vmem:[%s11349_s1 + $0x11e8] sm:$0xff]  ;;  %v654_v49 = vld [vmem:[%s11349_s1 + $0x1320] sm:$0xff]  ;;  %v641_v54 = vld [vmem:[%s11349_s1 + $0x12b8] sm:$0xff] }
 0x108   :  { %6500 = vmatprep.subr.bf16.mxu1 %v6499_v48  ;;  %v567_v48 = vld [vmem:[%s11349_s1 + $0x1068] sm:$0xff]  ;;  %v6519_v53 = vpack.c.bf16 %v615_v42, %v614_v40  ;;  %v670_v40 = vld [vmem:[%s11349_s1 + $0x13a0] sm:$0xff] }
 0x109   :  { %6470 = vmatpush3.bf16.msra.mxu0 %v6469_v41  ;;  %v6489_v61 = vpack.c.bf16 %v567_v48, %v566_v47  ;;  %v671_v42 = vld [vmem:[%s11349_s1 + $0x13a8] sm:$0xff]  ;;  %v6535_v47 = vpack.c.bf16 %v639_v37, %v638_v36 }
 0x10a   :  { %6472 = vmatprep.subr.bf16.mxu0 %v6471_v59  ;;  %v617_v59 = vld [vmem:[%s11349_s1 + $0x11f8] sm:$0xff]  ;;  %v623_v48 = vld [vmem:[%s11349_s1 + $0x1228] sm:$0xff] }
 0x10b   :  { %6502 = vmatpush3.bf16.msra.mxu1 %v6501_v58  ;;  %v616_v58 = vld [vmem:[%s11349_s1 + $0x11f0] sm:$0xff] }
 0x10c   :  { %6504 = vmatprep.subr.bf16.mxu1 %v6503_v62  ;;  %v31_v62 = vld [vmem:[%s11350_s0 + $0x48] sm:$0xff] }
 0x10d   :  { %6474 = vmatpush3.bf16.msra.mxu0 %v6473_v3  ;;  %v600_v3 = vld [vmem:[%s11349_s1 + $0x1170] sm:$0xff]  ;;  %v1472_v12 = vcombine.high %v31_v62, %v31_v62  ;;  %v9159_v23 = vrot.slane %v31_v62, %v7408_v10  ;;  %v657_v62 = vld [vmem:[%s11349_s1 + $0x1338] sm:$0xff] }
 0x10e   :  { %6476 = vmatprep.subr.bf16.mxu0 %v6475_v5  ;;  %v6523_v5 = vpack.c.bf16 %v617_v59, %v616_v58  ;;  %v6525_v14 = vpack.c.bf16 %v601_v6, %v600_v3  ;;  %v624_v59 = vld [vmem:[%s11349_s1 + $0x1230] sm:$0xff]  ;;  %v627_v6 = vld [vmem:[%s11349_s1 + $0x1248] sm:$0xff] }
 0x10f   :  { %6506 = vmatpush3.bf16.msra.mxu1 %v6505_v4  ;;  %v9168_v27 = vrot.slane %v1472_v12, %v7408_v10  ;;  %v1487_v38 = vcombine.high %v9159_v23, %v9159_v23  ;;  %v645_v12 = vld [vmem:[%s11349_s1 + $0x12d8] sm:$0xff] }
 0x110   :  { %6508 = vmatprep.subr.bf16.mxu1 %v6507_v9  ;;  %v666_v9 = vld [vmem:[%s11349_s1 + $0x1380] sm:$0xff] }
 0x111   :  { %6478 = vmatpush3.bf16.msra.mxu0 %v6477_v16  ;;  %v618_v16 = vld [vmem:[%s11349_s1 + $0x1200] sm:$0xff] }
 0x112   :  { %6480 = vmatprep.subr.bf16.mxu0 %v6479_v18  ;;  %v650_v18 = vld [vmem:[%s11349_s1 + $0x1300] sm:$0xff] }
 0x113   :  { %6510 = vmatpush3.bf16.msra.mxu1 %v6509_v17  ;;  %v619_v17 = vld [vmem:[%s11349_s1 + $0x1208] sm:$0xff] }
 0x114   :  { %6512 = vmatprep.subr.bf16.mxu1 %v6511_v22  ;;  %v637_v22 = vld [vmem:[%s11349_s1 + $0x1298] sm:$0xff]  ;;  %v6529_v28 = vpack.c.bf16 %v619_v17, %v618_v16 }
 0x115   :  { %6482 = vmatpush3.bf16.msra.mxu0 %v6481_v29  ;;  %v6561_v29 = vpack.c.bf16 %v651_v20, %v650_v18  ;;  %v628_v18 = vld [vmem:[%s11349_s1 + $0x1250] sm:$0xff] }
 0x116   :  { %6484 = vmatprep.subr.bf16.mxu0 %v6483_v30  ;;  %v620_v30 = vld [vmem:[%s11349_s1 + $0x1210] sm:$0xff] }
 0x117   :  { %6514 = vmatpush3.bf16.msra.mxu1 %v6513_v31  ;;  %v4678_v50 = vpop.f32.mrb[2].mxu0  ;;  %v6531_v31 = vpack.c.bf16 %v637_v22, %v636_v21  ;;  %v660_v20 = vld [vmem:[%s11349_s1 + $0x1350] sm:$0xff]  ;;  %v661_v22 = vld [vmem:[%s11349_s1 + $0x1358] sm:$0xff] }
 0x118   :  { %6516 = vmatprep.subr.bf16.mxu1 %v6515_v35  ;;  %v4679_v57 = vpop.f32.mrb[3].mxu0  ;;  %v653_v35 = vld [vmem:[%s11349_s1 + $0x1318] sm:$0xff] }
 0x119   :  { %v4713_v41 = vpop.f32.mrb[2].mxu1  ;;  %v4680_v51 = vadd.f32 %v4679_v57, %v4678_v50  ;;  %6486 = vmatpush3.bf16.msra.mxu0 %v6485_v44  ;;  %v1488_v44 = vcombine.high %v9168_v27, %v9168_v27  ;;  %v6567_v50 = vpack.c.bf16 %v671_v42, %v670_v40  ;;  %v648_v40 = vld [vmem:[%s11349_s1 + $0x12f0] sm:$0xff]  ;;  %v649_v42 = vld [vmem:[%s11349_s1 + $0x12f8] sm:$0xff] }
 0x11a   :  { %v4714_v60 = vpop.f32.mrb[3].mxu1  ;;  %6488 = vmatprep.subr.bf16.mxu0 %v6487_v46  ;;  %v6565_v46 = vpack.c.bf16 %v653_v35, %v652_v43  ;;  %v630_v43 = vld [vmem:[%s11349_s1 + $0x1260] sm:$0xff] }
 0x11b   :  { %v4715_v32 = vadd.f32 %v4714_v60, %v4713_v41  ;;  %6518 = vmatpush3.bf16.msra.mxu1 %v6517_v45  ;;  %v1946_v4 = vadd.f32 %v4680_v51, %v8928_v26  ;;  %v667_v26 = vld [vmem:[%s11349_s1 + $0x1388] sm:$0xff]  ;;  %v6533_v45 = vpack.c.bf16 %v621_v33, %v620_v30  ;;  %v625_v51 = vld [vmem:[%s11349_s1 + $0x1238] sm:$0xff]  ;;  %v656_v60 = vld [vmem:[%s11349_s1 + $0x1330] sm:$0xff]  ;;  %v6581_v30 = vpack.c.bf16 %v661_v22, %v660_v20 }
 0x11c   :  { %6520 = vmatprep.subr.bf16.mxu1 %v6519_v53  ;;  %v6559_v19 = vpack.c.bf16 %v667_v26, %v666_v9  ;;  %v640_v53 = vld [vmem:[%s11349_s1 + $0x12b0] sm:$0xff]  ;;  %v6541_v2 = vpack.c.bf16 %v625_v51, %v624_v59  ;;  %v6573_v3 = vpack.c.bf16 %v657_v62, %v656_v60  ;;  %v659_v9 = vld [vmem:[%s11349_s1 + $0x1348] sm:$0xff]  ;;  %v6551_v33 = vpack.c.bf16 %v647_v25, %v646_v24  ;;  %v662_v35 = vld [vmem:[%s11349_s1 + $0x1360] sm:$0xff] }
 0x11d   :  { %v9138_v11 = vadd.f32 %v4715_v32, %v1946_v4  ;;  %6490 = vmatpush3.bf16.msra.mxu0 %v6489_v61  ;;  %v6539_v58 = vpack.c.bf16 %v641_v54, %v640_v53  ;;  %v6571_v61 = vpack.c.bf16 %v673_v56, %v672_v55  ;;  %v642_v32 = vld [vmem:[%s11349_s1 + $0x12c0] sm:$0xff]  ;;  %v644_v26 = vld [vmem:[%s11349_s1 + $0x12d0] sm:$0xff]  ;;  %v6577_v16 = vpack.c.bf16 %v659_v9, %v658_v8  ;;  %v633_v56 = vld [vmem:[%s11349_s1 + $0x1278] sm:$0xff] }
 0x11e   :  { %6492 = vmatprep.subr.bf16.mxu0 %v6491_v0  ;;  %v674_v0 = vld [vmem:[%s11349_s1 + $0x13c0] sm:$0xff]  ;;  %v6547_v17 = vpack.c.bf16 %v645_v12, %v644_v26  ;;  %v6555_v54 = vpack.c.bf16 %v649_v42, %v648_v40  ;;  %v632_v55 = vld [vmem:[%s11349_s1 + $0x1270] sm:$0xff]  ;;  %v665_v59 = vld [vmem:[%s11349_s1 + $0x1378] sm:$0xff] }
 0x11f   :  { %6522 = vmatpush3.bf16.msra.mxu1 %v6521_v63  ;;  %v643_v63 = vld [vmem:[%s11349_s1 + $0x12c8] sm:$0xff]  ;;  %v6575_v7 = vpack.c.bf16 %v675_v1, %v674_v0  ;;  %v698_v51 = vld [vmem:[%s11349_s1 + $0x1480] sm:$0xff]  ;;  %v700_v8 = vld [vmem:[%s11349_s1 + $0x1490] sm:$0xff] }
 0x120   :  { %6524 = vmatprep.subr.bf16.mxu1 %v6523_v5  ;;  %v6543_v4 = vpack.c.bf16 %v643_v63, %v642_v32  ;;  %v626_v5 = vld [vmem:[%s11349_s1 + $0x1240] sm:$0xff]  ;;  %v699_v60 = vld [vmem:[%s11349_s1 + $0x1488] sm:$0xff]  ;;  %v6557_v63 = vpack.c.bf16 %v633_v56, %v632_v55  ;;  %v732_v26 = vld [vmem:[%s11349_s1 + $0x1590] sm:$0xff] }
 0x121   :  { %6494 = vmatpush3.bf16.msra.mxu0 %v6493_v13  ;;  %v676_v13 = vld [vmem:[%s11349_s1 + $0x13d0] sm:$0xff]  ;;  %v6591_v1 = vpack.c.bf16 %v699_v60, %v698_v51  ;;  %v733_v12 = vld [vmem:[%s11349_s1 + $0x1598] sm:$0xff]  ;;  %v702_v22 = vld [vmem:[%s11349_s1 + $0x14a0] sm:$0xff] }
 0x122   :  { %6528 = vmatprep.subr.bf16.mxu0 %v6527_v15  ;;  %v6545_v15 = vpack.c.bf16 %v627_v6, %v626_v5  ;;  %v715_v6 = vld [vmem:[%s11349_s1 + $0x1508] sm:$0xff]  ;;  %v6627_v20 = vpack.c.bf16 %v733_v12, %v732_v26  ;;  %v736_v40 = vld [vmem:[%s11349_s1 + $0x15b0] sm:$0xff]  ;;  %v737_v42 = vld [vmem:[%s11349_s1 + $0x15b8] sm:$0xff] }
 0x123   :  { %6526 = vmatpush3.bf16.msra.mxu1 %v6525_v14  ;;  %v677_v14 = vld [vmem:[%s11349_s1 + $0x13d8] sm:$0xff]  ;;  %v703_v24 = vld [vmem:[%s11349_s1 + $0x14a8] sm:$0xff]  ;;  %v722_v51 = vld [vmem:[%s11349_s1 + $0x1540] sm:$0xff] }
 0x124   :  { %6560 = vmatprep.subr.bf16.mxu1 %v6559_v19  ;;  %2924 = vmatmul.mubr.f32.vlgmr.msra.gmra.mrb[16].mxu0 %v8949_v52  ;;  %v622_v52 = vld [vmem:[%s11349_s1 + $0x1220] sm:$0xff]  ;;  %v629_v19 = vld [vmem:[%s11349_s1 + $0x1258] sm:$0xff]  ;;  %v6579_v21 = vpack.c.bf16 %v677_v14, %v676_v13  ;;  %v739_v55 = vld [vmem:[%s11349_s1 + $0x15c8] sm:$0xff] }
 0x125   :  { %6530 = vmatpush3.bf16.msra.mxu0 %v6529_v28  ;;  %3063 = vmatprep.mubr.f32.mxu0 %v1487_v38  ;;  %v6537_v57 = vpack.c.bf16 %v623_v48, %v622_v52  ;;  %v678_v28 = vld [vmem:[%s11349_s1 + $0x13e0] sm:$0xff]  ;;  %v663_v38 = vld [vmem:[%s11349_s1 + $0x1368] sm:$0xff] }
 0x126   :  { %2994 = vmatmul.mubr.f32.vlgmr.msra.gmra.mrb[16].mxu1 %v8958_v39  ;;  %6532 = vmatprep.subr.bf16.mxu0 %v6531_v31  ;;  %v655_v39 = vld [vmem:[%s11349_s1 + $0x1328] sm:$0xff]  ;;  %v6549_v31 = vpack.c.bf16 %v629_v19, %v628_v18  ;;  %v6585_v53 = vpack.c.bf16 %v663_v38, %v662_v35  ;;  %v685_v18 = vld [vmem:[%s11349_s1 + $0x1418] sm:$0xff]  ;;  %v716_v19 = vld [vmem:[%s11349_s1 + $0x1510] sm:$0xff] }
 0x127   :  { %6562 = vmatpush3.bf16.msra.mxu1 %v6561_v29  ;;  %3133 = vmatprep.mubr.f32.mxu1 %v1488_v44  ;;  %v6569_v41 = vpack.c.bf16 %v655_v39, %v654_v49  ;;  %v679_v29 = vld [vmem:[%s11349_s1 + $0x13e8] sm:$0xff]  ;;  %v718_v35 = vld [vmem:[%s11349_s1 + $0x1520] sm:$0xff]  ;;  %v705_v38 = vld [vmem:[%s11349_s1 + $0x14b8] sm:$0xff] }
 0x128   :  { %6564 = vmatprep.subr.bf16.mxu1 %v6563_v34  ;;  %v631_v34 = vld [vmem:[%s11349_s1 + $0x1268] sm:$0xff]  ;;  %v6583_v37 = vpack.c.bf16 %v679_v29, %v678_v28  ;;  %v734_v28 = vld [vmem:[%s11349_s1 + $0x15a0] sm:$0xff] }
 0x129   :  { %6534 = vmatpush3.bf16.msra.mxu0 %v6533_v45  ;;  %v6553_v49 = vpack.c.bf16 %v631_v34, %v630_v43  ;;  %v735_v29 = vld [vmem:[%s11349_s1 + $0x15a8] sm:$0xff]  ;;  %v6599_v43 = vpack.c.bf16 %v703_v24, %v702_v22  ;;  %v710_v26 = vld [vmem:[%s11349_s1 + $0x14e0] sm:$0xff] }
 0x12a   :  { %6536 = vmatprep.subr.bf16.mxu0 %v6535_v47  ;;  %v681_v47 = vld [vmem:[%s11349_s1 + $0x13f8] sm:$0xff]  ;;  %v687_v34 = vld [vmem:[%s11349_s1 + $0x1428] sm:$0xff] }
 0x12b   :  { %6566 = vmatpush3.bf16.msra.mxu1 %v6565_v46  ;;  %v680_v46 = vld [vmem:[%s11349_s1 + $0x13f0] sm:$0xff]  ;;  %v711_v12 = vld [vmem:[%s11349_s1 + $0x14e8] sm:$0xff] }
 0x12c   :  { %6568 = vmatprep.subr.bf16.mxu1 %v6567_v50  ;;  %v32_v50 = vld [vmem:[%s11350_s0 + $0x50] sm:$0xff] }
 0x12d   :  { %6538 = vmatpush3.bf16.msra.mxu0 %v6537_v57  ;;  %v664_v57 = vld [vmem:[%s11349_s1 + $0x1370] sm:$0xff]  ;;  %v1489_v62 = vcombine.high %v32_v50, %v32_v50  ;;  %v9369_v9 = vrot.slane %v32_v50, %v7408_v10  ;;  %v721_v50 = vld [vmem:[%s11349_s1 + $0x1538] sm:$0xff] }
 0x12e   :  { %6540 = vmatprep.subr.bf16.mxu0 %v6539_v58  ;;  %v6587_v58 = vpack.c.bf16 %v681_v47, %v680_v46  ;;  %v6589_v0 = vpack.c.bf16 %v665_v59, %v664_v57  ;;  %v688_v47 = vld [vmem:[%s11349_s1 + $0x1430] sm:$0xff]  ;;  %v691_v59 = vld [vmem:[%s11349_s1 + $0x1448] sm:$0xff] }
 0x12f   :  { %6570 = vmatpush3.bf16.msra.mxu1 %v6569_v41  ;;  %v9378_v13 = vrot.slane %v1489_v62, %v7408_v10  ;;  %v1504_v25 = vcombine.high %v9369_v9, %v9369_v9  ;;  %v709_v62 = vld [vmem:[%s11349_s1 + $0x14d8] sm:$0xff] }
 0x130   :  { %6572 = vmatprep.subr.bf16.mxu1 %v6571_v61  ;;  %v730_v61 = vld [vmem:[%s11349_s1 + $0x1580] sm:$0xff] }
 0x131   :  { %6542 = vmatpush3.bf16.msra.mxu0 %v6541_v2  ;;  %v682_v2 = vld [vmem:[%s11349_s1 + $0x1400] sm:$0xff] }
 0x132   :  { %6544 = vmatprep.subr.bf16.mxu0 %v6543_v4  ;;  %v714_v4 = vld [vmem:[%s11349_s1 + $0x1500] sm:$0xff] }
 0x133   :  { %6574 = vmatpush3.bf16.msra.mxu1 %v6573_v3  ;;  %v683_v3 = vld [vmem:[%s11349_s1 + $0x1408] sm:$0xff] }
 0x134   :  { %6576 = vmatprep.subr.bf16.mxu1 %v6575_v7  ;;  %v701_v7 = vld [vmem:[%s11349_s1 + $0x1498] sm:$0xff]  ;;  %v6593_v14 = vpack.c.bf16 %v683_v3, %v682_v2 }
 0x135   :  { %6546 = vmatpush3.bf16.msra.mxu0 %v6545_v15  ;;  %v6625_v15 = vpack.c.bf16 %v715_v6, %v714_v4  ;;  %v692_v4 = vld [vmem:[%s11349_s1 + $0x1450] sm:$0xff] }
 0x136   :  { %6548 = vmatprep.subr.bf16.mxu0 %v6547_v17  ;;  %v684_v17 = vld [vmem:[%s11349_s1 + $0x1410] sm:$0xff] }
 0x137   :  { %6578 = vmatpush3.bf16.msra.mxu1 %v6577_v16  ;;  %v4748_v36 = vpop.f32.mrb[4].mxu0  ;;  %v6595_v16 = vpack.c.bf16 %v701_v7, %v700_v8  ;;  %v724_v6 = vld [vmem:[%s11349_s1 + $0x1550] sm:$0xff]  ;;  %v725_v7 = vld [vmem:[%s11349_s1 + $0x1558] sm:$0xff] }
 0x138   :  { %6580 = vmatprep.subr.bf16.mxu1 %v6579_v21  ;;  %v4749_v44 = vpop.f32.mrb[5].mxu0  ;;  %v717_v21 = vld [vmem:[%s11349_s1 + $0x1518] sm:$0xff] }
 0x139   :  { %v4783_v45 = vpop.f32.mrb[4].mxu1  ;;  %v4750_v52 = vadd.f32 %v4749_v44, %v4748_v36  ;;  %6550 = vmatpush3.bf16.msra.mxu0 %v6549_v31  ;;  %v1505_v31 = vcombine.high %v9378_v13, %v9378_v13  ;;  %v6631_v36 = vpack.c.bf16 %v735_v29, %v734_v28  ;;  %v712_v28 = vld [vmem:[%s11349_s1 + $0x14f0] sm:$0xff]  ;;  %v713_v29 = vld [vmem:[%s11349_s1 + $0x14f8] sm:$0xff] }
 0x13a   :  { %v4784_v48 = vpop.f32.mrb[5].mxu1  ;;  %6552 = vmatprep.subr.bf16.mxu0 %v6551_v33  ;;  %v6629_v33 = vpack.c.bf16 %v717_v21, %v716_v19  ;;  %v694_v19 = vld [vmem:[%s11349_s1 + $0x1460] sm:$0xff] }
 0x13b   :  { %v4785_v39 = vadd.f32 %v4784_v48, %v4783_v45  ;;  %6582 = vmatpush3.bf16.msra.mxu1 %v6581_v30  ;;  %v2086_v41 = vadd.f32 %v4750_v52, %v9138_v11  ;;  %v731_v11 = vld [vmem:[%s11349_s1 + $0x1588] sm:$0xff]  ;;  %v6597_v30 = vpack.c.bf16 %v685_v18, %v684_v17  ;;  %v689_v52 = vld [vmem:[%s11349_s1 + $0x1438] sm:$0xff]  ;;  %v720_v48 = vld [vmem:[%s11349_s1 + $0x1530] sm:$0xff]  ;;  %v6645_v17 = vpack.c.bf16 %v725_v7, %v724_v6 }
 0x13c   :  { %6584 = vmatprep.subr.bf16.mxu1 %v6583_v37  ;;  %v6623_v5 = vpack.c.bf16 %v731_v11, %v730_v61  ;;  %v704_v37 = vld [vmem:[%s11349_s1 + $0x14b0] sm:$0xff]  ;;  %v6605_v56 = vpack.c.bf16 %v689_v52, %v688_v47  ;;  %v6637_v57 = vpack.c.bf16 %v721_v50, %v720_v48  ;;  %v723_v61 = vld [vmem:[%s11349_s1 + $0x1548] sm:$0xff]  ;;  %v6615_v18 = vpack.c.bf16 %v711_v12, %v710_v26  ;;  %v726_v21 = vld [vmem:[%s11349_s1 + $0x1560] sm:$0xff] }
 0x13d   :  { %v9348_v32 = vadd.f32 %v4785_v39, %v2086_v41  ;;  %6554 = vmatpush3.bf16.msra.mxu0 %v6553_v49  ;;  %v6603_v46 = vpack.c.bf16 %v705_v38, %v704_v37  ;;  %v6635_v49 = vpack.c.bf16 %v737_v42, %v736_v40  ;;  %v706_v39 = vld [vmem:[%s11349_s1 + $0x14c0] sm:$0xff]  ;;  %v708_v11 = vld [vmem:[%s11349_s1 + $0x14d0] sm:$0xff]  ;;  %v6641_v2 = vpack.c.bf16 %v723_v61, %v722_v51  ;;  %v697_v42 = vld [vmem:[%s11349_s1 + $0x1478] sm:$0xff] }
 0x13e   :  { %6556 = vmatprep.subr.bf16.mxu0 %v6555_v54  ;;  %v738_v54 = vld [vmem:[%s11349_s1 + $0x15c0] sm:$0xff]  ;;  %v6611_v3 = vpack.c.bf16 %v709_v62, %v708_v11  ;;  %v6619_v38 = vpack.c.bf16 %v713_v29, %v712_v28  ;;  %v696_v40 = vld [vmem:[%s11349_s1 + $0x1470] sm:$0xff]  ;;  %v729_v47 = vld [vmem:[%s11349_s1 + $0x1578] sm:$0xff] }
 0x13f   :  { %6586 = vmatpush3.bf16.msra.mxu1 %v6585_v53  ;;  %v707_v53 = vld [vmem:[%s11349_s1 + $0x14c8] sm:$0xff]  ;;  %v6639_v60 = vpack.c.bf16 %v739_v55, %v738_v54  ;;  %v762_v52 = vld [vmem:[%s11349_s1 + $0x1680] sm:$0xff]  ;;  %v764_v51 = vld [vmem:[%s11349_s1 + $0x1690] sm:$0xff] }
 0x140   :  { %6588 = vmatprep.subr.bf16.mxu1 %v6587_v58  ;;  %v6607_v41 = vpack.c.bf16 %v707_v53, %v706_v39  ;;  %v690_v58 = vld [vmem:[%s11349_s1 + $0x1440] sm:$0xff]  ;;  %v763_v48 = vld [vmem:[%s11349_s1 + $0x1688] sm:$0xff]  ;;  %v6621_v53 = vpack.c.bf16 %v697_v42, %v696_v40  ;;  %v796_v11 = vld [vmem:[%s11349_s1 + $0x1790] sm:$0xff] }
 0x141   :  { %6558 = vmatpush3.bf16.msra.mxu0 %v6557_v63  ;;  %v740_v63 = vld [vmem:[%s11349_s1 + $0x15d0] sm:$0xff]  ;;  %v6655_v55 = vpack.c.bf16 %v763_v48, %v762_v52  ;;  %v797_v62 = vld [vmem:[%s11349_s1 + $0x1798] sm:$0xff]  ;;  %v766_v7 = vld [vmem:[%s11349_s1 + $0x16a0] sm:$0xff] }
 0x142   :  { %6592 = vmatprep.subr.bf16.mxu0 %v6591_v1  ;;  %v6609_v1 = vpack.c.bf16 %v691_v59, %v690_v58  ;;  %v779_v59 = vld [vmem:[%s11349_s1 + $0x1708] sm:$0xff]  ;;  %v6691_v6 = vpack.c.bf16 %v797_v62, %v796_v11  ;;  %v800_v28 = vld [vmem:[%s11349_s1 + $0x17b0] sm:$0xff]  ;;  %v801_v29 = vld [vmem:[%s11349_s1 + $0x17b8] sm:$0xff] }
 0x143   :  { %6590 = vmatpush3.bf16.msra.mxu1 %v6589_v0  ;;  %v741_v0 = vld [vmem:[%s11349_s1 + $0x15d8] sm:$0xff]  ;;  %v767_v26 = vld [vmem:[%s11349_s1 + $0x16a8] sm:$0xff]  ;;  %v786_v52 = vld [vmem:[%s11349_s1 + $0x1740] sm:$0xff] }
 0x144   :  { %6624 = vmatprep.subr.bf16.mxu1 %v6623_v5  ;;  %3064 = vmatmul.mubr.f32.vlgmr.msra.gmra.mrb[18].mxu0 %v9159_v23  ;;  %v686_v23 = vld [vmem:[%s11349_s1 + $0x1420] sm:$0xff]  ;;  %v693_v5 = vld [vmem:[%s11349_s1 + $0x1458] sm:$0xff]  ;;  %v6643_v8 = vpack.c.bf16 %v741_v0, %v740_v63  ;;  %v803_v40 = vld [vmem:[%s11349_s1 + $0x17c8] sm:$0xff] }
 0x145   :  { %6594 = vmatpush3.bf16.msra.mxu0 %v6593_v14  ;;  %3203 = vmatprep.mubr.f32.mxu0 %v1504_v25  ;;  %v6601_v44 = vpack.c.bf16 %v687_v34, %v686_v23  ;;  %v742_v14 = vld [vmem:[%s11349_s1 + $0x15e0] sm:$0xff]  ;;  %v727_v25 = vld [vmem:[%s11349_s1 + $0x1568] sm:$0xff] }
 0x146   :  { %3134 = vmatmul.mubr.f32.vlgmr.msra.gmra.mrb[18].mxu1 %v9168_v27  ;;  %6596 = vmatprep.subr.bf16.mxu0 %v6595_v16  ;;  %v719_v27 = vld [vmem:[%s11349_s1 + $0x1528] sm:$0xff]  ;;  %v6613_v16 = vpack.c.bf16 %v693_v5, %v692_v4  ;;  %v6649_v37 = vpack.c.bf16 %v727_v25, %v726_v21  ;;  %v749_v4 = vld [vmem:[%s11349_s1 + $0x1618] sm:$0xff]  ;;  %v780_v5 = vld [vmem:[%s11349_s1 + $0x1710] sm:$0xff] }
 0x147   :  { %6626 = vmatpush3.bf16.msra.mxu1 %v6625_v15  ;;  %3273 = vmatprep.mubr.f32.mxu1 %v1505_v31  ;;  %v6633_v45 = vpack.c.bf16 %v719_v27, %v718_v35  ;;  %v743_v15 = vld [vmem:[%s11349_s1 + $0x15e8] sm:$0xff]  ;;  %v782_v21 = vld [vmem:[%s11349_s1 + $0x1720] sm:$0xff]  ;;  %v769_v25 = vld [vmem:[%s11349_s1 + $0x16b8] sm:$0xff] }
 0x148   :  { %6628 = vmatprep.subr.bf16.mxu1 %v6627_v20  ;;  %v695_v20 = vld [vmem:[%s11349_s1 + $0x1468] sm:$0xff]  ;;  %v6647_v24 = vpack.c.bf16 %v743_v15, %v742_v14  ;;  %v798_v14 = vld [vmem:[%s11349_s1 + $0x17a0] sm:$0xff] }
 0x149   :  { %6598 = vmatpush3.bf16.msra.mxu0 %v6597_v30  ;;  %v6617_v35 = vpack.c.bf16 %v695_v20, %v694_v19  ;;  %v799_v15 = vld [vmem:[%s11349_s1 + $0x17a8] sm:$0xff]  ;;  %v6663_v19 = vpack.c.bf16 %v767_v26, %v766_v7  ;;  %v774_v11 = vld [vmem:[%s11349_s1 + $0x16e0] sm:$0xff] }
 0x14a   :  { %6600 = vmatprep.subr.bf16.mxu0 %v6599_v43  ;;  %v745_v43 = vld [vmem:[%s11349_s1 + $0x15f8] sm:$0xff]  ;;  %v751_v20 = vld [vmem:[%s11349_s1 + $0x1628] sm:$0xff] }
 0x14b   :  { %6630 = vmatpush3.bf16.msra.mxu1 %v6629_v33  ;;  %v744_v33 = vld [vmem:[%s11349_s1 + $0x15f0] sm:$0xff]  ;;  %v775_v62 = vld [vmem:[%s11349_s1 + $0x16e8] sm:$0xff] }
 0x14c   :  { %6632 = vmatprep.subr.bf16.mxu1 %v6631_v36  ;;  %v33_v36 = vld [vmem:[%s11350_s0 + $0x58] sm:$0xff] }
 0x14d   :  { %6602 = vmatpush3.bf16.msra.mxu0 %v6601_v44  ;;  %v728_v44 = vld [vmem:[%s11349_s1 + $0x1570] sm:$0xff]  ;;  %v1506_v50 = vcombine.high %v33_v36, %v33_v36  ;;  %v9579_v61 = vrot.slane %v33_v36, %v7408_v10  ;;  %v785_v36 = vld [vmem:[%s11349_s1 + $0x1738] sm:$0xff] }
 0x14e   :  { %6604 = vmatprep.subr.bf16.mxu0 %v6603_v46  ;;  %v6651_v46 = vpack.c.bf16 %v745_v43, %v744_v33  ;;  %v6653_v54 = vpack.c.bf16 %v729_v47, %v728_v44  ;;  %v752_v43 = vld [vmem:[%s11349_s1 + $0x1630] sm:$0xff]  ;;  %v755_v47 = vld [vmem:[%s11349_s1 + $0x1648] sm:$0xff] }
 0x14f   :  { %6634 = vmatpush3.bf16.msra.mxu1 %v6633_v45  ;;  %v9588_v63 = vrot.slane %v1506_v50, %v7408_v10  ;;  %v1521_v12 = vcombine.high %v9579_v61, %v9579_v61  ;;  %v773_v50 = vld [vmem:[%s11349_s1 + $0x16d8] sm:$0xff] }
 0x150   :  { %6636 = vmatprep.subr.bf16.mxu1 %v6635_v49  ;;  %v794_v49 = vld [vmem:[%s11349_s1 + $0x1780] sm:$0xff] }
 0x151   :  { %6606 = vmatpush3.bf16.msra.mxu0 %v6605_v56  ;;  %v746_v56 = vld [vmem:[%s11349_s1 + $0x1600] sm:$0xff] }
 0x152   :  { %6608 = vmatprep.subr.bf16.mxu0 %v6607_v41  ;;  %v778_v41 = vld [vmem:[%s11349_s1 + $0x1700] sm:$0xff] }
 0x153   :  { %6638 = vmatpush3.bf16.msra.mxu1 %v6637_v57  ;;  %v747_v57 = vld [vmem:[%s11349_s1 + $0x1608] sm:$0xff] }
 0x154   :  { %6640 = vmatprep.subr.bf16.mxu1 %v6639_v60  ;;  %v765_v60 = vld [vmem:[%s11349_s1 + $0x1698] sm:$0xff]  ;;  %v6657_v0 = vpack.c.bf16 %v747_v57, %v746_v56 }
 0x155   :  { %6610 = vmatpush3.bf16.msra.mxu0 %v6609_v1  ;;  %v6689_v1 = vpack.c.bf16 %v779_v59, %v778_v41  ;;  %v756_v41 = vld [vmem:[%s11349_s1 + $0x1650] sm:$0xff] }
 0x156   :  { %6612 = vmatprep.subr.bf16.mxu0 %v6611_v3  ;;  %v748_v3 = vld [vmem:[%s11349_s1 + $0x1610] sm:$0xff] }
 0x157   :  { %6642 = vmatpush3.bf16.msra.mxu1 %v6641_v2  ;;  %v4818_v22 = vpop.f32.mrb[6].mxu0  ;;  %v6659_v2 = vpack.c.bf16 %v765_v60, %v764_v51  ;;  %v788_v59 = vld [vmem:[%s11349_s1 + $0x1750] sm:$0xff]  ;;  %v789_v60 = vld [vmem:[%s11349_s1 + $0x1758] sm:$0xff] }
 0x158   :  { %6644 = vmatprep.subr.bf16.mxu1 %v6643_v8  ;;  %v4819_v31 = vpop.f32.mrb[7].mxu0  ;;  %v781_v8 = vld [vmem:[%s11349_s1 + $0x1718] sm:$0xff] }
 0x159   :  { %v4853_v30 = vpop.f32.mrb[6].mxu1  ;;  %v4820_v23 = vadd.f32 %v4819_v31, %v4818_v22  ;;  %6614 = vmatpush3.bf16.msra.mxu0 %v6613_v16  ;;  %v1522_v16 = vcombine.high %v9588_v63, %v9588_v63  ;;  %v6695_v22 = vpack.c.bf16 %v799_v15, %v798_v14  ;;  %v776_v14 = vld [vmem:[%s11349_s1 + $0x16f0] sm:$0xff]  ;;  %v777_v15 = vld [vmem:[%s11349_s1 + $0x16f8] sm:$0xff] }
 0x15a   :  { %v4854_v34 = vpop.f32.mrb[7].mxu1  ;;  %6616 = vmatprep.subr.bf16.mxu0 %v6615_v18  ;;  %v6693_v18 = vpack.c.bf16 %v781_v8, %v780_v5  ;;  %v758_v5 = vld [vmem:[%s11349_s1 + $0x1660] sm:$0xff] }
 0x15b   :  { %v4855_v27 = vadd.f32 %v4854_v34, %v4853_v30  ;;  %6646 = vmatpush3.bf16.msra.mxu1 %v6645_v17  ;;  %v2226_v45 = vadd.f32 %v4820_v23, %v9348_v32  ;;  %v795_v32 = vld [vmem:[%s11349_s1 + $0x1788] sm:$0xff]  ;;  %v6661_v17 = vpack.c.bf16 %v749_v4, %v748_v3  ;;  %v753_v23 = vld [vmem:[%s11349_s1 + $0x1638] sm:$0xff]  ;;  %v784_v34 = vld [vmem:[%s11349_s1 + $0x1730] sm:$0xff]  ;;  %v6709_v3 = vpack.c.bf16 %v789_v60, %v788_v59 }
 0x15c   :  { %6648 = vmatprep.subr.bf16.mxu1 %v6647_v24  ;;  %v6687_v58 = vpack.c.bf16 %v795_v32, %v794_v49  ;;  %v768_v24 = vld [vmem:[%s11349_s1 + $0x16b0] sm:$0xff]  ;;  %v6669_v42 = vpack.c.bf16 %v753_v23, %v752_v43  ;;  %v6701_v44 = vpack.c.bf16 %v785_v36, %v784_v34  ;;  %v787_v49 = vld [vmem:[%s11349_s1 + $0x1748] sm:$0xff]  ;;  %v6679_v4 = vpack.c.bf16 %v775_v62, %v774_v11  ;;  %v790_v8 = vld [vmem:[%s11349_s1 + $0x1760] sm:$0xff] }
 0x15d   :  { %v9558_v39 = vadd.f32 %v4855_v27, %v2226_v45  ;;  %6618 = vmatpush3.bf16.msra.mxu0 %v6617_v35  ;;  %v6667_v33 = vpack.c.bf16 %v769_v25, %v768_v24  ;;  %v6699_v35 = vpack.c.bf16 %v801_v29, %v800_v28  ;;  %v770_v27 = vld [vmem:[%s11349_s1 + $0x16c0] sm:$0xff]  ;;  %v772_v32 = vld [vmem:[%s11349_s1 + $0x16d0] sm:$0xff]  ;;  %v6705_v56 = vpack.c.bf16 %v787_v49, %v786_v52  ;;  %v761_v29 = vld [vmem:[%s11349_s1 + $0x1678] sm:$0xff] }
 0x15e   :  { %6620 = vmatprep.subr.bf16.mxu0 %v6619_v38  ;;  %v802_v38 = vld [vmem:[%s11349_s1 + $0x17c0] sm:$0xff]  ;;  %v6675_v57 = vpack.c.bf16 %v773_v50, %v772_v32  ;;  %v6683_v25 = vpack.c.bf16 %v777_v15, %v776_v14  ;;  %v760_v28 = vld [vmem:[%s11349_s1 + $0x1670] sm:$0xff]  ;;  %v793_v43 = vld [vmem:[%s11349_s1 + $0x1778] sm:$0xff] }
 0x15f   :  { %6650 = vmatpush3.bf16.msra.mxu1 %v6649_v37  ;;  %v771_v37 = vld [vmem:[%s11349_s1 + $0x16c8] sm:$0xff]  ;;  %v6703_v48 = vpack.c.bf16 %v803_v40, %v802_v38  ;;  %v826_v23 = vld [vmem:[%s11349_s1 + $0x1880] sm:$0xff]  ;;  %v828_v52 = vld [vmem:[%s11349_s1 + $0x1890] sm:$0xff] }
 0x160   :  { %6652 = vmatprep.subr.bf16.mxu1 %v6651_v46  ;;  %v6671_v45 = vpack.c.bf16 %v771_v37, %v770_v27  ;;  %v754_v46 = vld [vmem:[%s11349_s1 + $0x1640] sm:$0xff]  ;;  %v827_v34 = vld [vmem:[%s11349_s1 + $0x1888] sm:$0xff]  ;;  %v6685_v37 = vpack.c.bf16 %v761_v29, %v760_v28  ;;  %v860_v32 = vld [vmem:[%s11349_s1 + $0x1990] sm:$0xff] }
 0x161   :  { %6622 = vmatpush3.bf16.msra.mxu0 %v6621_v53  ;;  %v804_v53 = vld [vmem:[%s11349_s1 + $0x17d0] sm:$0xff]  ;;  %v6719_v40 = vpack.c.bf16 %v827_v34, %v826_v23  ;;  %v861_v50 = vld [vmem:[%s11349_s1 + $0x1998] sm:$0xff]  ;;  %v830_v60 = vld [vmem:[%s11349_s1 + $0x18a0] sm:$0xff] }
 0x162   :  { %6656 = vmatprep.subr.bf16.mxu0 %v6655_v55  ;;  %v6673_v55 = vpack.c.bf16 %v755_v47, %v754_v46  ;;  %v843_v47 = vld [vmem:[%s11349_s1 + $0x1908] sm:$0xff]  ;;  %v6755_v59 = vpack.c.bf16 %v861_v50, %v860_v32  ;;  %v864_v14 = vld [vmem:[%s11349_s1 + $0x19b0] sm:$0xff]  ;;  %v865_v15 = vld [vmem:[%s11349_s1 + $0x19b8] sm:$0xff] }
 0x163   :  { %6654 = vmatpush3.bf16.msra.mxu1 %v6653_v54  ;;  %v805_v54 = vld [vmem:[%s11349_s1 + $0x17d8] sm:$0xff]  ;;  %v831_v11 = vld [vmem:[%s11349_s1 + $0x18a8] sm:$0xff]  ;;  %v850_v23 = vld [vmem:[%s11349_s1 + $0x1940] sm:$0xff] }
 0x164   :  { %6688 = vmatprep.subr.bf16.mxu1 %v6687_v58  ;;  %3204 = vmatmul.mubr.f32.vlgmr.msra.gmra.mrb[20].mxu0 %v9369_v9  ;;  %v750_v9 = vld [vmem:[%s11349_s1 + $0x1620] sm:$0xff]  ;;  %v757_v58 = vld [vmem:[%s11349_s1 + $0x1658] sm:$0xff]  ;;  %v6707_v51 = vpack.c.bf16 %v805_v54, %v804_v53  ;;  %v867_v28 = vld [vmem:[%s11349_s1 + $0x19c8] sm:$0xff] }
 0x165   :  { %6658 = vmatpush3.bf16.msra.mxu0 %v6657_v0  ;;  %3343 = vmatprep.mubr.f32.mxu0 %v1521_v12  ;;  %v6665_v31 = vpack.c.bf16 %v751_v20, %v750_v9  ;;  %v806_v0 = vld [vmem:[%s11349_s1 + $0x17e0] sm:$0xff]  ;;  %v791_v12 = vld [vmem:[%s11349_s1 + $0x1768] sm:$0xff] }
 0x166   :  { %3274 = vmatmul.mubr.f32.vlgmr.msra.gmra.mrb[20].mxu1 %v9378_v13  ;;  %6660 = vmatprep.subr.bf16.mxu0 %v6659_v2  ;;  %v783_v13 = vld [vmem:[%s11349_s1 + $0x1728] sm:$0xff]  ;;  %v6677_v2 = vpack.c.bf16 %v757_v58, %v756_v41  ;;  %v6713_v24 = vpack.c.bf16 %v791_v12, %v790_v8  ;;  %v813_v41 = vld [vmem:[%s11349_s1 + $0x1818] sm:$0xff]  ;;  %v844_v58 = vld [vmem:[%s11349_s1 + $0x1910] sm:$0xff] }
 0x167   :  { %6690 = vmatpush3.bf16.msra.mxu1 %v6689_v1  ;;  %3413 = vmatprep.mubr.f32.mxu1 %v1522_v16  ;;  %v6697_v30 = vpack.c.bf16 %v783_v13, %v782_v21  ;;  %v807_v1 = vld [vmem:[%s11349_s1 + $0x17e8] sm:$0xff]  ;;  %v846_v8 = vld [vmem:[%s11349_s1 + $0x1920] sm:$0xff]  ;;  %v833_v12 = vld [vmem:[%s11349_s1 + $0x18b8] sm:$0xff] }
 0x168   :  { %6692 = vmatprep.subr.bf16.mxu1 %v6691_v6  ;;  %v759_v6 = vld [vmem:[%s11349_s1 + $0x1668] sm:$0xff]  ;;  %v6711_v26 = vpack.c.bf16 %v807_v1, %v806_v0  ;;  %v862_v0 = vld [vmem:[%s11349_s1 + $0x19a0] sm:$0xff] }
 0x169   :  { %6662 = vmatpush3.bf16.msra.mxu0 %v6661_v17  ;;  %v6681_v21 = vpack.c.bf16 %v759_v6, %v758_v5  ;;  %v863_v1 = vld [vmem:[%s11349_s1 + $0x19a8] sm:$0xff]  ;;  %v6727_v5 = vpack.c.bf16 %v831_v11, %v830_v60  ;;  %v838_v32 = vld [vmem:[%s11349_s1 + $0x18e0] sm:$0xff] }
 0x16a   :  { %6664 = vmatprep.subr.bf16.mxu0 %v6663_v19  ;;  %v809_v19 = vld [vmem:[%s11349_s1 + $0x17f8] sm:$0xff]  ;;  %v815_v6 = vld [vmem:[%s11349_s1 + $0x1828] sm:$0xff] }
 0x16b   :  { %6694 = vmatpush3.bf16.msra.mxu1 %v6693_v18  ;;  %v808_v18 = vld [vmem:[%s11349_s1 + $0x17f0] sm:$0xff]  ;;  %v839_v50 = vld [vmem:[%s11349_s1 + $0x18e8] sm:$0xff] }
 0x16c   :  { %6696 = vmatprep.subr.bf16.mxu1 %v6695_v22  ;;  %v34_v22 = vld [vmem:[%s11350_s0 + $0x60] sm:$0xff] }
 0x16d   :  { %6666 = vmatpush3.bf16.msra.mxu0 %v6665_v31  ;;  %v792_v31 = vld [vmem:[%s11349_s1 + $0x1770] sm:$0xff]  ;;  %v1523_v36 = vcombine.high %v34_v22, %v34_v22  ;;  %v9789_v49 = vrot.slane %v34_v22, %v7408_v10  ;;  %v849_v22 = vld [vmem:[%s11349_s1 + $0x1938] sm:$0xff] }
 0x16e   :  { %6668 = vmatprep.subr.bf16.mxu0 %v6667_v33  ;;  %v6715_v33 = vpack.c.bf16 %v809_v19, %v808_v18  ;;  %v6717_v38 = vpack.c.bf16 %v793_v43, %v792_v31  ;;  %v816_v19 = vld [vmem:[%s11349_s1 + $0x1830] sm:$0xff]  ;;  %v819_v43 = vld [vmem:[%s11349_s1 + $0x1848] sm:$0xff] }
 0x16f   :  { %6698 = vmatpush3.bf16.msra.mxu1 %v6697_v30  ;;  %v9798_v53 = vrot.slane %v1523_v36, %v7408_v10  ;;  %v1538_v62 = vcombine.high %v9789_v49, %v9789_v49  ;;  %v837_v36 = vld [vmem:[%s11349_s1 + $0x18d8] sm:$0xff] }
 0x170   :  { %6700 = vmatprep.subr.bf16.mxu1 %v6699_v35  ;;  %v858_v35 = vld [vmem:[%s11349_s1 + $0x1980] sm:$0xff] }
 0x171   :  { %6670 = vmatpush3.bf16.msra.mxu0 %v6669_v42  ;;  %v810_v42 = vld [vmem:[%s11349_s1 + $0x1800] sm:$0xff] }
 0x172   :  { %6672 = vmatprep.subr.bf16.mxu0 %v6671_v45  ;;  %v842_v45 = vld [vmem:[%s11349_s1 + $0x1900] sm:$0xff] }
 0x173   :  { %6702 = vmatpush3.bf16.msra.mxu1 %v6701_v44  ;;  %v811_v44 = vld [vmem:[%s11349_s1 + $0x1808] sm:$0xff] }
 0x174   :  { %6704 = vmatprep.subr.bf16.mxu1 %v6703_v48  ;;  %v829_v48 = vld [vmem:[%s11349_s1 + $0x1898] sm:$0xff]  ;;  %v6721_v54 = vpack.c.bf16 %v811_v44, %v810_v42 }
 0x175   :  { %6674 = vmatpush3.bf16.msra.mxu0 %v6673_v55  ;;  %v6753_v55 = vpack.c.bf16 %v843_v47, %v842_v45  ;;  %v820_v45 = vld [vmem:[%s11349_s1 + $0x1850] sm:$0xff] }
 0x176   :  { %6676 = vmatprep.subr.bf16.mxu0 %v6675_v57  ;;  %v812_v57 = vld [vmem:[%s11349_s1 + $0x1810] sm:$0xff] }
 0x177   :  { %6706 = vmatpush3.bf16.msra.mxu1 %v6705_v56  ;;  %v4888_v7 = vpop.f32.mrb[8].mxu0  ;;  %v6723_v56 = vpack.c.bf16 %v829_v48, %v828_v52  ;;  %v852_v47 = vld [vmem:[%s11349_s1 + $0x1950] sm:$0xff]  ;;  %v853_v48 = vld [vmem:[%s11349_s1 + $0x1958] sm:$0xff] }
 0x178   :  { %6708 = vmatprep.subr.bf16.mxu1 %v6707_v51  ;;  %v4889_v16 = vpop.f32.mrb[9].mxu0  ;;  %v845_v51 = vld [vmem:[%s11349_s1 + $0x1918] sm:$0xff] }
 0x179   :  { %v4923_v17 = vpop.f32.mrb[8].mxu1  ;;  %v4890_v9 = vadd.f32 %v4889_v16, %v4888_v7  ;;  %6678 = vmatpush3.bf16.msra.mxu0 %v6677_v2  ;;  %v1539_v2 = vcombine.high %v9798_v53, %v9798_v53  ;;  %v6759_v7 = vpack.c.bf16 %v863_v1, %v862_v0  ;;  %v840_v0 = vld [vmem:[%s11349_s1 + $0x18f0] sm:$0xff]  ;;  %v841_v1 = vld [vmem:[%s11349_s1 + $0x18f8] sm:$0xff] }
 0x17a   :  { %v4924_v20 = vpop.f32.mrb[9].mxu1  ;;  %6680 = vmatprep.subr.bf16.mxu0 %v6679_v4  ;;  %v6757_v4 = vpack.c.bf16 %v845_v51, %v844_v58  ;;  %v822_v58 = vld [vmem:[%s11349_s1 + $0x1860] sm:$0xff] }
 0x17b   :  { %v4925_v13 = vadd.f32 %v4924_v20, %v4923_v17  ;;  %6710 = vmatpush3.bf16.msra.mxu1 %v6709_v3  ;;  %v2366_v30 = vadd.f32 %v4890_v9, %v9558_v39  ;;  %v859_v39 = vld [vmem:[%s11349_s1 + $0x1988] sm:$0xff]  ;;  %v6725_v3 = vpack.c.bf16 %v813_v41, %v812_v57  ;;  %v817_v9 = vld [vmem:[%s11349_s1 + $0x1838] sm:$0xff]  ;;  %v848_v20 = vld [vmem:[%s11349_s1 + $0x1930] sm:$0xff]  ;;  %v6773_v57 = vpack.c.bf16 %v853_v48, %v852_v47 }
 0x17c   :  { %6712 = vmatprep.subr.bf16.mxu1 %v6711_v26  ;;  %v6751_v46 = vpack.c.bf16 %v859_v39, %v858_v35  ;;  %v832_v26 = vld [vmem:[%s11349_s1 + $0x18b0] sm:$0xff]  ;;  %v6733_v29 = vpack.c.bf16 %v817_v9, %v816_v19  ;;  %v6765_v31 = vpack.c.bf16 %v849_v22, %v848_v20  ;;  %v851_v35 = vld [vmem:[%s11349_s1 + $0x1948] sm:$0xff]  ;;  %v6743_v41 = vpack.c.bf16 %v839_v50, %v838_v32  ;;  %v854_v51 = vld [vmem:[%s11349_s1 + $0x1960] sm:$0xff] }
 0x17d   :  { %v9768_v27 = vadd.f32 %v4925_v13, %v2366_v30  ;;  %6682 = vmatpush3.bf16.msra.mxu0 %v6681_v21  ;;  %v6731_v18 = vpack.c.bf16 %v833_v12, %v832_v26  ;;  %v6763_v21 = vpack.c.bf16 %v865_v15, %v864_v14  ;;  %v834_v13 = vld [vmem:[%s11349_s1 + $0x18c0] sm:$0xff]  ;;  %v836_v39 = vld [vmem:[%s11349_s1 + $0x18d0] sm:$0xff]  ;;  %v6769_v42 = vpack.c.bf16 %v851_v35, %v850_v23  ;;  %v825_v15 = vld [vmem:[%s11349_s1 + $0x1878] sm:$0xff] }
 0x17e   :  { %6684 = vmatprep.subr.bf16.mxu0 %v6683_v25  ;;  %v866_v25 = vld [vmem:[%s11349_s1 + $0x19c0] sm:$0xff]  ;;  %v6739_v44 = vpack.c.bf16 %v837_v36, %v836_v39  ;;  %v6747_v12 = vpack.c.bf16 %v841_v1, %v840_v0  ;;  %v824_v14 = vld [vmem:[%s11349_s1 + $0x1870] sm:$0xff]  ;;  %v857_v19 = vld [vmem:[%s11349_s1 + $0x1978] sm:$0xff] }
 0x17f   :  { %6714 = vmatpush3.bf16.msra.mxu1 %v6713_v24  ;;  %v835_v24 = vld [vmem:[%s11349_s1 + $0x18c8] sm:$0xff]  ;;  %v6767_v34 = vpack.c.bf16 %v867_v28, %v866_v25  ;;  %v890_v9 = vld [vmem:[%s11349_s1 + $0x1a80] sm:$0xff]  ;;  %v892_v23 = vld [vmem:[%s11349_s1 + $0x1a90] sm:$0xff] }
 0x180   :  { %6716 = vmatprep.subr.bf16.mxu1 %v6715_v33  ;;  %v6735_v30 = vpack.c.bf16 %v835_v24, %v834_v13  ;;  %v818_v33 = vld [vmem:[%s11349_s1 + $0x1840] sm:$0xff]  ;;  %v891_v20 = vld [vmem:[%s11349_s1 + $0x1a88] sm:$0xff]  ;;  %v6749_v24 = vpack.c.bf16 %v825_v15, %v824_v14  ;;  %v924_v39 = vld [vmem:[%s11349_s1 + $0x1b90] sm:$0xff] }
 0x181   :  { %6686 = vmatpush3.bf16.msra.mxu0 %v6685_v37  ;;  %v868_v37 = vld [vmem:[%s11349_s1 + $0x19d0] sm:$0xff]  ;;  %v6783_v28 = vpack.c.bf16 %v891_v20, %v890_v9  ;;  %v925_v36 = vld [vmem:[%s11349_s1 + $0x1b98] sm:$0xff]  ;;  %v894_v48 = vld [vmem:[%s11349_s1 + $0x1aa0] sm:$0xff] }
 0x182   :  { %6720 = vmatprep.subr.bf16.mxu0 %v6719_v40  ;;  %v6737_v40 = vpack.c.bf16 %v819_v43, %v818_v33  ;;  %v907_v43 = vld [vmem:[%s11349_s1 + $0x1b08] sm:$0xff]  ;;  %v6819_v47 = vpack.c.bf16 %v925_v36, %v924_v39  ;;  %v928_v0 = vld [vmem:[%s11349_s1 + $0x1bb0] sm:$0xff]  ;;  %v929_v1 = vld [vmem:[%s11349_s1 + $0x1bb8] sm:$0xff] }
 0x183   :  { %6718 = vmatpush3.bf16.msra.mxu1 %v6717_v38  ;;  %v869_v38 = vld [vmem:[%s11349_s1 + $0x19d8] sm:$0xff]  ;;  %v895_v32 = vld [vmem:[%s11349_s1 + $0x1aa8] sm:$0xff]  ;;  %v914_v9 = vld [vmem:[%s11349_s1 + $0x1b40] sm:$0xff] }
 0x184   :  { %6752 = vmatprep.subr.bf16.mxu1 %v6751_v46  ;;  %3344 = vmatmul.mubr.f32.vlgmr.msra.gmra.mrb[22].mxu0 %v9579_v61  ;;  %v814_v61 = vld [vmem:[%s11349_s1 + $0x1820] sm:$0xff]  ;;  %v821_v46 = vld [vmem:[%s11349_s1 + $0x1858] sm:$0xff]  ;;  %v6771_v52 = vpack.c.bf16 %v869_v38, %v868_v37  ;;  %v931_v14 = vld [vmem:[%s11349_s1 + $0x1bc8] sm:$0xff] }
 0x185   :  { %6722 = vmatpush3.bf16.msra.mxu0 %v6721_v54  ;;  %3483 = vmatprep.mubr.f32.mxu0 %v1538_v62  ;;  %v6729_v16 = vpack.c.bf16 %v815_v6, %v814_v61  ;;  %v870_v54 = vld [vmem:[%s11349_s1 + $0x19e0] sm:$0xff]  ;;  %v855_v62 = vld [vmem:[%s11349_s1 + $0x1968] sm:$0xff] }
 0x186   :  { %3414 = vmatmul.mubr.f32.vlgmr.msra.gmra.mrb[22].mxu1 %v9588_v63  ;;  %6724 = vmatprep.subr.bf16.mxu0 %v6723_v56  ;;  %v847_v63 = vld [vmem:[%s11349_s1 + $0x1928] sm:$0xff]  ;;  %v6741_v56 = vpack.c.bf16 %v821_v46, %v820_v45  ;;  %v6777_v26 = vpack.c.bf16 %v855_v62, %v854_v51  ;;  %v877_v45 = vld [vmem:[%s11349_s1 + $0x1a18] sm:$0xff]  ;;  %v908_v46 = vld [vmem:[%s11349_s1 + $0x1b10] sm:$0xff] }
 0x187   :  { %6754 = vmatpush3.bf16.msra.mxu1 %v6753_v55  ;;  %3553 = vmatprep.mubr.f32.mxu1 %v1539_v2  ;;  %v6761_v17 = vpack.c.bf16 %v847_v63, %v846_v8  ;;  %v871_v55 = vld [vmem:[%s11349_s1 + $0x19e8] sm:$0xff]  ;;  %v910_v51 = vld [vmem:[%s11349_s1 + $0x1b20] sm:$0xff]  ;;  %v897_v62 = vld [vmem:[%s11349_s1 + $0x1ab8] sm:$0xff] }
 0x188   :  { %6756 = vmatprep.subr.bf16.mxu1 %v6755_v59  ;;  %v823_v59 = vld [vmem:[%s11349_s1 + $0x1868] sm:$0xff]  ;;  %v6775_v11 = vpack.c.bf16 %v871_v55, %v870_v54  ;;  %v926_v54 = vld [vmem:[%s11349_s1 + $0x1ba0] sm:$0xff] }
 0x189   :  { %6726 = vmatpush3.bf16.msra.mxu0 %v6725_v3  ;;  %v6745_v8 = vpack.c.bf16 %v823_v59, %v822_v58  ;;  %v927_v55 = vld [vmem:[%s11349_s1 + $0x1ba8] sm:$0xff]  ;;  %v6791_v58 = vpack.c.bf16 %v895_v32, %v894_v48  ;;  %v902_v39 = vld [vmem:[%s11349_s1 + $0x1ae0] sm:$0xff] }
 0x18a   :  { %6728 = vmatprep.subr.bf16.mxu0 %v6727_v5  ;;  %v873_v5 = vld [vmem:[%s11349_s1 + $0x19f8] sm:$0xff]  ;;  %v879_v59 = vld [vmem:[%s11349_s1 + $0x1a28] sm:$0xff] }
 0x18b   :  { %6758 = vmatpush3.bf16.msra.mxu1 %v6757_v4  ;;  %v872_v4 = vld [vmem:[%s11349_s1 + $0x19f0] sm:$0xff]  ;;  %v903_v36 = vld [vmem:[%s11349_s1 + $0x1ae8] sm:$0xff] }
 0x18c   :  { %6760 = vmatprep.subr.bf16.mxu1 %v6759_v7  ;;  %v35_v7 = vld [vmem:[%s11350_s0 + $0x68] sm:$0xff] }
 0x18d   :  { %6730 = vmatpush3.bf16.msra.mxu0 %v6729_v16  ;;  %v856_v16 = vld [vmem:[%s11349_s1 + $0x1970] sm:$0xff]  ;;  %v1540_v22 = vcombine.high %v35_v7, %v35_v7  ;;  %v9999_v35 = vrot.slane %v35_v7, %v7408_v10  ;;  %v913_v7 = vld [vmem:[%s11349_s1 + $0x1b38] sm:$0xff] }
 0x18e   :  { %6732 = vmatprep.subr.bf16.mxu0 %v6731_v18  ;;  %v6779_v18 = vpack.c.bf16 %v873_v5, %v872_v4  ;;  %v6781_v25 = vpack.c.bf16 %v857_v19, %v856_v16  ;;  %v880_v5 = vld [vmem:[%s11349_s1 + $0x1a30] sm:$0xff]  ;;  %v883_v19 = vld [vmem:[%s11349_s1 + $0x1a48] sm:$0xff] }
 0x18f   :  { %6762 = vmatpush3.bf16.msra.mxu1 %v6761_v17  ;;  %v10008_v37 = vrot.slane %v1540_v22, %v7408_v10  ;;  %v1555_v50 = vcombine.high %v9999_v35, %v9999_v35  ;;  %v901_v22 = vld [vmem:[%s11349_s1 + $0x1ad8] sm:$0xff] }
 0x190   :  { %6764 = vmatprep.subr.bf16.mxu1 %v6763_v21  ;;  %v922_v21 = vld [vmem:[%s11349_s1 + $0x1b80] sm:$0xff] }
 0x191   :  { %6734 = vmatpush3.bf16.msra.mxu0 %v6733_v29  ;;  %v874_v29 = vld [vmem:[%s11349_s1 + $0x1a00] sm:$0xff] }
 0x192   :  { %6736 = vmatprep.subr.bf16.mxu0 %v6735_v30  ;;  %v906_v30 = vld [vmem:[%s11349_s1 + $0x1b00] sm:$0xff] }
 0x193   :  { %6766 = vmatpush3.bf16.msra.mxu1 %v6765_v31  ;;  %v875_v31 = vld [vmem:[%s11349_s1 + $0x1a08] sm:$0xff] }
 0x194   :  { %6768 = vmatprep.subr.bf16.mxu1 %v6767_v34  ;;  %v893_v34 = vld [vmem:[%s11349_s1 + $0x1a98] sm:$0xff]  ;;  %v6785_v38 = vpack.c.bf16 %v875_v31, %v874_v29 }
 0x195   :  { %6738 = vmatpush3.bf16.msra.mxu0 %v6737_v40  ;;  %v6817_v40 = vpack.c.bf16 %v907_v43, %v906_v30  ;;  %v884_v30 = vld [vmem:[%s11349_s1 + $0x1a50] sm:$0xff] }
 0x196   :  { %6740 = vmatprep.subr.bf16.mxu0 %v6739_v44  ;;  %v876_v44 = vld [vmem:[%s11349_s1 + $0x1a10] sm:$0xff] }
 0x197   :  { %6770 = vmatpush3.bf16.msra.mxu1 %v6769_v42  ;;  %v4958_v60 = vpop.f32.mrb[10].mxu0  ;;  %v6787_v42 = vpack.c.bf16 %v893_v34, %v892_v23  ;;  %v916_v43 = vld [vmem:[%s11349_s1 + $0x1b50] sm:$0xff]  ;;  %v917_v34 = vld [vmem:[%s11349_s1 + $0x1b58] sm:$0xff] }
 0x198   :  { %6772 = vmatprep.subr.bf16.mxu1 %v6771_v52  ;;  %v4959_v2 = vpop.f32.mrb[11].mxu0  ;;  %v909_v52 = vld [vmem:[%s11349_s1 + $0x1b18] sm:$0xff] }
 0x199   :  { %v4993_v3 = vpop.f32.mrb[10].mxu1  ;;  %v4960_v61 = vadd.f32 %v4959_v2, %v4958_v60  ;;  %6742 = vmatpush3.bf16.msra.mxu0 %v6741_v56  ;;  %v1556_v56 = vcombine.high %v10008_v37, %v10008_v37  ;;  %v6823_v60 = vpack.c.bf16 %v927_v55, %v926_v54  ;;  %v904_v54 = vld [vmem:[%s11349_s1 + $0x1af0] sm:$0xff]  ;;  %v905_v55 = vld [vmem:[%s11349_s1 + $0x1af8] sm:$0xff] }
 0x19a   :  { %v4994_v6 = vpop.f32.mrb[11].mxu1  ;;  %6744 = vmatprep.subr.bf16.mxu0 %v6743_v41  ;;  %v6821_v41 = vpack.c.bf16 %v909_v52, %v908_v46  ;;  %v886_v46 = vld [vmem:[%s11349_s1 + $0x1a60] sm:$0xff] }
 0x19b   :  { %v4995_v63 = vadd.f32 %v4994_v6, %v4993_v3  ;;  %6774 = vmatpush3.bf16.msra.mxu1 %v6773_v57  ;;  %v2506_v17 = vadd.f32 %v4960_v61, %v9768_v27  ;;  %v923_v27 = vld [vmem:[%s11349_s1 + $0x1b88] sm:$0xff]  ;;  %v6789_v57 = vpack.c.bf16 %v877_v45, %v876_v44  ;;  %v881_v61 = vld [vmem:[%s11349_s1 + $0x1a38] sm:$0xff]  ;;  %v912_v6 = vld [vmem:[%s11349_s1 + $0x1b30] sm:$0xff]  ;;  %v6837_v44 = vpack.c.bf16 %v917_v34, %v916_v43 }
 0x19c   :  { %6776 = vmatprep.subr.bf16.mxu1 %v6775_v11  ;;  %v6815_v33 = vpack.c.bf16 %v923_v27, %v922_v21  ;;  %v896_v11 = vld [vmem:[%s11349_s1 + $0x1ab0] sm:$0xff]  ;;  %v6797_v15 = vpack.c.bf16 %v881_v61, %v880_v5  ;;  %v6829_v16 = vpack.c.bf16 %v913_v7, %v912_v6  ;;  %v915_v21 = vld [vmem:[%s11349_s1 + $0x1b48] sm:$0xff]  ;;  %v6807_v45 = vpack.c.bf16 %v903_v36, %v902_v39  ;;  %v918_v52 = vld [vmem:[%s11349_s1 + $0x1b60] sm:$0xff] }
 0x19d   :  { %v9978_v13 = vadd.f32 %v4995_v63, %v2506_v17  ;;  %6746 = vmatpush3.bf16.msra.mxu0 %v6745_v8  ;;  %v6795_v4 = vpack.c.bf16 %v897_v62, %v896_v11  ;;  %v6827_v8 = vpack.c.bf16 %v929_v1, %v928_v0  ;;  %v898_v63 = vld [vmem:[%s11349_s1 + $0x1ac0] sm:$0xff]  ;;  %v900_v27 = vld [vmem:[%s11349_s1 + $0x1ad0] sm:$0xff]  ;;  %v6833_v29 = vpack.c.bf16 %v915_v21, %v914_v9  ;;  %v889_v1 = vld [vmem:[%s11349_s1 + $0x1a78] sm:$0xff] }
 0x19e   :  { %6748 = vmatprep.subr.bf16.mxu0 %v6747_v12  ;;  %v930_v12 = vld [vmem:[%s11349_s1 + $0x1bc0] sm:$0xff]  ;;  %v6803_v31 = vpack.c.bf16 %v901_v22, %v900_v27  ;;  %v6811_v62 = vpack.c.bf16 %v905_v55, %v904_v54  ;;  %v888_v0 = vld [vmem:[%s11349_s1 + $0x1a70] sm:$0xff]  ;;  %v921_v5 = vld [vmem:[%s11349_s1 + $0x1b78] sm:$0xff] }
 0x19f   :  { %6778 = vmatpush3.bf16.msra.mxu1 %v6777_v26  ;;  %v899_v26 = vld [vmem:[%s11349_s1 + $0x1ac8] sm:$0xff]  ;;  %v6831_v20 = vpack.c.bf16 %v931_v14, %v930_v12  ;;  %v954_v61 = vld [vmem:[%s11349_s1 + $0x1c80] sm:$0xff]  ;;  %v956_v9 = vld [vmem:[%s11349_s1 + $0x1c90] sm:$0xff] }
 0x1a0   :  { %6780 = vmatprep.subr.bf16.mxu1 %v6779_v18  ;;  %v6799_v17 = vpack.c.bf16 %v899_v26, %v898_v63  ;;  %v882_v18 = vld [vmem:[%s11349_s1 + $0x1a40] sm:$0xff]  ;;  %v955_v6 = vld [vmem:[%s11349_s1 + $0x1c88] sm:$0xff]  ;;  %v6813_v26 = vpack.c.bf16 %v889_v1, %v888_v0  ;;  %v988_v27 = vld [vmem:[%s11349_s1 + $0x1d90] sm:$0xff] }
 0x1a1   :  { %6750 = vmatpush3.bf16.msra.mxu0 %v6749_v24  ;;  %v932_v24 = vld [vmem:[%s11349_s1 + $0x1bd0] sm:$0xff]  ;;  %v6847_v14 = vpack.c.bf16 %v955_v6, %v954_v61  ;;  %v989_v22 = vld [vmem:[%s11349_s1 + $0x1d98] sm:$0xff]  ;;  %v958_v34 = vld [vmem:[%s11349_s1 + $0x1ca0] sm:$0xff] }
 0x1a2   :  { %6784 = vmatprep.subr.bf16.mxu0 %v6783_v28  ;;  %v6801_v28 = vpack.c.bf16 %v883_v19, %v882_v18  ;;  %v971_v19 = vld [vmem:[%s11349_s1 + $0x1d08] sm:$0xff]  ;;  %v6883_v43 = vpack.c.bf16 %v989_v22, %v988_v27  ;;  %v992_v54 = vld [vmem:[%s11349_s1 + $0x1db0] sm:$0xff]  ;;  %v993_v55 = vld [vmem:[%s11349_s1 + $0x1db8] sm:$0xff] }
 0x1a3   :  { %6782 = vmatpush3.bf16.msra.mxu1 %v6781_v25  ;;  %v933_v25 = vld [vmem:[%s11349_s1 + $0x1bd8] sm:$0xff]  ;;  %v959_v39 = vld [vmem:[%s11349_s1 + $0x1ca8] sm:$0xff]  ;;  %v978_v61 = vld [vmem:[%s11349_s1 + $0x1d40] sm:$0xff] }
 0x1a4   :  { %6816 = vmatprep.subr.bf16.mxu1 %v6815_v33  ;;  %3484 = vmatmul.mubr.f32.vlgmr.msra.gmra.mrb[24].mxu0 %v9789_v49  ;;  %v878_v49 = vld [vmem:[%s11349_s1 + $0x1a20] sm:$0xff]  ;;  %v885_v33 = vld [vmem:[%s11349_s1 + $0x1a58] sm:$0xff]  ;;  %v6835_v23 = vpack.c.bf16 %v933_v25, %v932_v24  ;;  %v995_v0 = vld [vmem:[%s11349_s1 + $0x1dc8] sm:$0xff] }
 0x1a5   :  { %6786 = vmatpush3.bf16.msra.mxu0 %v6785_v38  ;;  %3623 = vmatprep.mubr.f32.mxu0 %v1555_v50  ;;  %v6793_v2 = vpack.c.bf16 %v879_v59, %v878_v49  ;;  %v934_v38 = vld [vmem:[%s11349_s1 + $0x1be0] sm:$0xff]  ;;  %v919_v50 = vld [vmem:[%s11349_s1 + $0x1b68] sm:$0xff] }
 0x1a6   :  { %3554 = vmatmul.mubr.f32.vlgmr.msra.gmra.mrb[24].mxu1 %v9798_v53  ;;  %6788 = vmatprep.subr.bf16.mxu0 %v6787_v42  ;;  %v911_v53 = vld [vmem:[%s11349_s1 + $0x1b28] sm:$0xff]  ;;  %v6805_v42 = vpack.c.bf16 %v885_v33, %v884_v30  ;;  %v6841_v11 = vpack.c.bf16 %v919_v50, %v918_v52  ;;  %v941_v30 = vld [vmem:[%s11349_s1 + $0x1c18] sm:$0xff]  ;;  %v972_v33 = vld [vmem:[%s11349_s1 + $0x1d10] sm:$0xff] }
 0x1a7   :  { %6818 = vmatpush3.bf16.msra.mxu1 %v6817_v40  ;;  %3693 = vmatprep.mubr.f32.mxu1 %v1556_v56  ;;  %v6825_v3 = vpack.c.bf16 %v911_v53, %v910_v51  ;;  %v935_v40 = vld [vmem:[%s11349_s1 + $0x1be8] sm:$0xff]  ;;  %v974_v52 = vld [vmem:[%s11349_s1 + $0x1d20] sm:$0xff]  ;;  %v961_v50 = vld [vmem:[%s11349_s1 + $0x1cb8] sm:$0xff] }
 0x1a8   :  { %6820 = vmatprep.subr.bf16.mxu1 %v6819_v47  ;;  %v887_v47 = vld [vmem:[%s11349_s1 + $0x1a68] sm:$0xff]  ;;  %v6839_v32 = vpack.c.bf16 %v935_v40, %v934_v38  ;;  %v990_v38 = vld [vmem:[%s11349_s1 + $0x1da0] sm:$0xff] }
 0x1a9   :  { %6790 = vmatpush3.bf16.msra.mxu0 %v6789_v57  ;;  %v6809_v51 = vpack.c.bf16 %v887_v47, %v886_v46  ;;  %v991_v40 = vld [vmem:[%s11349_s1 + $0x1da8] sm:$0xff]  ;;  %v6855_v46 = vpack.c.bf16 %v959_v39, %v958_v34  ;;  %v966_v27 = vld [vmem:[%s11349_s1 + $0x1ce0] sm:$0xff] }
 0x1aa   :  { %6792 = vmatprep.subr.bf16.mxu0 %v6791_v58  ;;  %v937_v58 = vld [vmem:[%s11349_s1 + $0x1bf8] sm:$0xff]  ;;  %v943_v47 = vld [vmem:[%s11349_s1 + $0x1c28] sm:$0xff] }
 0x1ab   :  { %6822 = vmatpush3.bf16.msra.mxu1 %v6821_v41  ;;  %v936_v41 = vld [vmem:[%s11349_s1 + $0x1bf0] sm:$0xff]  ;;  %v967_v22 = vld [vmem:[%s11349_s1 + $0x1ce8] sm:$0xff] }
 0x1ac   :  { %6824 = vmatprep.subr.bf16.mxu1 %v6823_v60  ;;  %v36_v60 = vld [vmem:[%s11350_s0 + $0x70] sm:$0xff] }
 0x1ad   :  { %6794 = vmatpush3.bf16.msra.mxu0 %v6793_v2  ;;  %v920_v2 = vld [vmem:[%s11349_s1 + $0x1b70] sm:$0xff]  ;;  %v1557_v7 = vcombine.high %v36_v60, %v36_v60  ;;  %v10209_v21 = vrot.slane %v36_v60, %v7408_v10  ;;  %v977_v60 = vld [vmem:[%s11349_s1 + $0x1d38] sm:$0xff] }
 0x1ae   :  { %6796 = vmatprep.subr.bf16.mxu0 %v6795_v4  ;;  %v6843_v4 = vpack.c.bf16 %v937_v58, %v936_v41  ;;  %v6845_v12 = vpack.c.bf16 %v921_v5, %v920_v2  ;;  %v944_v58 = vld [vmem:[%s11349_s1 + $0x1c30] sm:$0xff]  ;;  %v947_v5 = vld [vmem:[%s11349_s1 + $0x1c48] sm:$0xff] }
 0x1af   :  { %6826 = vmatpush3.bf16.msra.mxu1 %v6825_v3  ;;  %v10218_v24 = vrot.slane %v1557_v7, %v7408_v10  ;;  %v1572_v36 = vcombine.high %v10209_v21, %v10209_v21  ;;  %v965_v7 = vld [vmem:[%s11349_s1 + $0x1cd8] sm:$0xff] }
 0x1b0   :  { %6828 = vmatprep.subr.bf16.mxu1 %v6827_v8  ;;  %v986_v8 = vld [vmem:[%s11349_s1 + $0x1d80] sm:$0xff] }
 0x1b1   :  { %6798 = vmatpush3.bf16.msra.mxu0 %v6797_v15  ;;  %v938_v15 = vld [vmem:[%s11349_s1 + $0x1c00] sm:$0xff] }
 0x1b2   :  { %6800 = vmatprep.subr.bf16.mxu0 %v6799_v17  ;;  %v970_v17 = vld [vmem:[%s11349_s1 + $0x1d00] sm:$0xff] }
 0x1b3   :  { %6830 = vmatpush3.bf16.msra.mxu1 %v6829_v16  ;;  %v939_v16 = vld [vmem:[%s11349_s1 + $0x1c08] sm:$0xff] }
 0x1b4   :  { %6832 = vmatprep.subr.bf16.mxu1 %v6831_v20  ;;  %v957_v20 = vld [vmem:[%s11349_s1 + $0x1c98] sm:$0xff]  ;;  %v6849_v25 = vpack.c.bf16 %v939_v16, %v938_v15 }
 0x1b5   :  { %6802 = vmatpush3.bf16.msra.mxu0 %v6801_v28  ;;  %v6881_v28 = vpack.c.bf16 %v971_v19, %v970_v17  ;;  %v948_v17 = vld [vmem:[%s11349_s1 + $0x1c50] sm:$0xff] }
 0x1b6   :  { %6804 = vmatprep.subr.bf16.mxu0 %v6803_v31  ;;  %v940_v31 = vld [vmem:[%s11349_s1 + $0x1c10] sm:$0xff] }
 0x1b7   :  { %6834 = vmatpush3.bf16.msra.mxu1 %v6833_v29  ;;  %v5028_v48 = vpop.f32.mrb[12].mxu0  ;;  %v6851_v29 = vpack.c.bf16 %v957_v20, %v956_v9  ;;  %v980_v19 = vld [vmem:[%s11349_s1 + $0x1d50] sm:$0xff]  ;;  %v981_v20 = vld [vmem:[%s11349_s1 + $0x1d58] sm:$0xff] }
 0x1b8   :  { %6836 = vmatprep.subr.bf16.mxu1 %v6835_v23  ;;  %v5029_v56 = vpop.f32.mrb[13].mxu0  ;;  %v973_v23 = vld [vmem:[%s11349_s1 + $0x1d18] sm:$0xff] }
 0x1b9   :  { %v5063_v57 = vpop.f32.mrb[12].mxu1  ;;  %v5030_v49 = vadd.f32 %v5029_v56, %v5028_v48  ;;  %6806 = vmatpush3.bf16.msra.mxu0 %v6805_v42  ;;  %v1573_v42 = vcombine.high %v10218_v24, %v10218_v24  ;;  %v6887_v48 = vpack.c.bf16 %v991_v40, %v990_v38  ;;  %v968_v38 = vld [vmem:[%s11349_s1 + $0x1cf0] sm:$0xff]  ;;  %v969_v40 = vld [vmem:[%s11349_s1 + $0x1cf8] sm:$0xff] }
 0x1ba   :  { %v5064_v59 = vpop.f32.mrb[13].mxu1  ;;  %6808 = vmatprep.subr.bf16.mxu0 %v6807_v45  ;;  %v6885_v45 = vpack.c.bf16 %v973_v23, %v972_v33  ;;  %v950_v33 = vld [vmem:[%s11349_s1 + $0x1c60] sm:$0xff] }
 0x1bb   :  { %v5065_v53 = vadd.f32 %v5064_v59, %v5063_v57  ;;  %6838 = vmatpush3.bf16.msra.mxu1 %v6837_v44  ;;  %v2646_v3 = vadd.f32 %v5030_v49, %v9978_v13  ;;  %v987_v13 = vld [vmem:[%s11349_s1 + $0x1d88] sm:$0xff]  ;;  %v6853_v44 = vpack.c.bf16 %v941_v30, %v940_v31  ;;  %v945_v49 = vld [vmem:[%s11349_s1 + $0x1c38] sm:$0xff]  ;;  %v976_v59 = vld [vmem:[%s11349_s1 + $0x1d30] sm:$0xff]  ;;  %v6901_v31 = vpack.c.bf16 %v981_v20, %v980_v19 }
 0x1bc   :  { %6840 = vmatprep.subr.bf16.mxu1 %v6839_v32  ;;  %v6879_v18 = vpack.c.bf16 %v987_v13, %v986_v8  ;;  %v960_v32 = vld [vmem:[%s11349_s1 + $0x1cb0] sm:$0xff]  ;;  %v6861_v1 = vpack.c.bf16 %v945_v49, %v944_v58  ;;  %v6893_v2 = vpack.c.bf16 %v977_v60, %v976_v59  ;;  %v979_v8 = vld [vmem:[%s11349_s1 + $0x1d48] sm:$0xff]  ;;  %v6871_v30 = vpack.c.bf16 %v967_v22, %v966_v27  ;;  %v982_v23 = vld [vmem:[%s11349_s1 + $0x1d60] sm:$0xff] }
 0x1bd   :  { %v10188_v63 = vadd.f32 %v5065_v53, %v2646_v3  ;;  %6810 = vmatpush3.bf16.msra.mxu0 %v6809_v51  ;;  %v6859_v41 = vpack.c.bf16 %v961_v50, %v960_v32  ;;  %v6891_v51 = vpack.c.bf16 %v993_v55, %v992_v54  ;;  %v962_v53 = vld [vmem:[%s11349_s1 + $0x1cc0] sm:$0xff]  ;;  %v964_v13 = vld [vmem:[%s11349_s1 + $0x1cd0] sm:$0xff]  ;;  %v6897_v15 = vpack.c.bf16 %v979_v8, %v978_v61  ;;  %v953_v55 = vld [vmem:[%s11349_s1 + $0x1c78] sm:$0xff] }
 0x1be   :  { %6812 = vmatprep.subr.bf16.mxu0 %v6811_v62  ;;  %v994_v62 = vld [vmem:[%s11349_s1 + $0x1dc0] sm:$0xff]  ;;  %v6867_v16 = vpack.c.bf16 %v965_v7, %v964_v13  ;;  %v6875_v50 = vpack.c.bf16 %v969_v40, %v968_v38  ;;  %v952_v54 = vld [vmem:[%s11349_s1 + $0x1c70] sm:$0xff]  ;;  %v985_v58 = vld [vmem:[%s11349_s1 + $0x1d78] sm:$0xff] }
 0x1bf   :  { %6842 = vmatpush3.bf16.msra.mxu1 %v6841_v11  ;;  %v963_v11 = vld [vmem:[%s11349_s1 + $0x1cc8] sm:$0xff]  ;;  %v6895_v6 = vpack.c.bf16 %v995_v0, %v994_v62  ;;  %v1018_v49 = vld [vmem:[%s11349_s1 + $0x1e80] sm:$0xff]  ;;  %v1020_v61 = vld [vmem:[%s11349_s1 + $0x1e90] sm:$0xff] }
 0x1c0   :  { %6844 = vmatprep.subr.bf16.mxu1 %v6843_v4  ;;  %v6863_v3 = vpack.c.bf16 %v963_v11, %v962_v53  ;;  %v946_v4 = vld [vmem:[%s11349_s1 + $0x1c40] sm:$0xff]  ;;  %v1019_v59 = vld [vmem:[%s11349_s1 + $0x1e88] sm:$0xff]  ;;  %v6877_v11 = vpack.c.bf16 %v953_v55, %v952_v54  ;;  %v1052_v13 = vld [vmem:[%s11349_s1 + $0x1f90] sm:$0xff] }
 0x1c1   :  { %6814 = vmatpush3.bf16.msra.mxu0 %v6813_v26  ;;  %v996_v26 = vld [vmem:[%s11349_s1 + $0x1dd0] sm:$0xff]  ;;  %v6911_v0 = vpack.c.bf16 %v1019_v59, %v1018_v49  ;;  %v1053_v7 = vld [vmem:[%s11349_s1 + $0x1f98] sm:$0xff]  ;;  %v1022_v20 = vld [vmem:[%s11349_s1 + $0x1ea0] sm:$0xff] }
 0x1c2   :  { %6848 = vmatprep.subr.bf16.mxu0 %v6847_v14  ;;  %v6865_v14 = vpack.c.bf16 %v947_v5, %v946_v4  ;;  %v1035_v5 = vld [vmem:[%s11349_s1 + $0x1f08] sm:$0xff]  ;;  %v6947_v19 = vpack.c.bf16 %v1053_v7, %v1052_v13  ;;  %v1056_v38 = vld [vmem:[%s11349_s1 + $0x1fb0] sm:$0xff]  ;;  %v1057_v40 = vld [vmem:[%s11349_s1 + $0x1fb8] sm:$0xff] }
 0x1c3   :  { %6846 = vmatpush3.bf16.msra.mxu1 %v6845_v12  ;;  %v997_v12 = vld [vmem:[%s11349_s1 + $0x1dd8] sm:$0xff]  ;;  %v1023_v27 = vld [vmem:[%s11349_s1 + $0x1ea8] sm:$0xff]  ;;  %v1042_v49 = vld [vmem:[%s11349_s1 + $0x1f40] sm:$0xff] }
 0x1c4   :  { %6880 = vmatprep.subr.bf16.mxu1 %v6879_v18  ;;  %3624 = vmatmul.mubr.f32.vlgmr.msra.gmra.mrb[26].mxu0 %v9999_v35  ;;  %v942_v35 = vld [vmem:[%s11349_s1 + $0x1c20] sm:$0xff]  ;;  %v949_v18 = vld [vmem:[%s11349_s1 + $0x1c58] sm:$0xff]  ;;  %v6899_v9 = vpack.c.bf16 %v997_v12, %v996_v26  ;;  %v1059_v54 = vld [vmem:[%s11349_s1 + $0x1fc8] sm:$0xff] }
 0x1c5   :  { %6850 = vmatpush3.bf16.msra.mxu0 %v6849_v25  ;;  %3763 = vmatprep.mubr.f32.mxu0 %v1572_v36  ;;  %v6857_v56 = vpack.c.bf16 %v943_v47, %v942_v35  ;;  %v998_v25 = vld [vmem:[%s11349_s1 + $0x1de0] sm:$0xff]  ;;  %v983_v36 = vld [vmem:[%s11349_s1 + $0x1d68] sm:$0xff] }
 0x1c6   :  { %3694 = vmatmul.mubr.f32.vlgmr.msra.gmra.mrb[26].mxu1 %v10008_v37  ;;  %6852 = vmatprep.subr.bf16.mxu0 %v6851_v29  ;;  %v975_v37 = vld [vmem:[%s11349_s1 + $0x1d28] sm:$0xff]  ;;  %v6869_v29 = vpack.c.bf16 %v949_v18, %v948_v17  ;;  %v6905_v32 = vpack.c.bf16 %v983_v36, %v982_v23  ;;  %v1005_v17 = vld [vmem:[%s11349_s1 + $0x1e18] sm:$0xff]  ;;  %v1036_v18 = vld [vmem:[%s11349_s1 + $0x1f10] sm:$0xff] }
 0x1c7   :  { %6882 = vmatpush3.bf16.msra.mxu1 %v6881_v28  ;;  %3833 = vmatprep.mubr.f32.mxu1 %v1573_v42  ;;  %v6889_v57 = vpack.c.bf16 %v975_v37, %v974_v52  ;;  %v999_v28 = vld [vmem:[%s11349_s1 + $0x1de8] sm:$0xff]  ;;  %v1038_v23 = vld [vmem:[%s11349_s1 + $0x1f20] sm:$0xff]  ;;  %v1025_v36 = vld [vmem:[%s11349_s1 + $0x1eb8] sm:$0xff] }
 0x1c8   :  { %6884 = vmatprep.subr.bf16.mxu1 %v6883_v43  ;;  %v951_v43 = vld [vmem:[%s11349_s1 + $0x1c68] sm:$0xff]  ;;  %v6903_v39 = vpack.c.bf16 %v999_v28, %v998_v25  ;;  %v1054_v25 = vld [vmem:[%s11349_s1 + $0x1fa0] sm:$0xff] }
 0x1c9   :  { %6854 = vmatpush3.bf16.msra.mxu0 %v6853_v44  ;;  %v6873_v52 = vpack.c.bf16 %v951_v43, %v950_v33  ;;  %v1055_v28 = vld [vmem:[%s11349_s1 + $0x1fa8] sm:$0xff]  ;;  %v6919_v33 = vpack.c.bf16 %v1023_v27, %v1022_v20  ;;  %v1030_v13 = vld [vmem:[%s11349_s1 + $0x1ee0] sm:$0xff] }
 0x1ca   :  { %6856 = vmatprep.subr.bf16.mxu0 %v6855_v46  ;;  %v1001_v46 = vld [vmem:[%s11349_s1 + $0x1df8] sm:$0xff]  ;;  %v1007_v43 = vld [vmem:[%s11349_s1 + $0x1e28] sm:$0xff] }
 0x1cb   :  { %6886 = vmatpush3.bf16.msra.mxu1 %v6885_v45  ;;  %v1000_v45 = vld [vmem:[%s11349_s1 + $0x1df0] sm:$0xff]  ;;  %v1031_v7 = vld [vmem:[%s11349_s1 + $0x1ee8] sm:$0xff] }
 0x1cc   :  { %6888 = vmatprep.subr.bf16.mxu1 %v6887_v48  ;;  %v37_v48 = vld [vmem:[%s11350_s0 + $0x78] sm:$0xff] }
 0x1cd   :  { %6858 = vmatpush3.bf16.msra.mxu0 %v6857_v56  ;;  %v984_v56 = vld [vmem:[%s11349_s1 + $0x1d70] sm:$0xff]  ;;  %v1574_v60 = vcombine.high %v37_v48, %v37_v48  ;;  %v10419_v8 = vrot.slane %v37_v48, %v7408_v10  ;;  %v1041_v48 = vld [vmem:[%s11349_s1 + $0x1f38] sm:$0xff] }
 0x1ce   :  { %6860 = vmatprep.subr.bf16.mxu0 %v6859_v41  ;;  %v6907_v41 = vpack.c.bf16 %v1001_v46, %v1000_v45  ;;  %v6909_v62 = vpack.c.bf16 %v985_v58, %v984_v56  ;;  %v1008_v46 = vld [vmem:[%s11349_s1 + $0x1e30] sm:$0xff]  ;;  %v1011_v58 = vld [vmem:[%s11349_s1 + $0x1e48] sm:$0xff] }
 0x1cf   :  { %6890 = vmatpush3.bf16.msra.mxu1 %v6889_v57  ;;  %v10428_v26 = vrot.slane %v1574_v60, %v7408_v10  ;;  %v1589_v22 = vcombine.high %v10419_v8, %v10419_v8  ;;  %v1029_v60 = vld [vmem:[%s11349_s1 + $0x1ed8] sm:$0xff] }
 0x1d0   :  { %6892 = vmatprep.subr.bf16.mxu1 %v6891_v51  ;;  %v1050_v51 = vld [vmem:[%s11349_s1 + $0x1f80] sm:$0xff] }
 0x1d1   :  { %6862 = vmatpush3.bf16.msra.mxu0 %v6861_v1  ;;  %v1002_v1 = vld [vmem:[%s11349_s1 + $0x1e00] sm:$0xff] }
 0x1d2   :  { %6864 = vmatprep.subr.bf16.mxu0 %v6863_v3  ;;  %v1034_v3 = vld [vmem:[%s11349_s1 + $0x1f00] sm:$0xff] }
 0x1d3   :  { %6894 = vmatpush3.bf16.msra.mxu1 %v6893_v2  ;;  %v1003_v2 = vld [vmem:[%s11349_s1 + $0x1e08] sm:$0xff] }
 0x1d4   :  { %6896 = vmatprep.subr.bf16.mxu1 %v6895_v6  ;;  %v1021_v6 = vld [vmem:[%s11349_s1 + $0x1e98] sm:$0xff]  ;;  %v6913_v12 = vpack.c.bf16 %v1003_v2, %v1002_v1 }
 0x1d5   :  { %6866 = vmatpush3.bf16.msra.mxu0 %v6865_v14  ;;  %v6945_v14 = vpack.c.bf16 %v1035_v5, %v1034_v3  ;;  %v1012_v3 = vld [vmem:[%s11349_s1 + $0x1e50] sm:$0xff] }
 0x1d6   :  { %6868 = vmatprep.subr.bf16.mxu0 %v6867_v16  ;;  %v1004_v16 = vld [vmem:[%s11349_s1 + $0x1e10] sm:$0xff] }
 0x1d7   :  { %6898 = vmatpush3.bf16.msra.mxu1 %v6897_v15  ;;  %v5098_v34 = vpop.f32.mrb[14].mxu0  ;;  %v6915_v15 = vpack.c.bf16 %v1021_v6, %v1020_v61  ;;  %v1044_v5 = vld [vmem:[%s11349_s1 + $0x1f50] sm:$0xff]  ;;  %v1045_v6 = vld [vmem:[%s11349_s1 + $0x1f58] sm:$0xff] }
 0x1d8   :  { %6900 = vmatprep.subr.bf16.mxu1 %v6899_v9  ;;  %v5099_v42 = vpop.f32.mrb[15].mxu0  ;;  %v1037_v9 = vld [vmem:[%s11349_s1 + $0x1f18] sm:$0xff] }
 0x1d9   :  { %v5133_v44 = vpop.f32.mrb[14].mxu1  ;;  %v5100_v35 = vadd.f32 %v5099_v42, %v5098_v34  ;;  %6870 = vmatpush3.bf16.msra.mxu0 %v6869_v29  ;;  %v1590_v29 = vcombine.high %v10428_v26, %v10428_v26  ;;  %v6951_v34 = vpack.c.bf16 %v1055_v28, %v1054_v25  ;;  %v1032_v25 = vld [vmem:[%s11349_s1 + $0x1ef0] sm:$0xff]  ;;  %v1033_v28 = vld [vmem:[%s11349_s1 + $0x1ef8] sm:$0xff] }
 0x1da   :  { %v5134_v47 = vpop.f32.mrb[15].mxu1  ;;  %6872 = vmatprep.subr.bf16.mxu0 %v6871_v30  ;;  %v6949_v30 = vpack.c.bf16 %v1037_v9, %v1036_v18  ;;  %v1014_v18 = vld [vmem:[%s11349_s1 + $0x1e60] sm:$0xff] }
 0x1db   :  { %v5135_v37 = vadd.f32 %v5134_v47, %v5133_v44  ;;  %6902 = vmatpush3.bf16.msra.mxu1 %v6901_v31  ;;  %v2786_v57 = vadd.f32 %v5100_v35, %v10188_v63  ;;  %v1051_v63 = vld [vmem:[%s11349_s1 + $0x1f88] sm:$0xff]  ;;  %v6917_v31 = vpack.c.bf16 %v1005_v17, %v1004_v16  ;;  %v1009_v35 = vld [vmem:[%s11349_s1 + $0x1e38] sm:$0xff]  ;;  %v1040_v47 = vld [vmem:[%s11349_s1 + $0x1f30] sm:$0xff]  ;;  %v6965_v16 = vpack.c.bf16 %v1045_v6, %v1044_v5 }
 0x1dc   :  { %6904 = vmatprep.subr.bf16.mxu1 %v6903_v39  ;;  %v6943_v4 = vpack.c.bf16 %v1051_v63, %v1050_v51  ;;  %v1024_v39 = vld [vmem:[%s11349_s1 + $0x1eb0] sm:$0xff]  ;;  %v6925_v55 = vpack.c.bf16 %v1009_v35, %v1008_v46  ;;  %v6957_v56 = vpack.c.bf16 %v1041_v48, %v1040_v47  ;;  %v1043_v51 = vld [vmem:[%s11349_s1 + $0x1f48] sm:$0xff]  ;;  %v6935_v17 = vpack.c.bf16 %v1031_v7, %v1030_v13  ;;  %v1046_v9 = vld [vmem:[%s11349_s1 + $0x1f60] sm:$0xff] }
 0x1dd   :  { %v10398_v53 = vadd.f32 %v5135_v37, %v2786_v57  ;;  %6874 = vmatpush3.bf16.msra.mxu0 %v6873_v52  ;;  %v6923_v45 = vpack.c.bf16 %v1025_v36, %v1024_v39  ;;  %v6955_v52 = vpack.c.bf16 %v1057_v40, %v1056_v38  ;;  %v1026_v37 = vld [vmem:[%s11349_s1 + $0x1ec0] sm:$0xff]  ;;  %v1028_v63 = vld [vmem:[%s11349_s1 + $0x1ed0] sm:$0xff]  ;;  %v6961_v1 = vpack.c.bf16 %v1043_v51, %v1042_v49  ;;  %v1017_v40 = vld [vmem:[%s11349_s1 + $0x1e78] sm:$0xff] }
 0x1de   :  { %6876 = vmatprep.subr.bf16.mxu0 %v6875_v50  ;;  %v1058_v50 = vld [vmem:[%s11349_s1 + $0x1fc0] sm:$0xff]  ;;  %v6931_v2 = vpack.c.bf16 %v1029_v60, %v1028_v63  ;;  %v6939_v36 = vpack.c.bf16 %v1033_v28, %v1032_v25  ;;  %v1016_v38 = vld [vmem:[%s11349_s1 + $0x1e70] sm:$0xff]  ;;  %v1049_v46 = vld [vmem:[%s11349_s1 + $0x1f78] sm:$0xff] }
 0x1df   :  { %6906 = vmatpush3.bf16.msra.mxu1 %v6905_v32  ;;  %v1027_v32 = vld [vmem:[%s11349_s1 + $0x1ec8] sm:$0xff]  ;;  %v6959_v59 = vpack.c.bf16 %v1059_v54, %v1058_v50  ;;  %v1082_v35 = vld [vmem:[%s11349_s1 + $0x2080] sm:$0xff]  ;;  %v1084_v49 = vld [vmem:[%s11349_s1 + $0x2090] sm:$0xff] }
 0x1e0   :  { %6908 = vmatprep.subr.bf16.mxu1 %v6907_v41  ;;  %v6927_v57 = vpack.c.bf16 %v1027_v32, %v1026_v37  ;;  %v1010_v41 = vld [vmem:[%s11349_s1 + $0x1e40] sm:$0xff]  ;;  %v1083_v47 = vld [vmem:[%s11349_s1 + $0x2088] sm:$0xff]  ;;  %v6941_v32 = vpack.c.bf16 %v1017_v40, %v1016_v38  ;;  %v1116_v63 = vld [vmem:[%s11349_s1 + $0x2190] sm:$0xff] }
 0x1e1   :  { %6878 = vmatpush3.bf16.msra.mxu0 %v6877_v11  ;;  %v1060_v11 = vld [vmem:[%s11349_s1 + $0x1fd0] sm:$0xff]  ;;  %v6975_v54 = vpack.c.bf16 %v1083_v47, %v1082_v35  ;;  %v1117_v60 = vld [vmem:[%s11349_s1 + $0x2198] sm:$0xff]  ;;  %v1086_v6 = vld [vmem:[%s11349_s1 + $0x20a0] sm:$0xff] }
 0x1e2   :  { %6912 = vmatprep.subr.bf16.mxu0 %v6911_v0  ;;  %v6929_v0 = vpack.c.bf16 %v1011_v58, %v1010_v41  ;;  %v1099_v58 = vld [vmem:[%s11349_s1 + $0x2108] sm:$0xff]  ;;  %v7011_v5 = vpack.c.bf16 %v1117_v60, %v1116_v63  ;;  %v1120_v25 = vld [vmem:[%s11349_s1 + $0x21b0] sm:$0xff]  ;;  %v1121_v28 = vld [vmem:[%s11349_s1 + $0x21b8] sm:$0xff] }
 0x1e3   :  { %6910 = vmatpush3.bf16.msra.mxu1 %v6909_v62  ;;  %v1061_v62 = vld [vmem:[%s11349_s1 + $0x1fd8] sm:$0xff]  ;;  %v1087_v13 = vld [vmem:[%s11349_s1 + $0x20a8] sm:$0xff]  ;;  %v1106_v35 = vld [vmem:[%s11349_s1 + $0x2140] sm:$0xff] }
 0x1e4   :  { %6944 = vmatprep.subr.bf16.mxu1 %v6943_v4  ;;  %3764 = vmatmul.mubr.f32.vlgmr.msra.gmra.mrb[28].mxu0 %v10209_v21  ;;  %v1006_v21 = vld [vmem:[%s11349_s1 + $0x1e20] sm:$0xff]  ;;  %v1013_v4 = vld [vmem:[%s11349_s1 + $0x1e58] sm:$0xff]  ;;  %v6963_v61 = vpack.c.bf16 %v1061_v62, %v1060_v11  ;;  %v1123_v38 = vld [vmem:[%s11349_s1 + $0x21c8] sm:$0xff] }
 0x1e5   :  { %6914 = vmatpush3.bf16.msra.mxu0 %v6913_v12  ;;  %3903 = vmatprep.mubr.f32.mxu0 %v1589_v22  ;;  %v6921_v42 = vpack.c.bf16 %v1007_v43, %v1006_v21  ;;  %v1062_v12 = vld [vmem:[%s11349_s1 + $0x1fe0] sm:$0xff]  ;;  %v1047_v22 = vld [vmem:[%s11349_s1 + $0x1f68] sm:$0xff] }
 0x1e6   :  { %3834 = vmatmul.mubr.f32.vlgmr.msra.gmra.mrb[28].mxu1 %v10218_v24  ;;  %6916 = vmatprep.subr.bf16.mxu0 %v6915_v15  ;;  %v1039_v24 = vld [vmem:[%s11349_s1 + $0x1f28] sm:$0xff]  ;;  %v6933_v15 = vpack.c.bf16 %v1013_v4, %v1012_v3  ;;  %v6969_v39 = vpack.c.bf16 %v1047_v22, %v1046_v9  ;;  %v1069_v3 = vld [vmem:[%s11349_s1 + $0x2018] sm:$0xff]  ;;  %v1100_v4 = vld [vmem:[%s11349_s1 + $0x2110] sm:$0xff] }
 0x1e7   :  { %6946 = vmatpush3.bf16.msra.mxu1 %v6945_v14  ;;  %3973 = vmatprep.mubr.f32.mxu1 %v1590_v29  ;;  %v6953_v44 = vpack.c.bf16 %v1039_v24, %v1038_v23  ;;  %v1063_v14 = vld [vmem:[%s11349_s1 + $0x1fe8] sm:$0xff]  ;;  %v1102_v9 = vld [vmem:[%s11349_s1 + $0x2120] sm:$0xff]  ;;  %v1089_v22 = vld [vmem:[%s11349_s1 + $0x20b8] sm:$0xff] }
 0x1e8   :  { %6948 = vmatprep.subr.bf16.mxu1 %v6947_v19  ;;  %v1015_v19 = vld [vmem:[%s11349_s1 + $0x1e68] sm:$0xff]  ;;  %v6967_v27 = vpack.c.bf16 %v1063_v14, %v1062_v12  ;;  %v1118_v12 = vld [vmem:[%s11349_s1 + $0x21a0] sm:$0xff] }
 0x1e9   :  { %6918 = vmatpush3.bf16.msra.mxu0 %v6917_v31  ;;  %v6937_v23 = vpack.c.bf16 %v1015_v19, %v1014_v18  ;;  %v1119_v14 = vld [vmem:[%s11349_s1 + $0x21a8] sm:$0xff]  ;;  %v6983_v18 = vpack.c.bf16 %v1087_v13, %v1086_v6  ;;  %v1094_v63 = vld [vmem:[%s11349_s1 + $0x20e0] sm:$0xff] }
 0x1ea   :  { %6920 = vmatprep.subr.bf16.mxu0 %v6919_v33  ;;  %v1065_v33 = vld [vmem:[%s11349_s1 + $0x1ff8] sm:$0xff]  ;;  %v1071_v19 = vld [vmem:[%s11349_s1 + $0x2028] sm:$0xff] }
 0x1eb   :  { %6950 = vmatpush3.bf16.msra.mxu1 %v6949_v30  ;;  %v1064_v30 = vld [vmem:[%s11349_s1 + $0x1ff0] sm:$0xff]  ;;  %v1095_v60 = vld [vmem:[%s11349_s1 + $0x20e8] sm:$0xff] }
 0x1ec   :  { %6952 = vmatprep.subr.bf16.mxu1 %v6951_v34  ;;  %v38_v34 = vld [vmem:[%s11350_s0 + $0x80] sm:$0xff] }
 0x1ed   :  { %6922 = vmatpush3.bf16.msra.mxu0 %v6921_v42  ;;  %v1048_v42 = vld [vmem:[%s11349_s1 + $0x1f70] sm:$0xff]  ;;  %v1591_v48 = vcombine.high %v38_v34, %v38_v34  ;;  %v10629_v51 = vrot.slane %v38_v34, %v7408_v10  ;;  %v1105_v34 = vld [vmem:[%s11349_s1 + $0x2138] sm:$0xff] }
 0x1ee   :  { %6924 = vmatprep.subr.bf16.mxu0 %v6923_v45  ;;  %v6971_v45 = vpack.c.bf16 %v1065_v33, %v1064_v30  ;;  %v6973_v50 = vpack.c.bf16 %v1049_v46, %v1048_v42  ;;  %v1072_v33 = vld [vmem:[%s11349_s1 + $0x2030] sm:$0xff]  ;;  %v1075_v46 = vld [vmem:[%s11349_s1 + $0x2048] sm:$0xff] }
 0x1ef   :  { %6954 = vmatpush3.bf16.msra.mxu1 %v6953_v44  ;;  %v10638_v11 = vrot.slane %v1591_v48, %v7408_v10  ;;  %v1606_v7 = vcombine.high %v10629_v51, %v10629_v51  ;;  %v1093_v48 = vld [vmem:[%s11349_s1 + $0x20d8] sm:$0xff] }
 0x1f0   :  { %6956 = vmatprep.subr.bf16.mxu1 %v6955_v52  ;;  %v1114_v52 = vld [vmem:[%s11349_s1 + $0x2180] sm:$0xff] }
 0x1f1   :  { %6926 = vmatpush3.bf16.msra.mxu0 %v6925_v55  ;;  %v1066_v55 = vld [vmem:[%s11349_s1 + $0x2000] sm:$0xff] }
 0x1f2   :  { %6928 = vmatprep.subr.bf16.mxu0 %v6927_v57  ;;  %v1098_v57 = vld [vmem:[%s11349_s1 + $0x2100] sm:$0xff] }
 0x1f3   :  { %6958 = vmatpush3.bf16.msra.mxu1 %v6957_v56  ;;  %v1067_v56 = vld [vmem:[%s11349_s1 + $0x2008] sm:$0xff] }
 0x1f4   :  { %6960 = vmatprep.subr.bf16.mxu1 %v6959_v59  ;;  %v1085_v59 = vld [vmem:[%s11349_s1 + $0x2098] sm:$0xff]  ;;  %v6977_v62 = vpack.c.bf16 %v1067_v56, %v1066_v55 }
 0x1f5   :  { %6930 = vmatpush3.bf16.msra.mxu0 %v6929_v0  ;;  %v7009_v0 = vpack.c.bf16 %v1099_v58, %v1098_v57  ;;  %v1076_v57 = vld [vmem:[%s11349_s1 + $0x2050] sm:$0xff] }
 0x1f6   :  { %6932 = vmatprep.subr.bf16.mxu0 %v6931_v2  ;;  %v1068_v2 = vld [vmem:[%s11349_s1 + $0x2010] sm:$0xff] }
 0x1f7   :  { %6962 = vmatpush3.bf16.msra.mxu1 %v6961_v1  ;;  %v5168_v20 = vpop.f32.mrb[16].mxu0  ;;  %v6979_v1 = vpack.c.bf16 %v1085_v59, %v1084_v49  ;;  %v1108_v58 = vld [vmem:[%s11349_s1 + $0x2150] sm:$0xff]  ;;  %v1109_v59 = vld [vmem:[%s11349_s1 + $0x2158] sm:$0xff] }
 0x1f8   :  { %6964 = vmatprep.subr.bf16.mxu1 %v6963_v61  ;;  %v5169_v29 = vpop.f32.mrb[17].mxu0  ;;  %v1101_v61 = vld [vmem:[%s11349_s1 + $0x2118] sm:$0xff] }
 0x1f9   :  { %v5203_v31 = vpop.f32.mrb[16].mxu1  ;;  %v5170_v21 = vadd.f32 %v5169_v29, %v5168_v20  ;;  %6934 = vmatpush3.bf16.msra.mxu0 %v6933_v15  ;;  %v1607_v15 = vcombine.high %v10638_v11, %v10638_v11  ;;  %v7015_v20 = vpack.c.bf16 %v1119_v14, %v1118_v12  ;;  %v1096_v12 = vld [vmem:[%s11349_s1 + $0x20f0] sm:$0xff]  ;;  %v1097_v14 = vld [vmem:[%s11349_s1 + $0x20f8] sm:$0xff] }
 0x1fa   :  { %v5204_v43 = vpop.f32.mrb[17].mxu1  ;;  %6936 = vmatprep.subr.bf16.mxu0 %v6935_v17  ;;  %v7013_v17 = vpack.c.bf16 %v1101_v61, %v1100_v4  ;;  %v1078_v4 = vld [vmem:[%s11349_s1 + $0x2060] sm:$0xff] }
 0x1fb   :  { %v5205_v24 = vadd.f32 %v5204_v43, %v5203_v31  ;;  %6966 = vmatpush3.bf16.msra.mxu1 %v6965_v16  ;;  %v2926_v44 = vadd.f32 %v5170_v21, %v10398_v53  ;;  %v1115_v53 = vld [vmem:[%s11349_s1 + $0x2188] sm:$0xff]  ;;  %v6981_v16 = vpack.c.bf16 %v1069_v3, %v1068_v2  ;;  %v1073_v21 = vld [vmem:[%s11349_s1 + $0x2038] sm:$0xff]  ;;  %v1104_v43 = vld [vmem:[%s11349_s1 + $0x2130] sm:$0xff]  ;;  %v7029_v2 = vpack.c.bf16 %v1109_v59, %v1108_v58 }
 0x1fc   :  { %6968 = vmatprep.subr.bf16.mxu1 %v6967_v27  ;;  %v7007_v41 = vpack.c.bf16 %v1115_v53, %v1114_v52  ;;  %v1088_v27 = vld [vmem:[%s11349_s1 + $0x20b0] sm:$0xff]  ;;  %v6989_v40 = vpack.c.bf16 %v1073_v21, %v1072_v33  ;;  %v7021_v42 = vpack.c.bf16 %v1105_v34, %v1104_v43  ;;  %v1107_v52 = vld [vmem:[%s11349_s1 + $0x2148] sm:$0xff]  ;;  %v6999_v3 = vpack.c.bf16 %v1095_v60, %v1094_v63  ;;  %v1110_v61 = vld [vmem:[%s11349_s1 + $0x2160] sm:$0xff] }
 0x1fd   :  { %v10608_v37 = vadd.f32 %v5205_v24, %v2926_v44  ;;  %6938 = vmatpush3.bf16.msra.mxu0 %v6937_v23  ;;  %v6987_v30 = vpack.c.bf16 %v1089_v22, %v1088_v27  ;;  %v7019_v23 = vpack.c.bf16 %v1121_v28, %v1120_v25  ;;  %v1090_v24 = vld [vmem:[%s11349_s1 + $0x20c0] sm:$0xff]  ;;  %v1092_v53 = vld [vmem:[%s11349_s1 + $0x20d0] sm:$0xff]  ;;  %v7025_v55 = vpack.c.bf16 %v1107_v52, %v1106_v35  ;;  %v1081_v28 = vld [vmem:[%s11349_s1 + $0x2078] sm:$0xff] }
 0x1fe   :  { %6940 = vmatprep.subr.bf16.mxu0 %v6939_v36  ;;  %v1122_v36 = vld [vmem:[%s11349_s1 + $0x21c0] sm:$0xff]  ;;  %v6995_v56 = vpack.c.bf16 %v1093_v48, %v1092_v53  ;;  %v7003_v22 = vpack.c.bf16 %v1097_v14, %v1096_v12  ;;  %v1080_v25 = vld [vmem:[%s11349_s1 + $0x2070] sm:$0xff]  ;;  %v1113_v33 = vld [vmem:[%s11349_s1 + $0x2178] sm:$0xff] }
 0x1ff   :  { %6970 = vmatpush3.bf16.msra.mxu1 %v6969_v39  ;;  %v1091_v39 = vld [vmem:[%s11349_s1 + $0x20c8] sm:$0xff]  ;;  %v7023_v47 = vpack.c.bf16 %v1123_v38, %v1122_v36  ;;  %v1146_v21 = vld [vmem:[%s11349_s1 + $0x2280] sm:$0xff]  ;;  %v1148_v35 = vld [vmem:[%s11349_s1 + $0x2290] sm:$0xff] }
 0x200   :  { %6972 = vmatprep.subr.bf16.mxu1 %v6971_v45  ;;  %v6991_v44 = vpack.c.bf16 %v1091_v39, %v1090_v24  ;;  %v1074_v45 = vld [vmem:[%s11349_s1 + $0x2040] sm:$0xff]  ;;  %v1147_v43 = vld [vmem:[%s11349_s1 + $0x2288] sm:$0xff]  ;;  %v7005_v39 = vpack.c.bf16 %v1081_v28, %v1080_v25  ;;  %v1180_v53 = vld [vmem:[%s11349_s1 + $0x2390] sm:$0xff] }
 0x201   :  { %6942 = vmatpush3.bf16.msra.mxu0 %v6941_v32  ;;  %v1124_v32 = vld [vmem:[%s11349_s1 + $0x21d0] sm:$0xff]  ;;  %v7039_v38 = vpack.c.bf16 %v1147_v43, %v1146_v21  ;;  %v1181_v48 = vld [vmem:[%s11349_s1 + $0x2398] sm:$0xff]  ;;  %v1150_v59 = vld [vmem:[%s11349_s1 + $0x22a0] sm:$0xff] }
 0x202   :  { %6976 = vmatprep.subr.bf16.mxu0 %v6975_v54  ;;  %v6993_v54 = vpack.c.bf16 %v1075_v46, %v1074_v45  ;;  %v1163_v46 = vld [vmem:[%s11349_s1 + $0x2308] sm:$0xff]  ;;  %v7075_v58 = vpack.c.bf16 %v1181_v48, %v1180_v53  ;;  %v1184_v12 = vld [vmem:[%s11349_s1 + $0x23b0] sm:$0xff]  ;;  %v1185_v14 = vld [vmem:[%s11349_s1 + $0x23b8] sm:$0xff] }
 0x203   :  { %6974 = vmatpush3.bf16.msra.mxu1 %v6973_v50  ;;  %v1125_v50 = vld [vmem:[%s11349_s1 + $0x21d8] sm:$0xff]  ;;  %v1151_v63 = vld [vmem:[%s11349_s1 + $0x22a8] sm:$0xff]  ;;  %v1170_v21 = vld [vmem:[%s11349_s1 + $0x2340] sm:$0xff] }
 0x204   :  { %7008 = vmatprep.subr.bf16.mxu1 %v7007_v41  ;;  %3904 = vmatmul.mubr.f32.vlgmr.msra.gmra.mrb[30].mxu0 %v10419_v8  ;;  %v1070_v8 = vld [vmem:[%s11349_s1 + $0x2020] sm:$0xff]  ;;  %v1077_v41 = vld [vmem:[%s11349_s1 + $0x2058] sm:$0xff]  ;;  %v7027_v49 = vpack.c.bf16 %v1125_v50, %v1124_v32  ;;  %v1187_v25 = vld [vmem:[%s11349_s1 + $0x23c8] sm:$0xff] }
 0x205   :  { %6978 = vmatpush3.bf16.msra.mxu0 %v6977_v62  ;;  %4043 = vmatprep.mubr.f32.mxu0 %v1606_v7  ;;  %v6985_v29 = vpack.c.bf16 %v1071_v19, %v1070_v8  ;;  %v1126_v62 = vld [vmem:[%s11349_s1 + $0x21e0] sm:$0xff]  ;;  %v1111_v7 = vld [vmem:[%s11349_s1 + $0x2168] sm:$0xff] }
 0x206   :  { %3974 = vmatmul.mubr.f32.vlgmr.msra.gmra.mrb[30].mxu1 %v10428_v26  ;;  %6980 = vmatprep.subr.bf16.mxu0 %v6979_v1  ;;  %v1103_v26 = vld [vmem:[%s11349_s1 + $0x2128] sm:$0xff]  ;;  %v6997_v1 = vpack.c.bf16 %v1077_v41, %v1076_v57  ;;  %v7033_v27 = vpack.c.bf16 %v1111_v7, %v1110_v61  ;;  %v1133_v57 = vld [vmem:[%s11349_s1 + $0x2218] sm:$0xff]  ;;  %v1164_v41 = vld [vmem:[%s11349_s1 + $0x2310] sm:$0xff] }
 0x207   :  { %7010 = vmatpush3.bf16.msra.mxu1 %v7009_v0  ;;  %4113 = vmatprep.mubr.f32.mxu1 %v1607_v15  ;;  %v7017_v31 = vpack.c.bf16 %v1103_v26, %v1102_v9  ;;  %v1127_v0 = vld [vmem:[%s11349_s1 + $0x21e8] sm:$0xff]  ;;  %v1166_v61 = vld [vmem:[%s11349_s1 + $0x2320] sm:$0xff]  ;;  %v1153_v7 = vld [vmem:[%s11349_s1 + $0x22b8] sm:$0xff] }
 0x208   :  { %7012 = vmatprep.subr.bf16.mxu1 %v7011_v5  ;;  %v1079_v5 = vld [vmem:[%s11349_s1 + $0x2068] sm:$0xff]  ;;  %v7031_v13 = vpack.c.bf16 %v1127_v0, %v1126_v62  ;;  %v1182_v62 = vld [vmem:[%s11349_s1 + $0x23a0] sm:$0xff] }
 0x209   :  { %6982 = vmatpush3.bf16.msra.mxu0 %v6981_v16  ;;  %v7001_v9 = vpack.c.bf16 %v1079_v5, %v1078_v4  ;;  %v1183_v0 = vld [vmem:[%s11349_s1 + $0x23a8] sm:$0xff]  ;;  %v7047_v4 = vpack.c.bf16 %v1151_v63, %v1150_v59  ;;  %v1158_v53 = vld [vmem:[%s11349_s1 + $0x22e0] sm:$0xff] }
 0x20a   :  { %6984 = vmatprep.subr.bf16.mxu0 %v6983_v18  ;;  %v1129_v18 = vld [vmem:[%s11349_s1 + $0x21f8] sm:$0xff]  ;;  %v1135_v5 = vld [vmem:[%s11349_s1 + $0x2228] sm:$0xff] }
 0x20b   :  { %7014 = vmatpush3.bf16.msra.mxu1 %v7013_v17  ;;  %v1128_v17 = vld [vmem:[%s11349_s1 + $0x21f0] sm:$0xff]  ;;  %v1159_v48 = vld [vmem:[%s11349_s1 + $0x22e8] sm:$0xff] }
 0x20c   :  { %7016 = vmatprep.subr.bf16.mxu1 %v7015_v20  ;;  %v39_v20 = vld [vmem:[%s11350_s0 + $0x88] sm:$0xff] }
 0x20d   :  { %6986 = vmatpush3.bf16.msra.mxu0 %v6985_v29  ;;  %v1112_v29 = vld [vmem:[%s11349_s1 + $0x2170] sm:$0xff]  ;;  %v1608_v34 = vcombine.high %v39_v20, %v39_v20  ;;  %v10839_v52 = vrot.slane %v39_v20, %v7408_v10  ;;  %v1169_v20 = vld [vmem:[%s11349_s1 + $0x2338] sm:$0xff] }
 0x20e   :  { %6988 = vmatprep.subr.bf16.mxu0 %v6987_v30  ;;  %v7035_v30 = vpack.c.bf16 %v1129_v18, %v1128_v17  ;;  %v7037_v36 = vpack.c.bf16 %v1113_v33, %v1112_v29  ;;  %v1136_v18 = vld [vmem:[%s11349_s1 + $0x2230] sm:$0xff]  ;;  %v1139_v33 = vld [vmem:[%s11349_s1 + $0x2248] sm:$0xff] }
 0x20f   :  { %7018 = vmatpush3.bf16.msra.mxu1 %v7017_v31  ;;  %v10848_v32 = vrot.slane %v1608_v34, %v7408_v10  ;;  %v1623_v60 = vcombine.high %v10839_v52, %v10839_v52  ;;  %v1157_v34 = vld [vmem:[%s11349_s1 + $0x22d8] sm:$0xff] }
 0x210   :  { %7020 = vmatprep.subr.bf16.mxu1 %v7019_v23  ;;  %v1178_v23 = vld [vmem:[%s11349_s1 + $0x2380] sm:$0xff] }
 0x211   :  { %6990 = vmatpush3.bf16.msra.mxu0 %v6989_v40  ;;  %v1130_v40 = vld [vmem:[%s11349_s1 + $0x2200] sm:$0xff] }
 0x212   :  { %6992 = vmatprep.subr.bf16.mxu0 %v6991_v44  ;;  %v1162_v44 = vld [vmem:[%s11349_s1 + $0x2300] sm:$0xff] }
 0x213   :  { %7022 = vmatpush3.bf16.msra.mxu1 %v7021_v42  ;;  %v1131_v42 = vld [vmem:[%s11349_s1 + $0x2208] sm:$0xff] }
 0x214   :  { %7024 = vmatprep.subr.bf16.mxu1 %v7023_v47  ;;  %v1149_v47 = vld [vmem:[%s11349_s1 + $0x2298] sm:$0xff]  ;;  %v7041_v50 = vpack.c.bf16 %v1131_v42, %v1130_v40 }
 0x215   :  { %6994 = vmatpush3.bf16.msra.mxu0 %v6993_v54  ;;  %v7073_v54 = vpack.c.bf16 %v1163_v46, %v1162_v44  ;;  %v1140_v44 = vld [vmem:[%s11349_s1 + $0x2250] sm:$0xff] }
 0x216   :  { %6996 = vmatprep.subr.bf16.mxu0 %v6995_v56  ;;  %v1132_v56 = vld [vmem:[%s11349_s1 + $0x2210] sm:$0xff] }
 0x217   :  { %7026 = vmatpush3.bf16.msra.mxu1 %v7025_v55  ;;  %v5238_v6 = vpop.f32.mrb[18].mxu0  ;;  %v7043_v55 = vpack.c.bf16 %v1149_v47, %v1148_v35  ;;  %v1172_v46 = vld [vmem:[%s11349_s1 + $0x2350] sm:$0xff]  ;;  %v1173_v47 = vld [vmem:[%s11349_s1 + $0x2358] sm:$0xff] }
 0x218   :  { %7028 = vmatprep.subr.bf16.mxu1 %v7027_v49  ;;  %v5239_v15 = vpop.f32.mrb[19].mxu0  ;;  %v1165_v49 = vld [vmem:[%s11349_s1 + $0x2318] sm:$0xff] }
 0x219   :  { %v5273_v16 = vpop.f32.mrb[18].mxu1  ;;  %v5240_v8 = vadd.f32 %v5239_v15, %v5238_v6  ;;  %6998 = vmatpush3.bf16.msra.mxu0 %v6997_v1  ;;  %v1624_v1 = vcombine.high %v10848_v32, %v10848_v32  ;;  %v7079_v6 = vpack.c.bf16 %v1183_v0, %v1182_v62  ;;  %v1160_v62 = vld [vmem:[%s11349_s1 + $0x22f0] sm:$0xff]  ;;  %v1161_v0 = vld [vmem:[%s11349_s1 + $0x22f8] sm:$0xff] }
 0x21a   :  { %v5274_v19 = vpop.f32.mrb[19].mxu1  ;;  %7000 = vmatprep.subr.bf16.mxu0 %v6999_v3  ;;  %v7077_v3 = vpack.c.bf16 %v1165_v49, %v1164_v41  ;;  %v1142_v41 = vld [vmem:[%s11349_s1 + $0x2260] sm:$0xff] }
 0x21b   :  { %v5275_v26 = vadd.f32 %v5274_v19, %v5273_v16  ;;  %7030 = vmatpush3.bf16.msra.mxu1 %v7029_v2  ;;  %v3066_v31 = vadd.f32 %v5240_v8, %v10608_v37  ;;  %v1179_v37 = vld [vmem:[%s11349_s1 + $0x2388] sm:$0xff]  ;;  %v7045_v2 = vpack.c.bf16 %v1133_v57, %v1132_v56  ;;  %v1137_v8 = vld [vmem:[%s11349_s1 + $0x2238] sm:$0xff]  ;;  %v1168_v19 = vld [vmem:[%s11349_s1 + $0x2330] sm:$0xff]  ;;  %v7093_v56 = vpack.c.bf16 %v1173_v47, %v1172_v46 }
 0x21c   :  { %7032 = vmatprep.subr.bf16.mxu1 %v7031_v13  ;;  %v7071_v45 = vpack.c.bf16 %v1179_v37, %v1178_v23  ;;  %v1152_v13 = vld [vmem:[%s11349_s1 + $0x22b0] sm:$0xff]  ;;  %v7053_v28 = vpack.c.bf16 %v1137_v8, %v1136_v18  ;;  %v7085_v29 = vpack.c.bf16 %v1169_v20, %v1168_v19  ;;  %v1171_v23 = vld [vmem:[%s11349_s1 + $0x2348] sm:$0xff]  ;;  %v7063_v57 = vpack.c.bf16 %v1159_v48, %v1158_v53  ;;  %v1174_v49 = vld [vmem:[%s11349_s1 + $0x2360] sm:$0xff] }
 0x21d   :  { %v10818_v24 = vadd.f32 %v5275_v26, %v3066_v31  ;;  %7002 = vmatpush3.bf16.msra.mxu0 %v7001_v9  ;;  %v7051_v17 = vpack.c.bf16 %v1153_v7, %v1152_v13  ;;  %v7083_v9 = vpack.c.bf16 %v1185_v14, %v1184_v12  ;;  %v1154_v26 = vld [vmem:[%s11349_s1 + $0x22c0] sm:$0xff]  ;;  %v1156_v37 = vld [vmem:[%s11349_s1 + $0x22d0] sm:$0xff]  ;;  %v7089_v40 = vpack.c.bf16 %v1171_v23, %v1170_v21  ;;  %v1145_v14 = vld [vmem:[%s11349_s1 + $0x2278] sm:$0xff] }
 0x21e   :  { %7004 = vmatprep.subr.bf16.mxu0 %v7003_v22  ;;  %v1186_v22 = vld [vmem:[%s11349_s1 + $0x23c0] sm:$0xff]  ;;  %v7059_v42 = vpack.c.bf16 %v1157_v34, %v1156_v37  ;;  %v7067_v7 = vpack.c.bf16 %v1161_v0, %v1160_v62  ;;  %v1144_v12 = vld [vmem:[%s11349_s1 + $0x2270] sm:$0xff]  ;;  %v1177_v18 = vld [vmem:[%s11349_s1 + $0x2378] sm:$0xff] }
 0x21f   :  { %7034 = vmatpush3.bf16.msra.mxu1 %v7033_v27  ;;  %v1155_v27 = vld [vmem:[%s11349_s1 + $0x22c8] sm:$0xff]  ;;  %v7087_v43 = vpack.c.bf16 %v1187_v25, %v1186_v22  ;;  %v1210_v8 = vld [vmem:[%s11349_s1 + $0x2480] sm:$0xff]  ;;  %v1212_v21 = vld [vmem:[%s11349_s1 + $0x2490] sm:$0xff] }
 0x220   :  { %7036 = vmatprep.subr.bf16.mxu1 %v7035_v30  ;;  %v7055_v31 = vpack.c.bf16 %v1155_v27, %v1154_v26  ;;  %v1138_v30 = vld [vmem:[%s11349_s1 + $0x2240] sm:$0xff]  ;;  %v1211_v19 = vld [vmem:[%s11349_s1 + $0x2488] sm:$0xff]  ;;  %v7069_v27 = vpack.c.bf16 %v1145_v14, %v1144_v12  ;;  %v1244_v37 = vld [vmem:[%s11349_s1 + $0x2590] sm:$0xff] }
 0x221   :  { %7006 = vmatpush3.bf16.msra.mxu0 %v7005_v39  ;;  %v1188_v39 = vld [vmem:[%s11349_s1 + $0x23d0] sm:$0xff]  ;;  %v7103_v25 = vpack.c.bf16 %v1211_v19, %v1210_v8  ;;  %v1245_v34 = vld [vmem:[%s11349_s1 + $0x2598] sm:$0xff]  ;;  %v1214_v47 = vld [vmem:[%s11349_s1 + $0x24a0] sm:$0xff] }
 0x222   :  { %7040 = vmatprep.subr.bf16.mxu0 %v7039_v38  ;;  %v7057_v38 = vpack.c.bf16 %v1139_v33, %v1138_v30  ;;  %v1227_v33 = vld [vmem:[%s11349_s1 + $0x2508] sm:$0xff]  ;;  %v7139_v46 = vpack.c.bf16 %v1245_v34, %v1244_v37  ;;  %v1248_v62 = vld [vmem:[%s11349_s1 + $0x25b0] sm:$0xff]  ;;  %v1249_v0 = vld [vmem:[%s11349_s1 + $0x25b8] sm:$0xff] }
 0x223   :  { %7038 = vmatpush3.bf16.msra.mxu1 %v7037_v36  ;;  %v1189_v36 = vld [vmem:[%s11349_s1 + $0x23d8] sm:$0xff]  ;;  %v1215_v53 = vld [vmem:[%s11349_s1 + $0x24a8] sm:$0xff]  ;;  %v1234_v8 = vld [vmem:[%s11349_s1 + $0x2540] sm:$0xff] }
 0x224   :  { %7072 = vmatprep.subr.bf16.mxu1 %v7071_v45  ;;  %4044 = vmatmul.mubr.f32.vlgmr.msra.gmra.mrb[32].mxu0 %v10629_v51  ;;  %v1134_v51 = vld [vmem:[%s11349_s1 + $0x2220] sm:$0xff]  ;;  %v1141_v45 = vld [vmem:[%s11349_s1 + $0x2258] sm:$0xff]  ;;  %v7091_v35 = vpack.c.bf16 %v1189_v36, %v1188_v39  ;;  %v1251_v12 = vld [vmem:[%s11349_s1 + $0x25c8] sm:$0xff] }
 0x225   :  { %7042 = vmatpush3.bf16.msra.mxu0 %v7041_v50  ;;  %4183 = vmatprep.mubr.f32.mxu0 %v1623_v60  ;;  %v7049_v15 = vpack.c.bf16 %v1135_v5, %v1134_v51  ;;  %v1190_v50 = vld [vmem:[%s11349_s1 + $0x23e0] sm:$0xff]  ;;  %v1175_v60 = vld [vmem:[%s11349_s1 + $0x2368] sm:$0xff] }
 0x226   :  { %4114 = vmatmul.mubr.f32.vlgmr.msra.gmra.mrb[32].mxu1 %v10638_v11  ;;  %7044 = vmatprep.subr.bf16.mxu0 %v7043_v55  ;;  %v1167_v11 = vld [vmem:[%s11349_s1 + $0x2328] sm:$0xff]  ;;  %v7061_v55 = vpack.c.bf16 %v1141_v45, %v1140_v44  ;;  %v7097_v13 = vpack.c.bf16 %v1175_v60, %v1174_v49  ;;  %v1197_v44 = vld [vmem:[%s11349_s1 + $0x2418] sm:$0xff]  ;;  %v1228_v45 = vld [vmem:[%s11349_s1 + $0x2510] sm:$0xff] }
 0x227   :  { %7074 = vmatpush3.bf16.msra.mxu1 %v7073_v54  ;;  %4253 = vmatprep.mubr.f32.mxu1 %v1624_v1  ;;  %v7081_v16 = vpack.c.bf16 %v1167_v11, %v1166_v61  ;;  %v1191_v54 = vld [vmem:[%s11349_s1 + $0x23e8] sm:$0xff]  ;;  %v1230_v49 = vld [vmem:[%s11349_s1 + $0x2520] sm:$0xff]  ;;  %v1217_v60 = vld [vmem:[%s11349_s1 + $0x24b8] sm:$0xff] }
 0x228   :  { %7076 = vmatprep.subr.bf16.mxu1 %v7075_v58  ;;  %v1143_v58 = vld [vmem:[%s11349_s1 + $0x2268] sm:$0xff]  ;;  %v7095_v63 = vpack.c.bf16 %v1191_v54, %v1190_v50  ;;  %v1246_v50 = vld [vmem:[%s11349_s1 + $0x25a0] sm:$0xff] }
 0x229   :  { %7046 = vmatpush3.bf16.msra.mxu0 %v7045_v2  ;;  %v7065_v61 = vpack.c.bf16 %v1143_v58, %v1142_v41  ;;  %v1247_v54 = vld [vmem:[%s11349_s1 + $0x25a8] sm:$0xff]  ;;  %v7111_v41 = vpack.c.bf16 %v1215_v53, %v1214_v47  ;;  %v1222_v37 = vld [vmem:[%s11349_s1 + $0x24e0] sm:$0xff] }
 0x22a   :  { %7048 = vmatprep.subr.bf16.mxu0 %v7047_v4  ;;  %v1193_v4 = vld [vmem:[%s11349_s1 + $0x23f8] sm:$0xff]  ;;  %v1199_v58 = vld [vmem:[%s11349_s1 + $0x2428] sm:$0xff] }
 0x22b   :  { %7078 = vmatpush3.bf16.msra.mxu1 %v7077_v3  ;;  %v1192_v3 = vld [vmem:[%s11349_s1 + $0x23f0] sm:$0xff]  ;;  %v1223_v34 = vld [vmem:[%s11349_s1 + $0x24e8] sm:$0xff] }
 0x22c   :  { %7080 = vmatprep.subr.bf16.mxu1 %v7079_v6  ;;  %v40_v6 = vld [vmem:[%s11350_s0 + $0x90] sm:$0xff] }
 0x22d   :  { %7050 = vmatpush3.bf16.msra.mxu0 %v7049_v15  ;;  %v1176_v15 = vld [vmem:[%s11349_s1 + $0x2370] sm:$0xff]  ;;  %v1625_v20 = vcombine.high %v40_v6, %v40_v6  ;;  %v11049_v23 = vrot.slane %v40_v6, %v7408_v10  ;;  %v1233_v6 = vld [vmem:[%s11349_s1 + $0x2538] sm:$0xff] }
 0x22e   :  { %7052 = vmatprep.subr.bf16.mxu0 %v7051_v17  ;;  %v7099_v17 = vpack.c.bf16 %v1193_v4, %v1192_v3  ;;  %v7101_v22 = vpack.c.bf16 %v1177_v18, %v1176_v15  ;;  %v1200_v4 = vld [vmem:[%s11349_s1 + $0x2430] sm:$0xff]  ;;  %v1203_v18 = vld [vmem:[%s11349_s1 + $0x2448] sm:$0xff] }
 0x22f   :  { %7082 = vmatpush3.bf16.msra.mxu1 %v7081_v16  ;;  %v11058_v39 = vrot.slane %v1625_v20, %v7408_v10  ;;  %v1640_v48 = vcombine.high %v11049_v23, %v11049_v23  ;;  %v1221_v20 = vld [vmem:[%s11349_s1 + $0x24d8] sm:$0xff] }
 0x230   :  { %7084 = vmatprep.subr.bf16.mxu1 %v7083_v9  ;;  %v1242_v9 = vld [vmem:[%s11349_s1 + $0x2580] sm:$0xff] }
 0x231   :  { %7054 = vmatpush3.bf16.msra.mxu0 %v7053_v28  ;;  %v1194_v28 = vld [vmem:[%s11349_s1 + $0x2400] sm:$0xff] }
 0x232   :  { %7056 = vmatprep.subr.bf16.mxu0 %v7055_v31  ;;  %v1226_v31 = vld [vmem:[%s11349_s1 + $0x2500] sm:$0xff] }
 0x233   :  { %7086 = vmatpush3.bf16.msra.mxu1 %v7085_v29  ;;  %v1195_v29 = vld [vmem:[%s11349_s1 + $0x2408] sm:$0xff] }
 0x234   :  { %7088 = vmatprep.subr.bf16.mxu1 %v7087_v43  ;;  %v1213_v43 = vld [vmem:[%s11349_s1 + $0x2498] sm:$0xff]  ;;  %v7105_v36 = vpack.c.bf16 %v1195_v29, %v1194_v28 }
 0x235   :  { %7058 = vmatpush3.bf16.msra.mxu0 %v7057_v38  ;;  %v7137_v38 = vpack.c.bf16 %v1227_v33, %v1226_v31  ;;  %v1204_v31 = vld [vmem:[%s11349_s1 + $0x2450] sm:$0xff] }
 0x236   :  { %7060 = vmatprep.subr.bf16.mxu0 %v7059_v42  ;;  %v1196_v42 = vld [vmem:[%s11349_s1 + $0x2410] sm:$0xff] }
 0x237   :  { %7090 = vmatpush3.bf16.msra.mxu1 %v7089_v40  ;;  %v5308_v59 = vpop.f32.mrb[20].mxu0  ;;  %v7107_v40 = vpack.c.bf16 %v1213_v43, %v1212_v21  ;;  %v1236_v33 = vld [vmem:[%s11349_s1 + $0x2550] sm:$0xff]  ;;  %v1237_v43 = vld [vmem:[%s11349_s1 + $0x2558] sm:$0xff] }
 0x238   :  { %7092 = vmatprep.subr.bf16.mxu1 %v7091_v35  ;;  %v5309_v1 = vpop.f32.mrb[21].mxu0  ;;  %v1229_v35 = vld [vmem:[%s11349_s1 + $0x2518] sm:$0xff] }
 0x239   :  { %v5343_v2 = vpop.f32.mrb[20].mxu1  ;;  %v5310_v51 = vadd.f32 %v5309_v1, %v5308_v59  ;;  %7062 = vmatpush3.bf16.msra.mxu0 %v7061_v55  ;;  %v1641_v55 = vcombine.high %v11058_v39, %v11058_v39  ;;  %v7143_v59 = vpack.c.bf16 %v1247_v54, %v1246_v50  ;;  %v1224_v50 = vld [vmem:[%s11349_s1 + $0x24f0] sm:$0xff]  ;;  %v1225_v54 = vld [vmem:[%s11349_s1 + $0x24f8] sm:$0xff] }
 0x23a   :  { %v5344_v5 = vpop.f32.mrb[21].mxu1  ;;  %7064 = vmatprep.subr.bf16.mxu0 %v7063_v57  ;;  %v7141_v57 = vpack.c.bf16 %v1229_v35, %v1228_v45  ;;  %v1206_v45 = vld [vmem:[%s11349_s1 + $0x2460] sm:$0xff] }
 0x23b   :  { %v5345_v11 = vadd.f32 %v5344_v5, %v5343_v2  ;;  %7094 = vmatpush3.bf16.msra.mxu1 %v7093_v56  ;;  %v3206_v16 = vadd.f32 %v5310_v51, %v10818_v24  ;;  %v1243_v24 = vld [vmem:[%s11349_s1 + $0x2588] sm:$0xff]  ;;  %v7109_v56 = vpack.c.bf16 %v1197_v44, %v1196_v42  ;;  %v1201_v51 = vld [vmem:[%s11349_s1 + $0x2438] sm:$0xff]  ;;  %v1232_v5 = vld [vmem:[%s11349_s1 + $0x2530] sm:$0xff]  ;;  %v7157_v42 = vpack.c.bf16 %v1237_v43, %v1236_v33 }
 0x23c   :  { %7096 = vmatprep.subr.bf16.mxu1 %v7095_v63  ;;  %v7135_v30 = vpack.c.bf16 %v1243_v24, %v1242_v9  ;;  %v1216_v63 = vld [vmem:[%s11349_s1 + $0x24b0] sm:$0xff]  ;;  %v7117_v14 = vpack.c.bf16 %v1201_v51, %v1200_v4  ;;  %v7149_v15 = vpack.c.bf16 %v1233_v6, %v1232_v5  ;;  %v1235_v9 = vld [vmem:[%s11349_s1 + $0x2548] sm:$0xff]  ;;  %v7127_v44 = vpack.c.bf16 %v1223_v34, %v1222_v37  ;;  %v1238_v35 = vld [vmem:[%s11349_s1 + $0x2560] sm:$0xff] }
 0x23d   :  { %v11028_v26 = vadd.f32 %v5345_v11, %v3206_v16  ;;  %7066 = vmatpush3.bf16.msra.mxu0 %v7065_v61  ;;  %v7115_v3 = vpack.c.bf16 %v1217_v60, %v1216_v63  ;;  %v7147_v61 = vpack.c.bf16 %v1249_v0, %v1248_v62  ;;  %v1218_v11 = vld [vmem:[%s11349_s1 + $0x24c0] sm:$0xff]  ;;  %v1220_v24 = vld [vmem:[%s11349_s1 + $0x24d0] sm:$0xff]  ;;  %v7153_v28 = vpack.c.bf16 %v1235_v9, %v1234_v8  ;;  %v1209_v62 = vld [vmem:[%s11349_s1 + $0x2478] sm:$0xff] }
 0x23e   :  { %7068 = vmatprep.subr.bf16.mxu0 %v7067_v7  ;;  %v1250_v7 = vld [vmem:[%s11349_s1 + $0x25c0] sm:$0xff]  ;;  %v7123_v29 = vpack.c.bf16 %v1221_v20, %v1220_v24  ;;  %v7131_v60 = vpack.c.bf16 %v1225_v54, %v1224_v50  ;;  %v1240_v0 = vld [vmem:[%s11349_s1 + $0x2570] sm:$0xff]  ;;  %v1275_v51 = vld [vmem:[%s11349_s1 + $0x2688] sm:$0xff]  ;;  %v7233_v43 = vmov 0.0  }
 0x23f   :  { %7098 = vmatpush3.bf16.msra.mxu1 %v7097_v13  ;;  %v1219_v13 = vld [vmem:[%s11349_s1 + $0x24c8] sm:$0xff]  ;;  %v7151_v19 = vpack.c.bf16 %v1251_v12, %v1250_v7  ;;  %v1274_v4 = vld [vmem:[%s11349_s1 + $0x2680] sm:$0xff]  ;;  %v41_v5 = vld [vmem:[%s11350_s0 + $0x98] sm:$0x3f] }
 0x240   :  { %7100 = vmatprep.subr.bf16.mxu1 %v7099_v17  ;;  %v7119_v16 = vpack.c.bf16 %v1219_v13, %v1218_v11  ;;  %v1202_v17 = vld [vmem:[%s11349_s1 + $0x2440] sm:$0xff]  ;;  %v7167_v11 = vpack.c.bf16 %v1275_v51, %v1274_v4  ;;  %v1259_v7 = vld [vmem:[%s11349_s1 + $0x2608] sm:$0xff]  ;;  %v11241_v12 = vrot.slane %v41_v5, %v7408_v10  ;;  %v1261_v9 = vld [vmem:[%s11349_s1 + $0x2618] sm:$0xff]  ;;  %v1642_v24 = vcombine.high %v41_v5, %v41_v5 }
 0x241   :  { %7070 = vmatpush3.bf16.msra.mxu0 %v7069_v27  ;;  %v1252_v27 = vld [vmem:[%s11349_s1 + $0x25d0] sm:$0xff]  ;;  %v1258_v13 = vld [vmem:[%s11349_s1 + $0x2600] sm:$0xff]  ;;  %v1263_v33 = vld [vmem:[%s11349_s1 + $0x2628] sm:$0xff] }
 0x242   :  { %7104 = vmatprep.subr.bf16.mxu0 %v7103_v25  ;;  %v7121_v25 = vpack.c.bf16 %v1203_v18, %v1202_v17  ;;  %v1291_v17 = vld [vmem:[%s11349_s1 + $0x2708] sm:$0xff]  ;;  %v7169_v18 = vpack.c.bf16 %v1259_v7, %v1258_v13  ;;  %v1657_v20 = vcombine.high %v11241_v12, %v11241_v12  ;;  %v1268_v50 = vld [vmem:[%s11349_s1 + $0x2650] sm:$0xff]  ;;  %v1269_v54 = vld [vmem:[%s11349_s1 + $0x2658] sm:$0xff] }
 0x243   :  { %7102 = vmatpush3.bf16.msra.mxu1 %v7101_v22  ;;  %v1253_v22 = vld [vmem:[%s11349_s1 + $0x25d8] sm:$0xff]  ;;  %v1272_v4 = vld [vmem:[%s11349_s1 + $0x2670] sm:$0xff] }
 0x244   :  { %7136 = vmatprep.subr.bf16.mxu1 %v7135_v30  ;;  %4184 = vmatmul.mubr.f32.vlgmr.msra.gmra.mrb[34].mxu0 %v10839_v52  ;;  %v1198_v52 = vld [vmem:[%s11349_s1 + $0x2420] sm:$0xff]  ;;  %v1205_v30 = vld [vmem:[%s11349_s1 + $0x2458] sm:$0xff]  ;;  %v7155_v21 = vpack.c.bf16 %v1253_v22, %v1252_v27  ;;  %v1279_v22 = vld [vmem:[%s11349_s1 + $0x26a8] sm:$0xff] }
 0x245   :  { %7106 = vmatpush3.bf16.msra.mxu0 %v7105_v36  ;;  %4323 = vmatprep.mubr.f32.mxu0 %v1640_v48  ;;  %v7113_v1 = vpack.c.bf16 %v1199_v58, %v1198_v52  ;;  %v1254_v36 = vld [vmem:[%s11349_s1 + $0x25e0] sm:$0xff]  ;;  %v1239_v48 = vld [vmem:[%s11349_s1 + $0x2568] sm:$0xff]  ;;  %v1273_v51 = vld [vmem:[%s11349_s1 + $0x2678] sm:$0xff] }
 0x246   :  { %4254 = vmatmul.mubr.f32.vlgmr.msra.gmra.mrb[34].mxu1 %v10848_v32  ;;  %7108 = vmatprep.subr.bf16.mxu0 %v7107_v40  ;;  %v1231_v32 = vld [vmem:[%s11349_s1 + $0x2528] sm:$0xff]  ;;  %v7125_v40 = vpack.c.bf16 %v1205_v30, %v1204_v31  ;;  %v7161_v63 = vpack.c.bf16 %v1239_v48, %v1238_v35  ;;  %v1278_v27 = vld [vmem:[%s11349_s1 + $0x26a0] sm:$0xff]  ;;  %v1284_v35 = vld [vmem:[%s11349_s1 + $0x26d0] sm:$0xff] }
 0x247   :  { %7138 = vmatpush3.bf16.msra.mxu1 %v7137_v38  ;;  %4393 = vmatprep.mubr.f32.mxu1 %v1641_v55  ;;  %v7145_v2 = vpack.c.bf16 %v1231_v32, %v1230_v49  ;;  %v1255_v38 = vld [vmem:[%s11349_s1 + $0x25e8] sm:$0xff]  ;;  %v7175_v31 = vpack.c.bf16 %v1279_v22, %v1278_v27  ;;  %v1262_v30 = vld [vmem:[%s11349_s1 + $0x2620] sm:$0xff] }
 0x248   :  { %7140 = vmatprep.subr.bf16.mxu1 %v7139_v46  ;;  %v1207_v46 = vld [vmem:[%s11349_s1 + $0x2468] sm:$0xff]  ;;  %v7159_v53 = vpack.c.bf16 %v1255_v38, %v1254_v36  ;;  %v7177_v37 = vpack.c.bf16 %v1263_v33, %v1262_v30  ;;  %v1265_v36 = vld [vmem:[%s11349_s1 + $0x2638] sm:$0xff]  ;;  %v1282_v38 = vld [vmem:[%s11349_s1 + $0x26c0] sm:$0xff] }
 0x249   :  { %7110 = vmatpush3.bf16.msra.mxu0 %v7109_v56  ;;  %v7129_v49 = vpack.c.bf16 %v1207_v46, %v1206_v45  ;;  %v1266_v45 = vld [vmem:[%s11349_s1 + $0x2640] sm:$0xff]  ;;  %v1267_v46 = vld [vmem:[%s11349_s1 + $0x2648] sm:$0xff] }
 0x24a   :  { %7112 = vmatprep.subr.bf16.mxu0 %v7111_v41  ;;  %v1257_v41 = vld [vmem:[%s11349_s1 + $0x25f8] sm:$0xff] }
 0x24b   :  { %7142 = vmatpush3.bf16.msra.mxu1 %v7141_v57  ;;  %v1256_v57 = vld [vmem:[%s11349_s1 + $0x25f0] sm:$0xff] }
 0x24c   :  { %7144 = vmatprep.subr.bf16.mxu1 %v7143_v59  ;;  %v1208_v59 = vld [vmem:[%s11349_s1 + $0x2470] sm:$0xff] }
 0x24d   :  { %7114 = vmatpush3.bf16.msra.mxu0 %v7113_v1  ;;  %v1241_v1 = vld [vmem:[%s11349_s1 + $0x2578] sm:$0xff]  ;;  %v7133_v6 = vpack.c.bf16 %v1209_v62, %v1208_v59  ;;  %v1288_v59 = vld [vmem:[%s11349_s1 + $0x26f0] sm:$0xff] }
 0x24e   :  { %7116 = vmatprep.subr.bf16.mxu0 %v7115_v3  ;;  %v7163_v3 = vpack.c.bf16 %v1257_v41, %v1256_v57  ;;  %v7189_v57 = vpack.c.bf16 %v1269_v54, %v1268_v50 }
 0x24f   :  { %7146 = vmatpush3.bf16.msra.mxu1 %v7145_v2 }
 0x250   :  { %7148 = vmatprep.subr.bf16.mxu1 %v7147_v61 }
 0x251   :  { %7118 = vmatpush3.bf16.msra.mxu0 %v7117_v14  ;;  %v1276_v14 = vld [vmem:[%s11349_s1 + $0x2690] sm:$0xff] }
 0x252   :  { %7120 = vmatprep.subr.bf16.mxu0 %v7119_v16  ;;  %v1290_v16 = vld [vmem:[%s11349_s1 + $0x2700] sm:$0xff] }
 0x253   :  { %7150 = vmatpush3.bf16.msra.mxu1 %v7149_v15  ;;  %v1277_v15 = vld [vmem:[%s11349_s1 + $0x2698] sm:$0xff] }
 0x254   :  { %7152 = vmatprep.subr.bf16.mxu1 %v7151_v19  ;;  %v7171_v8 = vpack.c.bf16 %v1277_v15, %v1276_v14  ;;  %v1260_v19 = vld [vmem:[%s11349_s1 + $0x2610] sm:$0xff] }
 0x255   :  { %7122 = vmatpush3.bf16.msra.mxu0 %v7121_v25  ;;  %v7231_v25 = vmov 0.0|0.0  }
 0x256   :  { %7124 = vmatprep.subr.bf16.mxu0 %v7123_v29  ;;  %v7173_v29 = vpack.c.bf16 %v1261_v9, %v1260_v19 }
 0x257   :  { %7154 = vmatpush3.bf16.msra.mxu1 %v7153_v28  ;;  %v5378_v47 = vpop.f32.mrb[22].mxu0  ;;  %v7200_v28 = vpack.c.bf16 %v1291_v17, %v1290_v16 }
 0x258   :  { %7156 = vmatprep.subr.bf16.mxu1 %v7155_v21  ;;  %v5379_v55 = vpop.f32.mrb[23].mxu0  ;;  %v1656_v21 = vrot.slane %v1642_v24, %v7408_v10  ;;  %v1264_v10 = vld [vmem:[%s11349_s1 + $0x2630] sm:$0xff] }
 0x259   :  { %v5413_v56 = vpop.f32.mrb[22].mxu1  ;;  %v5380_v52 = vadd.f32 %v5379_v55, %v5378_v47  ;;  %7126 = vmatpush3.bf16.msra.mxu0 %v7125_v40  ;;  %v1283_v40 = vld [vmem:[%s11349_s1 + $0x26c8] sm:$0xff]  ;;  %v1285_v47 = vld [vmem:[%s11349_s1 + $0x26d8] sm:$0xff]  ;;  %v1286_v55 = vld [vmem:[%s11349_s1 + $0x26e0] sm:$0xff] }
 0x25a   :  { %v5414_v58 = vpop.f32.mrb[23].mxu1  ;;  %7128 = vmatprep.subr.bf16.mxu0 %v7127_v44  ;;  %v7183_v44 = vpack.c.bf16 %v1283_v40, %v1282_v38  ;;  %v7187_v48 = vpack.c.bf16 %v1285_v47, %v1284_v35  ;;  %v10_v40 = vstv %s11352_s4 }
 0x25b   :  { %v5415_v32 = vadd.f32 %v5414_v58, %v5413_v56  ;;  %7158 = vmatpush3.bf16.msra.mxu1 %v7157_v42  ;;  %v3346_v2 = vadd.f32 %v5380_v52, %v11028_v26  ;;  %v7165_v26 = vpack.c.bf16 %v1241_v1, %v1240_v0  ;;  %v7181_v42 = vpack.c.bf16 %v1265_v36, %v1264_v10  ;;  %v1287_v56 = vld [vmem:[%s11349_s1 + $0x26e8] sm:$0xff]  ;;  %v1270_v52 = vld [vmem:[%s11349_s1 + $0x2660] sm:$0xff] }
 0x25c   :  { %7160 = vmatprep.subr.bf16.mxu1 %v7159_v53  ;;  %v7185_v53 = vpack.c.bf16 %v1267_v46, %v1266_v45  ;;  %v7191_v41 = vpack.c.bf16 %v1287_v56, %v1286_v55  ;;  %v1271_v58 = vld [vmem:[%s11349_s1 + $0x2668] sm:$0xff]  ;;  %11 = vst [vmem:[#allocation2] sm:$0x1] %v10_v40 }
 0x25d   :  { %v11232_v61 = vadd.f32 %v5415_v32, %v3346_v2  ;;  %7130 = vmatpush3.bf16.msra.mxu0 %v7129_v49  ;;  %v1289_v32 = vld [vmem:[%s11349_s1 + $0x26f8] sm:$0xff]  ;;  %v7193_v1 = vpack.c.bf16 %v1271_v58, %v1270_v52 }
 0x25e   :  { %7132 = vmatprep.subr.bf16.mxu0 %v7131_v60 }
 0x25f   :  { %7162 = vmatpush3.bf16.msra.mxu1 %v7161_v63 }
 0x260   :  { %7164 = vmatprep.subr.bf16.mxu1 %v7163_v3  ;;  %v7195_v3 = vpack.c.bf16 %v1289_v32, %v1288_v59 }
 0x261   :  { %7134 = vmatpush3.bf16.msra.mxu0 %v7133_v6 }
 0x262   :  { %7168 = vmatprep.subr.bf16.mxu0 %v7167_v11 }
 0x263   :  { %7166 = vmatpush3.bf16.msra.mxu1 %v7165_v26  ;;  %v7197_v26 = vpack.c.bf16 %v1273_v51, %v1272_v4  ;;  %v4574_v4 = vld [vmem:[%s11353_s3] ss:$0 sm:$0xff] }
 0x264   :  { %7199 = vmatprep.subr.bf16.mxu1 %v7231_v25  ;;  %4324 = vmatmul.mubr.f32.vlgmr.msra.gmra.mrb[36].mxu0 %v11049_v23  ;;  %v1280_v23 = vld [vmem:[%s11349_s1 + $0x26b0] sm:$0xff] }
 0x265   :  { %7170 = vmatpush3.bf16.msra.mxu0 %v7169_v18  ;;  %4463 = vmatprep.mubr.f32.mxu0 %v1657_v20 }
 0x266   :  { %4394 = vmatmul.mubr.f32.vlgmr.msra.gmra.mrb[36].mxu1 %v11058_v39  ;;  %7172 = vmatprep.subr.bf16.mxu0 %v7171_v8  ;;  %v1281_v39 = vld [vmem:[%s11349_s1 + $0x26b8] sm:$0xff] }
 0x267   :  { %7201 = vmatpush3.bf16.msra.mxu1 %v7200_v28  ;;  %5948 = vmatprep.mubr.msk.f32.mxu1 %vm7232_vm0, %v7233_v43  ;;  %v7179_v34 = vpack.c.bf16 %v1281_v39, %v1280_v23 }
 0x269   :  { %7174 = vmatpush3.bf16.msra.mxu0 %v7173_v29 }
 0x26a   :  { %7176 = vmatprep.subr.bf16.mxu0 %v7175_v31  ;;  %5949 = vmatmul.mubr.msk.f32.vlgmr.msra.gmra.mrb[38].mxu1 %vm1736_vm1, %v1656_v21 }
 0x26d   :  { %7178 = vmatpush3.bf16.msra.mxu0 %v7177_v37 }
 0x26e   :  { %7180 = vmatprep.subr.bf16.mxu0 %v7179_v34 }
 0x271   :  { %7182 = vmatpush3.bf16.msra.mxu0 %v7181_v42 }
 0x272   :  { %7184 = vmatprep.subr.bf16.mxu0 %v7183_v44 }
 0x275   :  { %7186 = vmatpush3.bf16.msra.mxu0 %v7185_v53 }
 0x276   :  { %7188 = vmatprep.subr.bf16.mxu0 %v7187_v48 }
 0x277   :  { %v5448_v49 = vpop.f32.mrb[24].mxu0 }
 0x278   :  { %v5449_v63 = vpop.f32.mrb[25].mxu0 }
 0x279   :  { %v5483_v60 = vpop.f32.mrb[24].mxu1  ;;  %v5450_v62 = vadd.f32 %v5449_v63, %v5448_v49  ;;  %7190 = vmatpush3.bf16.msra.mxu0 %v7189_v57 }
 0x27a   :  { %v5484_v0 = vpop.f32.mrb[25].mxu1  ;;  %7192 = vmatprep.subr.bf16.mxu0 %v7191_v41 }
 0x27b   :  { %v5485_v2 = vadd.f32 %v5484_v0, %v5483_v60  ;;  %v3486_v5 = vadd.f32 %v5450_v62, %v11232_v61 }
 0x27d   :  { %v3556_v6 = vadd.f32 %v5485_v2, %v3486_v5  ;;  %7194 = vmatpush3.bf16.msra.mxu0 %v7193_v1 }
 0x27e   :  { %7196 = vmatprep.subr.bf16.mxu0 %v7195_v3 }
 0x281   :  { %7198 = vmatpush3.bf16.msra.mxu0 %v7197_v26  ;;  %v4575_v26 = vld [vmem:[#allocation2] ss:$0 sm:$0xff] }
 0x284   :  { %4464 = vmatmul.mubr.f32.vlgmr.msra.gmra.mrb[38].mxu0 %v11241_v12 }
 0x297   :  { %v5518_v11 = vpop.f32.mrb[26].mxu0 }
 0x298   :  { %v5519_v13 = vpop.f32.mrb[27].mxu0 }
 0x299   :  { %v5553_v7 = vpop.f32.mrb[26].mxu1  ;;  %v5520_v14 = vadd.f32 %v5519_v13, %v5518_v11 }
 0x29a   :  { %v5554_v15 = vpop.f32.mrb[27].mxu1 }
 0x29b   :  { %v5555_v16 = vadd.f32 %v5554_v15, %v5553_v7  ;;  %v3626_v17 = vadd.f32 %v5520_v14, %v3556_v6 }
 0x29d   :  { %v3696_v18 = vadd.f32 %v5555_v16, %v3626_v17 }
 0x2b7   :  { %v5588_v8 = vpop.f32.mrb[28].mxu0 }
 0x2b8   :  { %v5589_v19 = vpop.f32.mrb[29].mxu0 }
 0x2b9   :  { %v5623_v9 = vpop.f32.mrb[28].mxu1  ;;  %v5590_v24 = vadd.f32 %v5589_v19, %v5588_v8 }
 0x2ba   :  { %v5624_v61 = vpop.f32.mrb[29].mxu1 }
 0x2bb   :  { %v5625_v20 = vadd.f32 %v5624_v61, %v5623_v9  ;;  %v3766_v27 = vadd.f32 %v5590_v24, %v3696_v18 }
 0x2bd   :  { %v3836_v22 = vadd.f32 %v5625_v20, %v3766_v27 }
 0x2d7   :  { %v5658_v25 = vpop.f32.mrb[30].mxu0 }
 0x2d8   :  { %v5659_v28 = vpop.f32.mrb[31].mxu0 }
 0x2d9   :  { %v5693_v29 = vpop.f32.mrb[30].mxu1  ;;  %v5660_v12 = vadd.f32 %v5659_v28, %v5658_v25 }
 0x2da   :  { %v5694_v31 = vpop.f32.mrb[31].mxu1 }
 0x2db   :  { %v5695_v30 = vadd.f32 %v5694_v31, %v5693_v29  ;;  %v3906_v33 = vadd.f32 %v5660_v12, %v3836_v22 }
 0x2dd   :  { %v3976_v21 = vadd.f32 %v5695_v30, %v3906_v33 }
 0x2f7   :  { %v5728_v23 = vpop.f32.mrb[32].mxu0 }
 0x2f8   :  { %v5729_v39 = vpop.f32.mrb[33].mxu0 }
 0x2f9   :  { %v5763_v43 = vpop.f32.mrb[32].mxu1  ;;  %v5730_v37 = vadd.f32 %v5729_v39, %v5728_v23 }
 0x2fa   :  { %v5764_v34 = vpop.f32.mrb[33].mxu1 }
 0x2fb   :  { %v5765_v10 = vadd.f32 %v5764_v34, %v5763_v43  ;;  %v4046_v36 = vadd.f32 %v5730_v37, %v3976_v21 }
 0x2fd   :  { %v4116_v38 = vadd.f32 %v5765_v10, %v4046_v36 }
 0x317   :  { %v5798_v42 = vpop.f32.mrb[34].mxu0 }
 0x318   :  { %v5799_v44 = vpop.f32.mrb[35].mxu0 }
 0x319   :  { %v5833_v45 = vpop.f32.mrb[34].mxu1  ;;  %v5800_v46 = vadd.f32 %v5799_v44, %v5798_v42 }
 0x31a   :  { %v5834_v35 = vpop.f32.mrb[35].mxu1 }
 0x31b   :  { %v5835_v47 = vadd.f32 %v5834_v35, %v5833_v45  ;;  %v4186_v53 = vadd.f32 %v5800_v46, %v4116_v38 }
 0x31d   :  { %v4256_v48 = vadd.f32 %v5835_v47, %v4186_v53 }
 0x337   :  { %v5868_v50 = vpop.f32.mrb[36].mxu0 }
 0x338   :  { %v5869_v54 = vpop.f32.mrb[37].mxu0 }
 0x339   :  { %v5903_v55 = vpop.f32.mrb[36].mxu1  ;;  %v5870_v56 = vadd.f32 %v5869_v54, %v5868_v50 }
 0x33a   :  { %v5904_v57 = vpop.f32.mrb[37].mxu1 }
 0x33b   :  { %v5905_v41 = vadd.f32 %v5904_v57, %v5903_v55  ;;  %v4326_v52 = vadd.f32 %v5870_v56, %v4256_v48 }
 0x33d   :  { %v4396_v58 = vadd.f32 %v5905_v41, %v4326_v52  ;;  %v4535_v49 = vpop.f32.mrb[38].mxu1 }
 0x33e   :  { %v5950_v59 = vpop.f32.mrb[39].mxu1 }
 0x357   :  { %v5938_v32 = vpop.f32.mrb[38].mxu0 }
 0x358   :  { %v5939_v63 = vpop.f32.mrb[39].mxu0 }
 0x359   :  { %v5940_v60 = vadd.f32 %v5939_v63, %v5938_v32 }
 0x35b   :  { %v4466_v62 = vadd.f32 %v5940_v60, %v4396_v58 }
 0x35d   :  { %v4536_v0 = vadd.f32 %v4535_v49, %v4466_v62 }
 0x35f   :  { %v4573_v1 = vmul.f32 -1.442695, %v4536_v0 }
 0x361   :  { %7226 = vpow2.f32 %v4573_v1 }
 0x36b   :  { %v7227_v2 = vpop.eup %7226 }
 0x36c   :  { %v4542_v3 = vadd.f32 1.0, %v7227_v2 }
 0x36e   :  { %7228 = vrcp.f32 %v4542_v3 }
 0x378   :  { %v7229_v51 = vpop.eup %7228 }
 0x379   :  { %v4552_v5 = vmul.f32 %v7229_v51, %v4574_v4 }
 0x37b   :  { %v4554_v6 = vsel %vm4553_vm2, %v4552_v5, 0.0 }
 0x37c   :  { %4555 = vadd.xlane.f32.xlu0 %v4554_v6 }
 0x409   :  { %v4556_v11 = vpop.xlane.xlu0 %4555 }
 0x40a   :  { %v4564_v13 = vadd.f32 %v4575_v26, %v4556_v11 }
 0x40c   :  { %4566 = vst.msk [vmem:[%s11354_s5] sm:$0x3] %vm4565_vm3, %v4564_v13 }

</bundles_post_ra>
